<compile_context>
chip_gen: v7x
topology: tpu7x:2x2x1
jax: 0.10.0
libtpu: 0.0.40
codegen_flags: <defaults>
</compile_context>

<pallas_src>
import functools

import jax
import jax.numpy as jnp
from jax import lax
from jax.experimental import pallas as pl
from jax.experimental.pallas import tpu as pltpu

# ----------------------- small, module-consistent config -----------------------
N_EMBD = 128          # n_embd (scaled down from 512)
N_HEAD = 4            # n_head (scaled down from 10; head_size divides evenly)
HEAD_SIZE = N_EMBD // N_HEAD
N_LAYER = 2           # n_layer (scaled down from 10)
BLOCK_SIZE = 16       # block_size (max positions, scaled down from 256)
VOCAB_SIZE = 256      # tokenizer.get_vocab_size() stand-in
NEG_SLOPE = 0.01      # LeakyReLU negative_slope
LN_EPS = 1e-5         # torch.nn.LayerNorm default eps
MASK_NEG = -1e30      # additive mask value (safe: causal diagonal never fully masks a row)


# ----------------------------- fused Pallas kernel -------------------------------
def _layer_norm(x, g, b):
    # single-pass statistics: var = E[x^2] - E[x]^2  (biased variance, like torch LN)
    mean = jnp.mean(x, axis=-1, keepdims=True)
    msq = jnp.mean(x * x, axis=-1, keepdims=True)
    var = msq - mean * mean
    inv = lax.rsqrt(var + LN_EPS)
    return (x - mean) * inv * g + b


def _gpt_fused_kernel(
    tok_ref, pos_ref, mask_ref,
    ln1_g_ref, ln1_b_ref, wqkv_ref,
    proj_w_ref, proj_b_ref,
    ln2_g_ref, ln2_b_ref,
    fc1_w_ref, fc1_b_ref, fc2_w_ref, fc2_b_ref,
    lnf_g_ref, lnf_b_ref, lm_w_ref, lm_b_ref,
    o_ref,
    head_scratch,
    *, n_layer, n_head, head_size, batch,
):
    C = n_head * head_size

    # residual stream: one lane-dense (B*T, C) f32 slab, entirely in VMEM/vregs
    x = tok_ref[...] + jnp.concatenate([pos_ref[...]] * batch, axis=0)   # (BT, C)

    # additive attention mask: 0 where (same batch AND causal), -1e30 elsewhere
    amask = mask_ref[...]                                                 # (BT, BT)

    # contract last axis of q against last axis of k (q @ k^T without materializing k.T)
    dn_tb = (((1,), (1,)), ((), ()))

    # TODO(synk): at the real depth (n_layer=10) replace this static unroll with
    # lax.fori_loop / a layer grid axis to bound vreg live ranges and VMEM residency.
    for l in range(n_layer):
        # ---------------- self-attention sub-block ----------------
        h = _layer_norm(x, ln1_g_ref[l], ln1_b_ref[l])                    # (BT, C)
        # fused QKV: one lane-dense (BT, C) x (C, 3C) bf16 matmul, f32 accumulate.
        # head_size**-0.5 is pre-folded into the Q columns of wqkv (init-time transform).
        qkv = jnp.dot(h.astype(jnp.bfloat16), wqkv_ref[l],
                      preferred_element_type=jnp.float32)                 # (BT, 3C)

        for hh in range(n_head):
            q = qkv[:, hh * head_size:(hh + 1) * head_size].astype(jnp.bfloat16)
            k = qkv[:, C + hh * head_size:C + (hh + 1) * head_size].astype(jnp.bfloat16)
            v = qkv[:, 2 * C + hh * head_size:2 * C + (hh + 1) * head_size].astype(jnp.bfloat16)
            # (BT, BT) scores over the full folded-batch rows; the additive mask enforces
            # batch block-diagonality + causality in one VPU add (no vselect, no scale mul).
            s = lax.dot_general(q, k, dn_tb, preferred_element_type=jnp.float32)
            s = s + amask
            s = s - jnp.max(s, axis=-1, keepdims=True)
            p = jnp.exp(s)
            p = p * pl.reciprocal(jnp.sum(p, axis=-1, keepdims=True), approx=True)
            # write head output at its static lane offset (no concat relayout)
            head_scratch[:, hh * head_size:(hh + 1) * head_size] = jnp.dot(
                p.astype(jnp.bfloat16), v, preferred_element_type=jnp.float32)

        sa = jnp.dot(head_scratch[...].astype(jnp.bfloat16), proj_w_ref[l],
                     preferred_element_type=jnp.float32) + proj_b_ref[l]
        x = x + sa                                  # residual (dropout = identity in eval)

        # ---------------- feed-forward sub-block ----------------
        h2 = _layer_norm(x, ln2_g_ref[l], ln2_b_ref[l])
        a1 = jnp.dot(h2.astype(jnp.bfloat16), fc1_w_ref[l],
                     preferred_element_type=jnp.float32) + fc1_b_ref[l]
        a1 = jnp.where(a1 >= 0, a1, NEG_SLOPE * a1)                       # LeakyReLU
        ff = jnp.dot(a1.astype(jnp.bfloat16), fc2_w_ref[l],
                     preferred_element_type=jnp.float32) + fc2_b_ref[l]
        x = x + ff                                  # residual (dropout = identity in eval)

    # ---------------- final LN + lm_head ----------------
    xf = _layer_norm(x, lnf_g_ref[...], lnf_b_ref[...])
    logits = jnp.dot(xf.astype(jnp.bfloat16), lm_w_ref[...],
                     preferred_element_type=jnp.float32) + lm_b_ref[...]
    # TODO(synk): at a production vocab, emit bf16 here to halve the HBM writeback.
    o_ref[...] = logits.astype(o_ref.dtype)


# ------------------------------ parameter init ----------------------------------
def init_params(key):
    def normal(k, shape):
        return 0.02 * jax.random.normal(k, shape, dtype=jnp.float32)

    C, V, L = N_EMBD, VOCAB_SIZE, N_LAYER
    ks = jax.random.split(key, 9)

    # fold head_size**-0.5 into the Q columns of the fused QKV weight (free, init-time)
    scale = HEAD_SIZE ** -0.5
    wq = normal(ks[3], (L, C, C)) * scale
    wk = normal(ks[4], (L, C, C))
    wv = normal(ks[5], (L, C, C))

    params = {
        # embeddings / final head
        "tok_emb": normal(ks[0], (V, C)),
        "pos_emb": normal(ks[1], (BLOCK_SIZE, C)),
        "lnf_g": jnp.ones((1, C), jnp.float32),
        "lnf_b": jnp.zeros((1, C), jnp.float32),
        "lm_w": normal(ks[2], (C, V)).astype(jnp.bfloat16),      # MXU operand -> bf16
        "lm_b": jnp.zeros((1, V), jnp.float32),
        # per-layer weights stacked along a leading layer axis (VMEM-resident)
        "ln1_g": jnp.ones((L, 1, C), jnp.float32),
        "ln1_b": jnp.zeros((L, 1, C), jnp.float32),
        "wqkv": jnp.concatenate([wq, wk, wv], axis=-1).astype(jnp.bfloat16),  # [Wq*s | Wk | Wv]
        "proj_w": normal(ks[6], (L, C, C)).astype(jnp.bfloat16),
        "proj_b": jnp.zeros((L, 1, C), jnp.float32),
        "ln2_g": jnp.ones((L, 1, C), jnp.float32),
        "ln2_b": jnp.zeros((L, 1, C), jnp.float32),
        "fc1_w": normal(ks[7], (L, C, 4 * C)).astype(jnp.bfloat16),
        "fc1_b": jnp.zeros((L, 1, 4 * C), jnp.float32),
        "fc2_w": normal(ks[8], (L, 4 * C, C)).astype(jnp.bfloat16),
        "fc2_b": jnp.zeros((L, 1, C), jnp.float32),
    }
    return params


# ------------------------------- forward pass ------------------------------------
def gpt_forward(idx, params, targets=None):
    B, T = idx.shape
    C, V, L = N_EMBD, VOCAB_SIZE, N_LAYER

    # TODO(synk): nn.Embedding gather kept outside the kernel (data-dependent row gather);
    # everything after it is fused in a single pallas_call.
    tok_emb = jnp.take(params["tok_emb"], idx.reshape(B * T), axis=0)     # (B*T, C)
    pos_emb = params["pos_emb"][:T]                                       # (T, C)

    # precomputed additive attention mask over the folded (B*T) rows:
    # 0 where same batch AND column <= row (causal), -1e30 elsewhere.
    t = jnp.arange(T)
    causal = t[None, :] <= t[:, None]                                     # (T, T)
    bidx = jnp.arange(B)
    same_b = bidx[:, None] == bidx[None, :]                               # (B, B)
    keep = (same_b[:, None, :, None] & causal[None, :, None, :]).reshape(B * T, B * T)
    amask = jnp.where(keep, 0.0, MASK_NEG).astype(jnp.float32)

    kern = functools.partial(_gpt_fused_kernel, n_layer=L, n_head=N_HEAD,
                             head_size=HEAD_SIZE, batch=B)

    # No grid: one invocation, whole arrays resident in VMEM (no per-step overhead, no
    # double-buffering of the constant weights).  At real scale: row-tile B*T on a
    # "parallel" grid axis and stream layers on an "arbitrary" axis (v7x 64 MiB VMEM).
    logits = pl.pallas_call(
        kern,
        out_shape=jax.ShapeDtypeStruct((B * T, V), jnp.float32),
        scratch_shapes=[pltpu.VMEM((B * T, C), jnp.float32)],   # head-concat scratch
        compiler_params=pltpu.CompilerParams(vmem_limit_bytes=64 * 1024 * 1024),
    )(
        tok_emb, pos_emb, amask,
        params["ln1_g"], params["ln1_b"], params["wqkv"],
        params["proj_w"], params["proj_b"],
        params["ln2_g"], params["ln2_b"],
        params["fc1_w"], params["fc1_b"], params["fc2_w"], params["fc2_b"],
        params["lnf_g"], params["lnf_b"], params["lm_w"], params["lm_b"],
    )
    logits = logits.reshape(B, T, V)

    loss = None
    if targets is not None:
        lg = logits.reshape(B * T, V)
        tg = targets.reshape(B * T)
        logz = jax.nn.logsumexp(lg, axis=-1)
        loss = jnp.mean(logz - jnp.take_along_axis(lg, tg[:, None], axis=-1)[:, 0])
    return logits, loss


# ------------------------------------ main ---------------------------------------
if __name__ == "__main__":
    key = jax.random.PRNGKey(0)
    pkey, ikey = jax.random.split(key)

    params = init_params(pkey)

    B, T = 2, 8
    idx = jax.random.randint(ikey, (B, T), 0, VOCAB_SIZE, dtype=jnp.int32)

    logits, loss = gpt_forward(idx, params, targets=None)
    logits = jax.block_until_ready(logits)

    assert logits.shape == (B, T, VOCAB_SIZE)
    assert loss is None
    assert bool(jnp.all(jnp.isfinite(logits)))
    print("KERNEL_OK")
</pallas_src>

<mosaic_0001>
module attributes {stable_mosaic.version = 11 : i64} {
  func.func @_gpt_fused_kernel(%arg0: memref<16x128xf32, #tpu.memory_space<vmem>>, %arg1: memref<8x128xf32, #tpu.memory_space<vmem>>, %arg2: memref<16x16xf32, #tpu.memory_space<vmem>>, %arg3: memref<2x1x128xf32, #tpu.memory_space<vmem>>, %arg4: memref<2x1x128xf32, #tpu.memory_space<vmem>>, %arg5: memref<2x128x384xbf16, #tpu.memory_space<vmem>>, %arg6: memref<2x128x128xbf16, #tpu.memory_space<vmem>>, %arg7: memref<2x1x128xf32, #tpu.memory_space<vmem>>, %arg8: memref<2x1x128xf32, #tpu.memory_space<vmem>>, %arg9: memref<2x1x128xf32, #tpu.memory_space<vmem>>, %arg10: memref<2x128x512xbf16, #tpu.memory_space<vmem>>, %arg11: memref<2x1x512xf32, #tpu.memory_space<vmem>>, %arg12: memref<2x512x128xbf16, #tpu.memory_space<vmem>>, %arg13: memref<2x1x128xf32, #tpu.memory_space<vmem>>, %arg14: memref<1x128xf32, #tpu.memory_space<vmem>>, %arg15: memref<1x128xf32, #tpu.memory_space<vmem>>, %arg16: memref<128x256xbf16, #tpu.memory_space<vmem>>, %arg17: memref<1x256xf32, #tpu.memory_space<vmem>>, %arg18: memref<16x256xf32, #tpu.memory_space<vmem>>, %arg19: memref<16x128xf32, #tpu.memory_space<vmem>>) attributes {dimension_semantics = [], scalar_prefetch = 0 : i64, scratch_operands = 1 : i64, tpu.core_type = #tpu.core_type<tc>} {
    %c0 = arith.constant 0 : index
    %c0_0 = arith.constant 0 : index
    %0 = vector.load %arg0[%c0, %c0_0] : memref<16x128xf32, #tpu.memory_space<vmem>>, vector<16x128xf32>
    %c0_1 = arith.constant 0 : index
    %c0_2 = arith.constant 0 : index
    %1 = vector.load %arg1[%c0_1, %c0_2] : memref<8x128xf32, #tpu.memory_space<vmem>>, vector<8x128xf32>
    %2 = tpu.concatenate %1, %1 in 0 : vector<8x128xf32>, vector<8x128xf32> -> vector<16x128xf32>
    %3 = arith.addf %0, %2 : vector<16x128xf32>
    %c0_3 = arith.constant 0 : index
    %c0_4 = arith.constant 0 : index
    %4 = vector.load %arg2[%c0_3, %c0_4] : memref<16x16xf32, #tpu.memory_space<vmem>>, vector<16x16xf32>
    %c0_5 = arith.constant 0 : index
    %c0_6 = arith.constant 0 : index
    %c0_7 = arith.constant 0 : index
    %5 = vector.load %arg3[%c0_5, %c0_6, %c0_7] : memref<2x1x128xf32, #tpu.memory_space<vmem>>, vector<1x1x128xf32>
    %6 = vector.shape_cast %5 : vector<1x1x128xf32> to vector<1x128xf32>
    %c0_8 = arith.constant 0 : index
    %c0_9 = arith.constant 0 : index
    %c0_10 = arith.constant 0 : index
    %7 = vector.load %arg4[%c0_8, %c0_9, %c0_10] : memref<2x1x128xf32, #tpu.memory_space<vmem>>, vector<1x1x128xf32>
    %8 = vector.shape_cast %7 : vector<1x1x128xf32> to vector<1x128xf32>
    %cst = arith.constant dense<0.000000e+00> : vector<16xf32>
    %9 = vector.multi_reduction <add>, %3, %cst [1] : vector<16x128xf32> to vector<16xf32>
    %10 = vector.shape_cast %9 : vector<16xf32> to vector<16x1xf32>
    %cst_11 = arith.constant 1.280000e+02 : f32
    %11 = vector.broadcast %cst_11 : f32 to vector<16x1xf32>
    %12 = arith.divf %10, %11 : vector<16x1xf32>
    %13 = arith.mulf %3, %3 : vector<16x128xf32>
    %cst_12 = arith.constant dense<0.000000e+00> : vector<16xf32>
    %14 = vector.multi_reduction <add>, %13, %cst_12 [1] : vector<16x128xf32> to vector<16xf32>
    %15 = vector.shape_cast %14 : vector<16xf32> to vector<16x1xf32>
    %cst_13 = arith.constant 1.280000e+02 : f32
    %16 = vector.broadcast %cst_13 : f32 to vector<16x1xf32>
    %17 = arith.divf %15, %16 : vector<16x1xf32>
    %18 = arith.mulf %12, %12 : vector<16x1xf32>
    %19 = arith.subf %17, %18 : vector<16x1xf32>
    %cst_14 = arith.constant 9.99999974E-6 : f32
    %20 = vector.broadcast %cst_14 : f32 to vector<16x1xf32>
    %21 = arith.addf %19, %20 : vector<16x1xf32>
    %22 = math.rsqrt %21 : vector<16x1xf32>
    %23 = vector.broadcast %12 : vector<16x1xf32> to vector<16x128xf32>
    %24 = arith.subf %3, %23 : vector<16x128xf32>
    %25 = vector.broadcast %22 : vector<16x1xf32> to vector<16x128xf32>
    %26 = arith.mulf %24, %25 : vector<16x128xf32>
    %27 = vector.broadcast %6 : vector<1x128xf32> to vector<16x128xf32>
    %28 = arith.mulf %26, %27 : vector<16x128xf32>
    %29 = vector.broadcast %8 : vector<1x128xf32> to vector<16x128xf32>
    %30 = arith.addf %28, %29 : vector<16x128xf32>
    %31 = arith.truncf %30 : vector<16x128xf32> to vector<16x128xbf16>
    %c0_15 = arith.constant 0 : index
    %c0_16 = arith.constant 0 : index
    %c0_17 = arith.constant 0 : index
    %32 = vector.load %arg5[%c0_15, %c0_16, %c0_17] : memref<2x128x384xbf16, #tpu.memory_space<vmem>>, vector<1x128x384xbf16>
    %33 = vector.shape_cast %32 : vector<1x128x384xbf16> to vector<128x384xbf16>
    %cst_18 = arith.constant dense<0.000000e+00> : vector<16x384xf32>
    %34 = tpu.matmul %31, %33, %cst_18 {dimension_numbers = #tpu.dot_dimension_numbers<[1], [0], [0], [1], [0, 0, 1, 1], [], []>} : vector<16x128xbf16>, vector<128x384xbf16>, vector<16x384xf32> -> vector<16x384xf32>
    %35 = vector.extract_strided_slice %34 {offsets = [0, 0], sizes = [16, 32], strides = [1, 1]} : vector<16x384xf32> to vector<16x32xf32>
    %36 = arith.truncf %35 : vector<16x32xf32> to vector<16x32xbf16>
    %37 = vector.extract_strided_slice %34 {offsets = [0, 128], sizes = [16, 32], strides = [1, 1]} : vector<16x384xf32> to vector<16x32xf32>
    %38 = arith.truncf %37 : vector<16x32xf32> to vector<16x32xbf16>
    %39 = vector.extract_strided_slice %34 {offsets = [0, 256], sizes = [16, 32], strides = [1, 1]} : vector<16x384xf32> to vector<16x32xf32>
    %40 = arith.truncf %39 : vector<16x32xf32> to vector<16x32xbf16>
    %cst_19 = arith.constant dense<0.000000e+00> : vector<16x16xf32>
    %41 = tpu.matmul %36, %38, %cst_19 {dimension_numbers = #tpu.dot_dimension_numbers<[1], [1], [0], [0], [0, 0, 1, 0], [], []>} : vector<16x32xbf16>, vector<16x32xbf16>, vector<16x16xf32> -> vector<16x16xf32>
    %42 = arith.addf %41, %4 : vector<16x16xf32>
    %cst_20 = arith.constant dense<0xFF800000> : vector<16xf32>
    %43 = vector.multi_reduction <maximumf>, %42, %cst_20 [1] : vector<16x16xf32> to vector<16xf32>
    %44 = vector.shape_cast %43 : vector<16xf32> to vector<16x1xf32>
    %45 = vector.broadcast %44 : vector<16x1xf32> to vector<16x16xf32>
    %46 = arith.subf %42, %45 : vector<16x16xf32>
    %47 = math.exp %46 : vector<16x16xf32>
    %cst_21 = arith.constant dense<0.000000e+00> : vector<16xf32>
    %48 = vector.multi_reduction <add>, %47, %cst_21 [1] : vector<16x16xf32> to vector<16xf32>
    %49 = vector.shape_cast %48 : vector<16xf32> to vector<16x1xf32>
    %50 = tpu.reciprocal %49 {approx = true} : vector<16x1xf32> -> vector<16x1xf32>
    %51 = vector.broadcast %50 : vector<16x1xf32> to vector<16x16xf32>
    %52 = arith.mulf %47, %51 : vector<16x16xf32>
    %53 = arith.truncf %52 : vector<16x16xf32> to vector<16x16xbf16>
    %cst_22 = arith.constant dense<0.000000e+00> : vector<16x32xf32>
    %54 = tpu.matmul %53, %40, %cst_22 {dimension_numbers = #tpu.dot_dimension_numbers<[1], [0], [0], [1], [0, 0, 1, 1], [], []>} : vector<16x16xbf16>, vector<16x32xbf16>, vector<16x32xf32> -> vector<16x32xf32>
    %c0_23 = arith.constant 0 : index
    %c0_24 = arith.constant 0 : index
    %55 = vector.load %arg19[%c0_23, %c0_24] : memref<16x128xf32, #tpu.memory_space<vmem>>, vector<16x32xf32>
    tpu.vector_store %arg19[%c0_23, %c0_24], %54 {strides = array<i32>} : memref<16x128xf32, #tpu.memory_space<vmem>>, vector<16x32xf32>,
    %56 = vector.extract_strided_slice %34 {offsets = [0, 32], sizes = [16, 32], strides = [1, 1]} : vector<16x384xf32> to vector<16x32xf32>
    %57 = arith.truncf %56 : vector<16x32xf32> to vector<16x32xbf16>
    %58 = vector.extract_strided_slice %34 {offsets = [0, 160], sizes = [16, 32], strides = [1, 1]} : vector<16x384xf32> to vector<16x32xf32>
    %59 = arith.truncf %58 : vector<16x32xf32> to vector<16x32xbf16>
    %60 = vector.extract_strided_slice %34 {offsets = [0, 288], sizes = [16, 32], strides = [1, 1]} : vector<16x384xf32> to vector<16x32xf32>
    %61 = arith.truncf %60 : vector<16x32xf32> to vector<16x32xbf16>
    %cst_25 = arith.constant dense<0.000000e+00> : vector<16x16xf32>
    %62 = tpu.matmul %57, %59, %cst_25 {dimension_numbers = #tpu.dot_dimension_numbers<[1], [1], [0], [0], [0, 0, 1, 0], [], []>} : vector<16x32xbf16>, vector<16x32xbf16>, vector<16x16xf32> -> vector<16x16xf32>
    %63 = arith.addf %62, %4 : vector<16x16xf32>
    %cst_26 = arith.constant dense<0xFF800000> : vector<16xf32>
    %64 = vector.multi_reduction <maximumf>, %63, %cst_26 [1] : vector<16x16xf32> to vector<16xf32>
    %65 = vector.shape_cast %64 : vector<16xf32> to vector<16x1xf32>
    %66 = vector.broadcast %65 : vector<16x1xf32> to vector<16x16xf32>
    %67 = arith.subf %63, %66 : vector<16x16xf32>
    %68 = math.exp %67 : vector<16x16xf32>
    %cst_27 = arith.constant dense<0.000000e+00> : vector<16xf32>
    %69 = vector.multi_reduction <add>, %68, %cst_27 [1] : vector<16x16xf32> to vector<16xf32>
    %70 = vector.shape_cast %69 : vector<16xf32> to vector<16x1xf32>
    %71 = tpu.reciprocal %70 {approx = true} : vector<16x1xf32> -> vector<16x1xf32>
    %72 = vector.broadcast %71 : vector<16x1xf32> to vector<16x16xf32>
    %73 = arith.mulf %68, %72 : vector<16x16xf32>
    %74 = arith.truncf %73 : vector<16x16xf32> to vector<16x16xbf16>
    %cst_28 = arith.constant dense<0.000000e+00> : vector<16x32xf32>
    %75 = tpu.matmul %74, %61, %cst_28 {dimension_numbers = #tpu.dot_dimension_numbers<[1], [0], [0], [1], [0, 0, 1, 1], [], []>} : vector<16x16xbf16>, vector<16x32xbf16>, vector<16x32xf32> -> vector<16x32xf32>
    %c0_29 = arith.constant 0 : index
    %c32 = arith.constant 32 : index
    %76 = vector.load %arg19[%c0_29, %c32] : memref<16x128xf32, #tpu.memory_space<vmem>>, vector<16x32xf32>
    tpu.vector_store %arg19[%c0_29, %c32], %75 {strides = array<i32>} : memref<16x128xf32, #tpu.memory_space<vmem>>, vector<16x32xf32>,
    %77 = vector.extract_strided_slice %34 {offsets = [0, 64], sizes = [16, 32], strides = [1, 1]} : vector<16x384xf32> to vector<16x32xf32>
    %78 = arith.truncf %77 : vector<16x32xf32> to vector<16x32xbf16>
    %79 = vector.extract_strided_slice %34 {offsets = [0, 192], sizes = [16, 32], strides = [1, 1]} : vector<16x384xf32> to vector<16x32xf32>
    %80 = arith.truncf %79 : vector<16x32xf32> to vector<16x32xbf16>
    %81 = vector.extract_strided_slice %34 {offsets = [0, 320], sizes = [16, 32], strides = [1, 1]} : vector<16x384xf32> to vector<16x32xf32>
    %82 = arith.truncf %81 : vector<16x32xf32> to vector<16x32xbf16>
    %cst_30 = arith.constant dense<0.000000e+00> : vector<16x16xf32>
    %83 = tpu.matmul %78, %80, %cst_30 {dimension_numbers = #tpu.dot_dimension_numbers<[1], [1], [0], [0], [0, 0, 1, 0], [], []>} : vector<16x32xbf16>, vector<16x32xbf16>, vector<16x16xf32> -> vector<16x16xf32>
    %84 = arith.addf %83, %4 : vector<16x16xf32>
    %cst_31 = arith.constant dense<0xFF800000> : vector<16xf32>
    %85 = vector.multi_reduction <maximumf>, %84, %cst_31 [1] : vector<16x16xf32> to vector<16xf32>
    %86 = vector.shape_cast %85 : vector<16xf32> to vector<16x1xf32>
    %87 = vector.broadcast %86 : vector<16x1xf32> to vector<16x16xf32>
    %88 = arith.subf %84, %87 : vector<16x16xf32>
    %89 = math.exp %88 : vector<16x16xf32>
    %cst_32 = arith.constant dense<0.000000e+00> : vector<16xf32>
    %90 = vector.multi_reduction <add>, %89, %cst_32 [1] : vector<16x16xf32> to vector<16xf32>
    %91 = vector.shape_cast %90 : vector<16xf32> to vector<16x1xf32>
    %92 = tpu.reciprocal %91 {approx = true} : vector<16x1xf32> -> vector<16x1xf32>
    %93 = vector.broadcast %92 : vector<16x1xf32> to vector<16x16xf32>
    %94 = arith.mulf %89, %93 : vector<16x16xf32>
    %95 = arith.truncf %94 : vector<16x16xf32> to vector<16x16xbf16>
    %cst_33 = arith.constant dense<0.000000e+00> : vector<16x32xf32>
    %96 = tpu.matmul %95, %82, %cst_33 {dimension_numbers = #tpu.dot_dimension_numbers<[1], [0], [0], [1], [0, 0, 1, 1], [], []>} : vector<16x16xbf16>, vector<16x32xbf16>, vector<16x32xf32> -> vector<16x32xf32>
    %c0_34 = arith.constant 0 : index
    %c64 = arith.constant 64 : index
    %97 = vector.load %arg19[%c0_34, %c64] : memref<16x128xf32, #tpu.memory_space<vmem>>, vector<16x32xf32>
    tpu.vector_store %arg19[%c0_34, %c64], %96 {strides = array<i32>} : memref<16x128xf32, #tpu.memory_space<vmem>>, vector<16x32xf32>,
    %98 = vector.extract_strided_slice %34 {offsets = [0, 96], sizes = [16, 32], strides = [1, 1]} : vector<16x384xf32> to vector<16x32xf32>
    %99 = arith.truncf %98 : vector<16x32xf32> to vector<16x32xbf16>
    %100 = vector.extract_strided_slice %34 {offsets = [0, 224], sizes = [16, 32], strides = [1, 1]} : vector<16x384xf32> to vector<16x32xf32>
    %101 = arith.truncf %100 : vector<16x32xf32> to vector<16x32xbf16>
    %102 = vector.extract_strided_slice %34 {offsets = [0, 352], sizes = [16, 32], strides = [1, 1]} : vector<16x384xf32> to vector<16x32xf32>
    %103 = arith.truncf %102 : vector<16x32xf32> to vector<16x32xbf16>
    %cst_35 = arith.constant dense<0.000000e+00> : vector<16x16xf32>
    %104 = tpu.matmul %99, %101, %cst_35 {dimension_numbers = #tpu.dot_dimension_numbers<[1], [1], [0], [0], [0, 0, 1, 0], [], []>} : vector<16x32xbf16>, vector<16x32xbf16>, vector<16x16xf32> -> vector<16x16xf32>
    %105 = arith.addf %104, %4 : vector<16x16xf32>
    %cst_36 = arith.constant dense<0xFF800000> : vector<16xf32>
    %106 = vector.multi_reduction <maximumf>, %105, %cst_36 [1] : vector<16x16xf32> to vector<16xf32>
    %107 = vector.shape_cast %106 : vector<16xf32> to vector<16x1xf32>
    %108 = vector.broadcast %107 : vector<16x1xf32> to vector<16x16xf32>
    %109 = arith.subf %105, %108 : vector<16x16xf32>
    %110 = math.exp %109 : vector<16x16xf32>
    %cst_37 = arith.constant dense<0.000000e+00> : vector<16xf32>
    %111 = vector.multi_reduction <add>, %110, %cst_37 [1] : vector<16x16xf32> to vector<16xf32>
    %112 = vector.shape_cast %111 : vector<16xf32> to vector<16x1xf32>
    %113 = tpu.reciprocal %112 {approx = true} : vector<16x1xf32> -> vector<16x1xf32>
    %114 = vector.broadcast %113 : vector<16x1xf32> to vector<16x16xf32>
    %115 = arith.mulf %110, %114 : vector<16x16xf32>
    %116 = arith.truncf %115 : vector<16x16xf32> to vector<16x16xbf16>
    %cst_38 = arith.constant dense<0.000000e+00> : vector<16x32xf32>
    %117 = tpu.matmul %116, %103, %cst_38 {dimension_numbers = #tpu.dot_dimension_numbers<[1], [0], [0], [1], [0, 0, 1, 1], [], []>} : vector<16x16xbf16>, vector<16x32xbf16>, vector<16x32xf32> -> vector<16x32xf32>
    %c0_39 = arith.constant 0 : index
    %c96 = arith.constant 96 : index
    %118 = vector.load %arg19[%c0_39, %c96] : memref<16x128xf32, #tpu.memory_space<vmem>>, vector<16x32xf32>
    tpu.vector_store %arg19[%c0_39, %c96], %117 {strides = array<i32>} : memref<16x128xf32, #tpu.memory_space<vmem>>, vector<16x32xf32>,
    %c0_40 = arith.constant 0 : index
    %c0_41 = arith.constant 0 : index
    %119 = vector.load %arg19[%c0_40, %c0_41] : memref<16x128xf32, #tpu.memory_space<vmem>>, vector<16x128xf32>
    %120 = arith.truncf %119 : vector<16x128xf32> to vector<16x128xbf16>
    %c0_42 = arith.constant 0 : index
    %c0_43 = arith.constant 0 : index
    %c0_44 = arith.constant 0 : index
    %121 = vector.load %arg6[%c0_42, %c0_43, %c0_44] : memref<2x128x128xbf16, #tpu.memory_space<vmem>>, vector<1x128x128xbf16>
    %122 = vector.shape_cast %121 : vector<1x128x128xbf16> to vector<128x128xbf16>
    %cst_45 = arith.constant dense<0.000000e+00> : vector<16x128xf32>
    %123 = tpu.matmul %120, %122, %cst_45 {dimension_numbers = #tpu.dot_dimension_numbers<[1], [0], [0], [1], [0, 0, 1, 1], [], []>} : vector<16x128xbf16>, vector<128x128xbf16>, vector<16x128xf32> -> vector<16x128xf32>
    %c0_46 = arith.constant 0 : index
    %c0_47 = arith.constant 0 : index
    %c0_48 = arith.constant 0 : index
    %124 = vector.load %arg7[%c0_46, %c0_47, %c0_48] : memref<2x1x128xf32, #tpu.memory_space<vmem>>, vector<1x1x128xf32>
    %125 = vector.shape_cast %124 : vector<1x1x128xf32> to vector<1x128xf32>
    %126 = vector.broadcast %125 : vector<1x128xf32> to vector<16x128xf32>
    %127 = arith.addf %123, %126 : vector<16x128xf32>
    %128 = arith.addf %3, %127 : vector<16x128xf32>
    %c0_49 = arith.constant 0 : index
    %c0_50 = arith.constant 0 : index
    %c0_51 = arith.constant 0 : index
    %129 = vector.load %arg8[%c0_49, %c0_50, %c0_51] : memref<2x1x128xf32, #tpu.memory_space<vmem>>, vector<1x1x128xf32>
    %130 = vector.shape_cast %129 : vector<1x1x128xf32> to vector<1x128xf32>
    %c0_52 = arith.constant 0 : index
    %c0_53 = arith.constant 0 : index
    %c0_54 = arith.constant 0 : index
    %131 = vector.load %arg9[%c0_52, %c0_53, %c0_54] : memref<2x1x128xf32, #tpu.memory_space<vmem>>, vector<1x1x128xf32>
    %132 = vector.shape_cast %131 : vector<1x1x128xf32> to vector<1x128xf32>
    %cst_55 = arith.constant dense<0.000000e+00> : vector<16xf32>
    %133 = vector.multi_reduction <add>, %128, %cst_55 [1] : vector<16x128xf32> to vector<16xf32>
    %134 = vector.shape_cast %133 : vector<16xf32> to vector<16x1xf32>
    %cst_56 = arith.constant 1.280000e+02 : f32
    %135 = vector.broadcast %cst_56 : f32 to vector<16x1xf32>
    %136 = arith.divf %134, %135 : vector<16x1xf32>
    %137 = arith.mulf %128, %128 : vector<16x128xf32>
    %cst_57 = arith.constant dense<0.000000e+00> : vector<16xf32>
    %138 = vector.multi_reduction <add>, %137, %cst_57 [1] : vector<16x128xf32> to vector<16xf32>
    %139 = vector.shape_cast %138 : vector<16xf32> to vector<16x1xf32>
    %cst_58 = arith.constant 1.280000e+02 : f32
    %140 = vector.broadcast %cst_58 : f32 to vector<16x1xf32>
    %141 = arith.divf %139, %140 : vector<16x1xf32>
    %142 = arith.mulf %136, %136 : vector<16x1xf32>
    %143 = arith.subf %141, %142 : vector<16x1xf32>
    %cst_59 = arith.constant 9.99999974E-6 : f32
    %144 = vector.broadcast %cst_59 : f32 to vector<16x1xf32>
    %145 = arith.addf %143, %144 : vector<16x1xf32>
    %146 = math.rsqrt %145 : vector<16x1xf32>
    %147 = vector.broadcast %136 : vector<16x1xf32> to vector<16x128xf32>
    %148 = arith.subf %128, %147 : vector<16x128xf32>
    %149 = vector.broadcast %146 : vector<16x1xf32> to vector<16x128xf32>
    %150 = arith.mulf %148, %149 : vector<16x128xf32>
    %151 = vector.broadcast %130 : vector<1x128xf32> to vector<16x128xf32>
    %152 = arith.mulf %150, %151 : vector<16x128xf32>
    %153 = vector.broadcast %132 : vector<1x128xf32> to vector<16x128xf32>
    %154 = arith.addf %152, %153 : vector<16x128xf32>
    %155 = arith.truncf %154 : vector<16x128xf32> to vector<16x128xbf16>
    %c0_60 = arith.constant 0 : index
    %c0_61 = arith.constant 0 : index
    %c0_62 = arith.constant 0 : index
    %156 = vector.load %arg10[%c0_60, %c0_61, %c0_62] : memref<2x128x512xbf16, #tpu.memory_space<vmem>>, vector<1x128x512xbf16>
    %157 = vector.shape_cast %156 : vector<1x128x512xbf16> to vector<128x512xbf16>
    %cst_63 = arith.constant dense<0.000000e+00> : vector<16x512xf32>
    %158 = tpu.matmul %155, %157, %cst_63 {dimension_numbers = #tpu.dot_dimension_numbers<[1], [0], [0], [1], [0, 0, 1, 1], [], []>} : vector<16x128xbf16>, vector<128x512xbf16>, vector<16x512xf32> -> vector<16x512xf32>
    %c0_64 = arith.constant 0 : index
    %c0_65 = arith.constant 0 : index
    %c0_66 = arith.constant 0 : index
    %159 = vector.load %arg11[%c0_64, %c0_65, %c0_66] : memref<2x1x512xf32, #tpu.memory_space<vmem>>, vector<1x1x512xf32>
    %160 = vector.shape_cast %159 : vector<1x1x512xf32> to vector<1x512xf32>
    %161 = vector.broadcast %160 : vector<1x512xf32> to vector<16x512xf32>
    %162 = arith.addf %158, %161 : vector<16x512xf32>
    %cst_67 = arith.constant 0.000000e+00 : f32
    %163 = vector.broadcast %cst_67 : f32 to vector<16x512xf32>
    %164 = arith.cmpf oge, %162, %163 : vector<16x512xf32>
    %cst_68 = arith.constant 0.00999999977 : f32
    %165 = vector.broadcast %cst_68 : f32 to vector<16x512xf32>
    %166 = arith.mulf %165, %162 : vector<16x512xf32>
    %167 = arith.select %164, %162, %166 : vector<16x512xi1>, vector<16x512xf32>
    %168 = arith.truncf %167 : vector<16x512xf32> to vector<16x512xbf16>
    %c0_69 = arith.constant 0 : index
    %c0_70 = arith.constant 0 : index
    %c0_71 = arith.constant 0 : index
    %169 = vector.load %arg12[%c0_69, %c0_70, %c0_71] : memref<2x512x128xbf16, #tpu.memory_space<vmem>>, vector<1x512x128xbf16>
    %170 = vector.shape_cast %169 : vector<1x512x128xbf16> to vector<512x128xbf16>
    %cst_72 = arith.constant dense<0.000000e+00> : vector<16x128xf32>
    %171 = tpu.matmul %168, %170, %cst_72 {dimension_numbers = #tpu.dot_dimension_numbers<[1], [0], [0], [1], [0, 0, 1, 1], [], []>} : vector<16x512xbf16>, vector<512x128xbf16>, vector<16x128xf32> -> vector<16x128xf32>
    %c0_73 = arith.constant 0 : index
    %c0_74 = arith.constant 0 : index
    %c0_75 = arith.constant 0 : index
    %172 = vector.load %arg13[%c0_73, %c0_74, %c0_75] : memref<2x1x128xf32, #tpu.memory_space<vmem>>, vector<1x1x128xf32>
    %173 = vector.shape_cast %172 : vector<1x1x128xf32> to vector<1x128xf32>
    %174 = vector.broadcast %173 : vector<1x128xf32> to vector<16x128xf32>
    %175 = arith.addf %171, %174 : vector<16x128xf32>
    %176 = arith.addf %128, %175 : vector<16x128xf32>
    %c1 = arith.constant 1 : index
    %c0_76 = arith.constant 0 : index
    %c0_77 = arith.constant 0 : index
    %177 = vector.load %arg3[%c1, %c0_76, %c0_77] : memref<2x1x128xf32, #tpu.memory_space<vmem>>, vector<1x1x128xf32>
    %178 = vector.shape_cast %177 : vector<1x1x128xf32> to vector<1x128xf32>
    %c1_78 = arith.constant 1 : index
    %c0_79 = arith.constant 0 : index
    %c0_80 = arith.constant 0 : index
    %179 = vector.load %arg4[%c1_78, %c0_79, %c0_80] : memref<2x1x128xf32, #tpu.memory_space<vmem>>, vector<1x1x128xf32>
    %180 = vector.shape_cast %179 : vector<1x1x128xf32> to vector<1x128xf32>
    %cst_81 = arith.constant dense<0.000000e+00> : vector<16xf32>
    %181 = vector.multi_reduction <add>, %176, %cst_81 [1] : vector<16x128xf32> to vector<16xf32>
    %182 = vector.shape_cast %181 : vector<16xf32> to vector<16x1xf32>
    %cst_82 = arith.constant 1.280000e+02 : f32
    %183 = vector.broadcast %cst_82 : f32 to vector<16x1xf32>
    %184 = arith.divf %182, %183 : vector<16x1xf32>
    %185 = arith.mulf %176, %176 : vector<16x128xf32>
    %cst_83 = arith.constant dense<0.000000e+00> : vector<16xf32>
    %186 = vector.multi_reduction <add>, %185, %cst_83 [1] : vector<16x128xf32> to vector<16xf32>
    %187 = vector.shape_cast %186 : vector<16xf32> to vector<16x1xf32>
    %cst_84 = arith.constant 1.280000e+02 : f32
    %188 = vector.broadcast %cst_84 : f32 to vector<16x1xf32>
    %189 = arith.divf %187, %188 : vector<16x1xf32>
    %190 = arith.mulf %184, %184 : vector<16x1xf32>
    %191 = arith.subf %189, %190 : vector<16x1xf32>
    %cst_85 = arith.constant 9.99999974E-6 : f32
    %192 = vector.broadcast %cst_85 : f32 to vector<16x1xf32>
    %193 = arith.addf %191, %192 : vector<16x1xf32>
    %194 = math.rsqrt %193 : vector<16x1xf32>
    %195 = vector.broadcast %184 : vector<16x1xf32> to vector<16x128xf32>
    %196 = arith.subf %176, %195 : vector<16x128xf32>
    %197 = vector.broadcast %194 : vector<16x1xf32> to vector<16x128xf32>
    %198 = arith.mulf %196, %197 : vector<16x128xf32>
    %199 = vector.broadcast %178 : vector<1x128xf32> to vector<16x128xf32>
    %200 = arith.mulf %198, %199 : vector<16x128xf32>
    %201 = vector.broadcast %180 : vector<1x128xf32> to vector<16x128xf32>
    %202 = arith.addf %200, %201 : vector<16x128xf32>
    %203 = arith.truncf %202 : vector<16x128xf32> to vector<16x128xbf16>
    %c1_86 = arith.constant 1 : index
    %c0_87 = arith.constant 0 : index
    %c0_88 = arith.constant 0 : index
    %204 = vector.load %arg5[%c1_86, %c0_87, %c0_88] : memref<2x128x384xbf16, #tpu.memory_space<vmem>>, vector<1x128x384xbf16>
    %205 = vector.shape_cast %204 : vector<1x128x384xbf16> to vector<128x384xbf16>
    %cst_89 = arith.constant dense<0.000000e+00> : vector<16x384xf32>
    %206 = tpu.matmul %203, %205, %cst_89 {dimension_numbers = #tpu.dot_dimension_numbers<[1], [0], [0], [1], [0, 0, 1, 1], [], []>} : vector<16x128xbf16>, vector<128x384xbf16>, vector<16x384xf32> -> vector<16x384xf32>
    %207 = vector.extract_strided_slice %206 {offsets = [0, 0], sizes = [16, 32], strides = [1, 1]} : vector<16x384xf32> to vector<16x32xf32>
    %208 = arith.truncf %207 : vector<16x32xf32> to vector<16x32xbf16>
    %209 = vector.extract_strided_slice %206 {offsets = [0, 128], sizes = [16, 32], strides = [1, 1]} : vector<16x384xf32> to vector<16x32xf32>
    %210 = arith.truncf %209 : vector<16x32xf32> to vector<16x32xbf16>
    %211 = vector.extract_strided_slice %206 {offsets = [0, 256], sizes = [16, 32], strides = [1, 1]} : vector<16x384xf32> to vector<16x32xf32>
    %212 = arith.truncf %211 : vector<16x32xf32> to vector<16x32xbf16>
    %cst_90 = arith.constant dense<0.000000e+00> : vector<16x16xf32>
    %213 = tpu.matmul %208, %210, %cst_90 {dimension_numbers = #tpu.dot_dimension_numbers<[1], [1], [0], [0], [0, 0, 1, 0], [], []>} : vector<16x32xbf16>, vector<16x32xbf16>, vector<16x16xf32> -> vector<16x16xf32>
    %214 = arith.addf %213, %4 : vector<16x16xf32>
    %cst_91 = arith.constant dense<0xFF800000> : vector<16xf32>
    %215 = vector.multi_reduction <maximumf>, %214, %cst_91 [1] : vector<16x16xf32> to vector<16xf32>
    %216 = vector.shape_cast %215 : vector<16xf32> to vector<16x1xf32>
    %217 = vector.broadcast %216 : vector<16x1xf32> to vector<16x16xf32>
    %218 = arith.subf %214, %217 : vector<16x16xf32>
    %219 = math.exp %218 : vector<16x16xf32>
    %cst_92 = arith.constant dense<0.000000e+00> : vector<16xf32>
    %220 = vector.multi_reduction <add>, %219, %cst_92 [1] : vector<16x16xf32> to vector<16xf32>
    %221 = vector.shape_cast %220 : vector<16xf32> to vector<16x1xf32>
    %222 = tpu.reciprocal %221 {approx = true} : vector<16x1xf32> -> vector<16x1xf32>
    %223 = vector.broadcast %222 : vector<16x1xf32> to vector<16x16xf32>
    %224 = arith.mulf %219, %223 : vector<16x16xf32>
    %225 = arith.truncf %224 : vector<16x16xf32> to vector<16x16xbf16>
    %cst_93 = arith.constant dense<0.000000e+00> : vector<16x32xf32>
    %226 = tpu.matmul %225, %212, %cst_93 {dimension_numbers = #tpu.dot_dimension_numbers<[1], [0], [0], [1], [0, 0, 1, 1], [], []>} : vector<16x16xbf16>, vector<16x32xbf16>, vector<16x32xf32> -> vector<16x32xf32>
    %c0_94 = arith.constant 0 : index
    %c0_95 = arith.constant 0 : index
    %227 = vector.load %arg19[%c0_94, %c0_95] : memref<16x128xf32, #tpu.memory_space<vmem>>, vector<16x32xf32>
    tpu.vector_store %arg19[%c0_94, %c0_95], %226 {strides = array<i32>} : memref<16x128xf32, #tpu.memory_space<vmem>>, vector<16x32xf32>,
    %228 = vector.extract_strided_slice %206 {offsets = [0, 32], sizes = [16, 32], strides = [1, 1]} : vector<16x384xf32> to vector<16x32xf32>
    %229 = arith.truncf %228 : vector<16x32xf32> to vector<16x32xbf16>
    %230 = vector.extract_strided_slice %206 {offsets = [0, 160], sizes = [16, 32], strides = [1, 1]} : vector<16x384xf32> to vector<16x32xf32>
    %231 = arith.truncf %230 : vector<16x32xf32> to vector<16x32xbf16>
    %232 = vector.extract_strided_slice %206 {offsets = [0, 288], sizes = [16, 32], strides = [1, 1]} : vector<16x384xf32> to vector<16x32xf32>
    %233 = arith.truncf %232 : vector<16x32xf32> to vector<16x32xbf16>
    %cst_96 = arith.constant dense<0.000000e+00> : vector<16x16xf32>
    %234 = tpu.matmul %229, %231, %cst_96 {dimension_numbers = #tpu.dot_dimension_numbers<[1], [1], [0], [0], [0, 0, 1, 0], [], []>} : vector<16x32xbf16>, vector<16x32xbf16>, vector<16x16xf32> -> vector<16x16xf32>
    %235 = arith.addf %234, %4 : vector<16x16xf32>
    %cst_97 = arith.constant dense<0xFF800000> : vector<16xf32>
    %236 = vector.multi_reduction <maximumf>, %235, %cst_97 [1] : vector<16x16xf32> to vector<16xf32>
    %237 = vector.shape_cast %236 : vector<16xf32> to vector<16x1xf32>
    %238 = vector.broadcast %237 : vector<16x1xf32> to vector<16x16xf32>
    %239 = arith.subf %235, %238 : vector<16x16xf32>
    %240 = math.exp %239 : vector<16x16xf32>
    %cst_98 = arith.constant dense<0.000000e+00> : vector<16xf32>
    %241 = vector.multi_reduction <add>, %240, %cst_98 [1] : vector<16x16xf32> to vector<16xf32>
    %242 = vector.shape_cast %241 : vector<16xf32> to vector<16x1xf32>
    %243 = tpu.reciprocal %242 {approx = true} : vector<16x1xf32> -> vector<16x1xf32>
    %244 = vector.broadcast %243 : vector<16x1xf32> to vector<16x16xf32>
    %245 = arith.mulf %240, %244 : vector<16x16xf32>
    %246 = arith.truncf %245 : vector<16x16xf32> to vector<16x16xbf16>
    %cst_99 = arith.constant dense<0.000000e+00> : vector<16x32xf32>
    %247 = tpu.matmul %246, %233, %cst_99 {dimension_numbers = #tpu.dot_dimension_numbers<[1], [0], [0], [1], [0, 0, 1, 1], [], []>} : vector<16x16xbf16>, vector<16x32xbf16>, vector<16x32xf32> -> vector<16x32xf32>
    %c0_100 = arith.constant 0 : index
    %c32_101 = arith.constant 32 : index
    %248 = vector.load %arg19[%c0_100, %c32_101] : memref<16x128xf32, #tpu.memory_space<vmem>>, vector<16x32xf32>
    tpu.vector_store %arg19[%c0_100, %c32_101], %247 {strides = array<i32>} : memref<16x128xf32, #tpu.memory_space<vmem>>, vector<16x32xf32>,
    %249 = vector.extract_strided_slice %206 {offsets = [0, 64], sizes = [16, 32], strides = [1, 1]} : vector<16x384xf32> to vector<16x32xf32>
    %250 = arith.truncf %249 : vector<16x32xf32> to vector<16x32xbf16>
    %251 = vector.extract_strided_slice %206 {offsets = [0, 192], sizes = [16, 32], strides = [1, 1]} : vector<16x384xf32> to vector<16x32xf32>
    %252 = arith.truncf %251 : vector<16x32xf32> to vector<16x32xbf16>
    %253 = vector.extract_strided_slice %206 {offsets = [0, 320], sizes = [16, 32], strides = [1, 1]} : vector<16x384xf32> to vector<16x32xf32>
    %254 = arith.truncf %253 : vector<16x32xf32> to vector<16x32xbf16>
    %cst_102 = arith.constant dense<0.000000e+00> : vector<16x16xf32>
    %255 = tpu.matmul %250, %252, %cst_102 {dimension_numbers = #tpu.dot_dimension_numbers<[1], [1], [0], [0], [0, 0, 1, 0], [], []>} : vector<16x32xbf16>, vector<16x32xbf16>, vector<16x16xf32> -> vector<16x16xf32>
    %256 = arith.addf %255, %4 : vector<16x16xf32>
    %cst_103 = arith.constant dense<0xFF800000> : vector<16xf32>
    %257 = vector.multi_reduction <maximumf>, %256, %cst_103 [1] : vector<16x16xf32> to vector<16xf32>
    %258 = vector.shape_cast %257 : vector<16xf32> to vector<16x1xf32>
    %259 = vector.broadcast %258 : vector<16x1xf32> to vector<16x16xf32>
    %260 = arith.subf %256, %259 : vector<16x16xf32>
    %261 = math.exp %260 : vector<16x16xf32>
    %cst_104 = arith.constant dense<0.000000e+00> : vector<16xf32>
    %262 = vector.multi_reduction <add>, %261, %cst_104 [1] : vector<16x16xf32> to vector<16xf32>
    %263 = vector.shape_cast %262 : vector<16xf32> to vector<16x1xf32>
    %264 = tpu.reciprocal %263 {approx = true} : vector<16x1xf32> -> vector<16x1xf32>
    %265 = vector.broadcast %264 : vector<16x1xf32> to vector<16x16xf32>
    %266 = arith.mulf %261, %265 : vector<16x16xf32>
    %267 = arith.truncf %266 : vector<16x16xf32> to vector<16x16xbf16>
    %cst_105 = arith.constant dense<0.000000e+00> : vector<16x32xf32>
    %268 = tpu.matmul %267, %254, %cst_105 {dimension_numbers = #tpu.dot_dimension_numbers<[1], [0], [0], [1], [0, 0, 1, 1], [], []>} : vector<16x16xbf16>, vector<16x32xbf16>, vector<16x32xf32> -> vector<16x32xf32>
    %c0_106 = arith.constant 0 : index
    %c64_107 = arith.constant 64 : index
    %269 = vector.load %arg19[%c0_106, %c64_107] : memref<16x128xf32, #tpu.memory_space<vmem>>, vector<16x32xf32>
    tpu.vector_store %arg19[%c0_106, %c64_107], %268 {strides = array<i32>} : memref<16x128xf32, #tpu.memory_space<vmem>>, vector<16x32xf32>,
    %270 = vector.extract_strided_slice %206 {offsets = [0, 96], sizes = [16, 32], strides = [1, 1]} : vector<16x384xf32> to vector<16x32xf32>
    %271 = arith.truncf %270 : vector<16x32xf32> to vector<16x32xbf16>
    %272 = vector.extract_strided_slice %206 {offsets = [0, 224], sizes = [16, 32], strides = [1, 1]} : vector<16x384xf32> to vector<16x32xf32>
    %273 = arith.truncf %272 : vector<16x32xf32> to vector<16x32xbf16>
    %274 = vector.extract_strided_slice %206 {offsets = [0, 352], sizes = [16, 32], strides = [1, 1]} : vector<16x384xf32> to vector<16x32xf32>
    %275 = arith.truncf %274 : vector<16x32xf32> to vector<16x32xbf16>
    %cst_108 = arith.constant dense<0.000000e+00> : vector<16x16xf32>
    %276 = tpu.matmul %271, %273, %cst_108 {dimension_numbers = #tpu.dot_dimension_numbers<[1], [1], [0], [0], [0, 0, 1, 0], [], []>} : vector<16x32xbf16>, vector<16x32xbf16>, vector<16x16xf32> -> vector<16x16xf32>
    %277 = arith.addf %276, %4 : vector<16x16xf32>
    %cst_109 = arith.constant dense<0xFF800000> : vector<16xf32>
    %278 = vector.multi_reduction <maximumf>, %277, %cst_109 [1] : vector<16x16xf32> to vector<16xf32>
    %279 = vector.shape_cast %278 : vector<16xf32> to vector<16x1xf32>
    %280 = vector.broadcast %279 : vector<16x1xf32> to vector<16x16xf32>
    %281 = arith.subf %277, %280 : vector<16x16xf32>
    %282 = math.exp %281 : vector<16x16xf32>
    %cst_110 = arith.constant dense<0.000000e+00> : vector<16xf32>
    %283 = vector.multi_reduction <add>, %282, %cst_110 [1] : vector<16x16xf32> to vector<16xf32>
    %284 = vector.shape_cast %283 : vector<16xf32> to vector<16x1xf32>
    %285 = tpu.reciprocal %284 {approx = true} : vector<16x1xf32> -> vector<16x1xf32>
    %286 = vector.broadcast %285 : vector<16x1xf32> to vector<16x16xf32>
    %287 = arith.mulf %282, %286 : vector<16x16xf32>
    %288 = arith.truncf %287 : vector<16x16xf32> to vector<16x16xbf16>
    %cst_111 = arith.constant dense<0.000000e+00> : vector<16x32xf32>
    %289 = tpu.matmul %288, %275, %cst_111 {dimension_numbers = #tpu.dot_dimension_numbers<[1], [0], [0], [1], [0, 0, 1, 1], [], []>} : vector<16x16xbf16>, vector<16x32xbf16>, vector<16x32xf32> -> vector<16x32xf32>
    %c0_112 = arith.constant 0 : index
    %c96_113 = arith.constant 96 : index
    %290 = vector.load %arg19[%c0_112, %c96_113] : memref<16x128xf32, #tpu.memory_space<vmem>>, vector<16x32xf32>
    tpu.vector_store %arg19[%c0_112, %c96_113], %289 {strides = array<i32>} : memref<16x128xf32, #tpu.memory_space<vmem>>, vector<16x32xf32>,
    %c0_114 = arith.constant 0 : index
    %c0_115 = arith.constant 0 : index
    %291 = vector.load %arg19[%c0_114, %c0_115] : memref<16x128xf32, #tpu.memory_space<vmem>>, vector<16x128xf32>
    %292 = arith.truncf %291 : vector<16x128xf32> to vector<16x128xbf16>
    %c1_116 = arith.constant 1 : index
    %c0_117 = arith.constant 0 : index
    %c0_118 = arith.constant 0 : index
    %293 = vector.load %arg6[%c1_116, %c0_117, %c0_118] : memref<2x128x128xbf16, #tpu.memory_space<vmem>>, vector<1x128x128xbf16>
    %294 = vector.shape_cast %293 : vector<1x128x128xbf16> to vector<128x128xbf16>
    %cst_119 = arith.constant dense<0.000000e+00> : vector<16x128xf32>
    %295 = tpu.matmul %292, %294, %cst_119 {dimension_numbers = #tpu.dot_dimension_numbers<[1], [0], [0], [1], [0, 0, 1, 1], [], []>} : vector<16x128xbf16>, vector<128x128xbf16>, vector<16x128xf32> -> vector<16x128xf32>
    %c1_120 = arith.constant 1 : index
    %c0_121 = arith.constant 0 : index
    %c0_122 = arith.constant 0 : index
    %296 = vector.load %arg7[%c1_120, %c0_121, %c0_122] : memref<2x1x128xf32, #tpu.memory_space<vmem>>, vector<1x1x128xf32>
    %297 = vector.shape_cast %296 : vector<1x1x128xf32> to vector<1x128xf32>
    %298 = vector.broadcast %297 : vector<1x128xf32> to vector<16x128xf32>
    %299 = arith.addf %295, %298 : vector<16x128xf32>
    %300 = arith.addf %176, %299 : vector<16x128xf32>
    %c1_123 = arith.constant 1 : index
    %c0_124 = arith.constant 0 : index
    %c0_125 = arith.constant 0 : index
    %301 = vector.load %arg8[%c1_123, %c0_124, %c0_125] : memref<2x1x128xf32, #tpu.memory_space<vmem>>, vector<1x1x128xf32>
    %302 = vector.shape_cast %301 : vector<1x1x128xf32> to vector<1x128xf32>
    %c1_126 = arith.constant 1 : index
    %c0_127 = arith.constant 0 : index
    %c0_128 = arith.constant 0 : index
    %303 = vector.load %arg9[%c1_126, %c0_127, %c0_128] : memref<2x1x128xf32, #tpu.memory_space<vmem>>, vector<1x1x128xf32>
    %304 = vector.shape_cast %303 : vector<1x1x128xf32> to vector<1x128xf32>
    %cst_129 = arith.constant dense<0.000000e+00> : vector<16xf32>
    %305 = vector.multi_reduction <add>, %300, %cst_129 [1] : vector<16x128xf32> to vector<16xf32>
    %306 = vector.shape_cast %305 : vector<16xf32> to vector<16x1xf32>
    %cst_130 = arith.constant 1.280000e+02 : f32
    %307 = vector.broadcast %cst_130 : f32 to vector<16x1xf32>
    %308 = arith.divf %306, %307 : vector<16x1xf32>
    %309 = arith.mulf %300, %300 : vector<16x128xf32>
    %cst_131 = arith.constant dense<0.000000e+00> : vector<16xf32>
    %310 = vector.multi_reduction <add>, %309, %cst_131 [1] : vector<16x128xf32> to vector<16xf32>
    %311 = vector.shape_cast %310 : vector<16xf32> to vector<16x1xf32>
    %cst_132 = arith.constant 1.280000e+02 : f32
    %312 = vector.broadcast %cst_132 : f32 to vector<16x1xf32>
    %313 = arith.divf %311, %312 : vector<16x1xf32>
    %314 = arith.mulf %308, %308 : vector<16x1xf32>
    %315 = arith.subf %313, %314 : vector<16x1xf32>
    %cst_133 = arith.constant 9.99999974E-6 : f32
    %316 = vector.broadcast %cst_133 : f32 to vector<16x1xf32>
    %317 = arith.addf %315, %316 : vector<16x1xf32>
    %318 = math.rsqrt %317 : vector<16x1xf32>
    %319 = vector.broadcast %308 : vector<16x1xf32> to vector<16x128xf32>
    %320 = arith.subf %300, %319 : vector<16x128xf32>
    %321 = vector.broadcast %318 : vector<16x1xf32> to vector<16x128xf32>
    %322 = arith.mulf %320, %321 : vector<16x128xf32>
    %323 = vector.broadcast %302 : vector<1x128xf32> to vector<16x128xf32>
    %324 = arith.mulf %322, %323 : vector<16x128xf32>
    %325 = vector.broadcast %304 : vector<1x128xf32> to vector<16x128xf32>
    %326 = arith.addf %324, %325 : vector<16x128xf32>
    %327 = arith.truncf %326 : vector<16x128xf32> to vector<16x128xbf16>
    %c1_134 = arith.constant 1 : index
    %c0_135 = arith.constant 0 : index
    %c0_136 = arith.constant 0 : index
    %328 = vector.load %arg10[%c1_134, %c0_135, %c0_136] : memref<2x128x512xbf16, #tpu.memory_space<vmem>>, vector<1x128x512xbf16>
    %329 = vector.shape_cast %328 : vector<1x128x512xbf16> to vector<128x512xbf16>
    %cst_137 = arith.constant dense<0.000000e+00> : vector<16x512xf32>
    %330 = tpu.matmul %327, %329, %cst_137 {dimension_numbers = #tpu.dot_dimension_numbers<[1], [0], [0], [1], [0, 0, 1, 1], [], []>} : vector<16x128xbf16>, vector<128x512xbf16>, vector<16x512xf32> -> vector<16x512xf32>
    %c1_138 = arith.constant 1 : index
    %c0_139 = arith.constant 0 : index
    %c0_140 = arith.constant 0 : index
    %331 = vector.load %arg11[%c1_138, %c0_139, %c0_140] : memref<2x1x512xf32, #tpu.memory_space<vmem>>, vector<1x1x512xf32>
    %332 = vector.shape_cast %331 : vector<1x1x512xf32> to vector<1x512xf32>
    %333 = vector.broadcast %332 : vector<1x512xf32> to vector<16x512xf32>
    %334 = arith.addf %330, %333 : vector<16x512xf32>
    %cst_141 = arith.constant 0.000000e+00 : f32
    %335 = vector.broadcast %cst_141 : f32 to vector<16x512xf32>
    %336 = arith.cmpf oge, %334, %335 : vector<16x512xf32>
    %cst_142 = arith.constant 0.00999999977 : f32
    %337 = vector.broadcast %cst_142 : f32 to vector<16x512xf32>
    %338 = arith.mulf %337, %334 : vector<16x512xf32>
    %339 = arith.select %336, %334, %338 : vector<16x512xi1>, vector<16x512xf32>
    %340 = arith.truncf %339 : vector<16x512xf32> to vector<16x512xbf16>
    %c1_143 = arith.constant 1 : index
    %c0_144 = arith.constant 0 : index
    %c0_145 = arith.constant 0 : index
    %341 = vector.load %arg12[%c1_143, %c0_144, %c0_145] : memref<2x512x128xbf16, #tpu.memory_space<vmem>>, vector<1x512x128xbf16>
    %342 = vector.shape_cast %341 : vector<1x512x128xbf16> to vector<512x128xbf16>
    %cst_146 = arith.constant dense<0.000000e+00> : vector<16x128xf32>
    %343 = tpu.matmul %340, %342, %cst_146 {dimension_numbers = #tpu.dot_dimension_numbers<[1], [0], [0], [1], [0, 0, 1, 1], [], []>} : vector<16x512xbf16>, vector<512x128xbf16>, vector<16x128xf32> -> vector<16x128xf32>
    %c1_147 = arith.constant 1 : index
    %c0_148 = arith.constant 0 : index
    %c0_149 = arith.constant 0 : index
    %344 = vector.load %arg13[%c1_147, %c0_148, %c0_149] : memref<2x1x128xf32, #tpu.memory_space<vmem>>, vector<1x1x128xf32>
    %345 = vector.shape_cast %344 : vector<1x1x128xf32> to vector<1x128xf32>
    %346 = vector.broadcast %345 : vector<1x128xf32> to vector<16x128xf32>
    %347 = arith.addf %343, %346 : vector<16x128xf32>
    %348 = arith.addf %300, %347 : vector<16x128xf32>
    %c0_150 = arith.constant 0 : index
    %c0_151 = arith.constant 0 : index
    %349 = vector.load %arg14[%c0_150, %c0_151] : memref<1x128xf32, #tpu.memory_space<vmem>>, vector<1x128xf32>
    %c0_152 = arith.constant 0 : index
    %c0_153 = arith.constant 0 : index
    %350 = vector.load %arg15[%c0_152, %c0_153] : memref<1x128xf32, #tpu.memory_space<vmem>>, vector<1x128xf32>
    %cst_154 = arith.constant dense<0.000000e+00> : vector<16xf32>
    %351 = vector.multi_reduction <add>, %348, %cst_154 [1] : vector<16x128xf32> to vector<16xf32>
    %352 = vector.shape_cast %351 : vector<16xf32> to vector<16x1xf32>
    %cst_155 = arith.constant 1.280000e+02 : f32
    %353 = vector.broadcast %cst_155 : f32 to vector<16x1xf32>
    %354 = arith.divf %352, %353 : vector<16x1xf32>
    %355 = arith.mulf %348, %348 : vector<16x128xf32>
    %cst_156 = arith.constant dense<0.000000e+00> : vector<16xf32>
    %356 = vector.multi_reduction <add>, %355, %cst_156 [1] : vector<16x128xf32> to vector<16xf32>
    %357 = vector.shape_cast %356 : vector<16xf32> to vector<16x1xf32>
    %cst_157 = arith.constant 1.280000e+02 : f32
    %358 = vector.broadcast %cst_157 : f32 to vector<16x1xf32>
    %359 = arith.divf %357, %358 : vector<16x1xf32>
    %360 = arith.mulf %354, %354 : vector<16x1xf32>
    %361 = arith.subf %359, %360 : vector<16x1xf32>
    %cst_158 = arith.constant 9.99999974E-6 : f32
    %362 = vector.broadcast %cst_158 : f32 to vector<16x1xf32>
    %363 = arith.addf %361, %362 : vector<16x1xf32>
    %364 = math.rsqrt %363 : vector<16x1xf32>
    %365 = vector.broadcast %354 : vector<16x1xf32> to vector<16x128xf32>
    %366 = arith.subf %348, %365 : vector<16x128xf32>
    %367 = vector.broadcast %364 : vector<16x1xf32> to vector<16x128xf32>
    %368 = arith.mulf %366, %367 : vector<16x128xf32>
    %369 = vector.broadcast %349 : vector<1x128xf32> to vector<16x128xf32>
    %370 = arith.mulf %368, %369 : vector<16x128xf32>
    %371 = vector.broadcast %350 : vector<1x128xf32> to vector<16x128xf32>
    %372 = arith.addf %370, %371 : vector<16x128xf32>
    %373 = arith.truncf %372 : vector<16x128xf32> to vector<16x128xbf16>
    %c0_159 = arith.constant 0 : index
    %c0_160 = arith.constant 0 : index
    %374 = vector.load %arg16[%c0_159, %c0_160] : memref<128x256xbf16, #tpu.memory_space<vmem>>, vector<128x256xbf16>
    %cst_161 = arith.constant dense<0.000000e+00> : vector<16x256xf32>
    %375 = tpu.matmul %373, %374, %cst_161 {dimension_numbers = #tpu.dot_dimension_numbers<[1], [0], [0], [1], [0, 0, 1, 1], [], []>} : vector<16x128xbf16>, vector<128x256xbf16>, vector<16x256xf32> -> vector<16x256xf32>
    %c0_162 = arith.constant 0 : index
    %c0_163 = arith.constant 0 : index
    %376 = vector.load %arg17[%c0_162, %c0_163] : memref<1x256xf32, #tpu.memory_space<vmem>>, vector<1x256xf32>
    %377 = vector.broadcast %376 : vector<1x256xf32> to vector<16x256xf32>
    %378 = arith.addf %375, %377 : vector<16x256xf32>
    %c0_164 = arith.constant 0 : index
    %c0_165 = arith.constant 0 : index
    %379 = vector.load %arg18[%c0_164, %c0_165] : memref<16x256xf32, #tpu.memory_space<vmem>>, vector<16x256xf32>
    tpu.vector_store %arg18[%c0_164, %c0_165], %378 {strides = array<i32>} : memref<16x256xf32, #tpu.memory_space<vmem>>, vector<16x256xf32>,
    return
  }
}

</mosaic_0001>

<bundles_post_ra>
// kernel: tpu_custom_call.1
= control target key start
LH: loop header
LB: loop body
LE: loop exit
PB: predicated region body
PF: predicated region fallthrough
CT: control target
= control target key end

     0   :  { %s5936_s0 = inlined_call_operand.hbm [shape: f32[16,128], index: 0, kind: input, shape index: {}]   ;;  %s5937_s1 = inlined_call_operand.hbm [shape: f32[8,128], index: 1, kind: input, shape index: {}]   ;;  %s5938_s2 = inlined_call_operand.hbm [shape: f32[16,16], index: 2, kind: input, shape index: {}]   ;;  %s5939_s3 = inlined_call_operand.hbm [shape: f32[2,1,128], index: 3, kind: input, shape index: {}]   ;;  %s5940_s4 = inlined_call_operand.hbm [shape: f32[2,1,128], index: 4, kind: input, shape index: {}]   ;;  %s5941_s5 = inlined_call_operand.hbm [shape: bf16[2,128,384], index: 5, kind: input, shape index: {}]   ;;  %s5942_s6 = inlined_call_operand.hbm [shape: bf16[2,128,128], index: 6, kind: input, shape index: {}]   ;;  %s5943_s7 = inlined_call_operand.hbm [shape: f32[2,1,128], index: 7, kind: input, shape index: {}]   ;;  %s5944_s8 = inlined_call_operand.hbm [shape: f32[2,1,128], index: 8, kind: input, shape index: {}]   ;;  %s5945_s9 = inlined_call_operand.hbm [shape: f32[2,1,128], index: 9, kind: input, shape index: {}]   ;;  %s5946_s10 = inlined_call_operand.hbm [shape: bf16[2,128,512], index: 10, kind: input, shape index: {}]   ;;  %s5947_s11 = inlined_call_operand.hbm [shape: f32[2,1,512], index: 11, kind: input, shape index: {}]   ;;  %s5948_s12 = inlined_call_operand.hbm [shape: bf16[2,512,128], index: 12, kind: input, shape index: {}]   ;;  %s5949_s13 = inlined_call_operand.hbm [shape: f32[2,1,128], index: 13, kind: input, shape index: {}]   ;;  %s5950_s14 = inlined_call_operand.hbm [shape: f32[1,128], index: 14, kind: input, shape index: {}]   ;;  %s5951_s15 = inlined_call_operand.hbm [shape: f32[1,128], index: 15, kind: input, shape index: {}]   ;;  %s5952_s16 = inlined_call_operand.hbm [shape: bf16[128,256], index: 16, kind: input, shape index: {}]   ;;  %s5953_s17 = inlined_call_operand.hbm [shape: f32[1,256], index: 17, kind: input, shape index: {}]   ;;  %s5954_s18 = inlined_call_operand.hbm [shape: f32[16,256], index: 18, kind: output, shape index: {}]  }
   0x1   :  { %5962 = sst [smem:[#allocation44_spill]] %s5936_s0 }
   0x2   :  { %5963 = sst [smem:[#allocation45_spill]] %s5937_s1 }
   0x3   :  { %5964 = sst [smem:[#allocation46_spill]] %s5938_s2 }
   0x4   :  { %23 = vsyncpa [#allocation4], 0 }
   0x5   :  { %24 = vsyncpa [#allocation7], 0 }
   0x6   :  { %25 = vsyncpa [#allocation10], 0 }
   0x7   :  { %26 = vsyncpa [#allocation13], 0 }
   0x8   :  { %27 = vsyncpa [#allocation16], 0 }
   0x9   :  { %28 = vsyncpa [#allocation19], 0 }
   0xa   :  { %29 = vsyncpa [#allocation22], 0 }
   0xb   :  { %30 = vsyncpa [#allocation25], 0 }
   0xc   :  { %31 = vsyncpa [#allocation28], 0 }
   0xd   :  { %32 = vsyncpa [#allocation31], 0 }
   0xe   :  { %33 = vsyncpa [#allocation5], 0  ;;  %s5222_s27 = smov [#allocation6]   ;;  %s5223_s29 = smov [#allocation9]  }
   0xf   :  { %s52_s28 = sshll.u32 %s5222_s27, 4  ;;  %s73_s30 = sshll.u32 %s5223_s29, 4  ;;  %s53_s28 = int_to_ptr.vmem [resolvable:$true] %s52_s28  ;;  %s5350_s30 = int_to_ptr.vmem [resolvable:$true] %s73_s30 }
  0x10   :  { %s5965_s1 = sld [smem:[#allocation45_spill]] }
  0x16   :  { %s4782_s20 = scalar_lea.hbm %s5965_s1, 128 }
  0x17   :  { %p4783_p0 = scmp.ne.s32.totalorder %s5965_s1, %s4782_s20  ;;  %p4786_p1 = scmp.lt.u32.totalorder %s4782_s20, %s5965_s1 }
  0x19   :  { %p4788_p2 = pnand %p4786_p1, %p4783_p0 }
  0x1b   :  { %4791 = shalt.err (!%p4788_p2)
}
  0x1c   :  { %s4792_s24 = scalar_lea.vmem %s53_s28, 128  ;;  %p4797_p4 = scmp.lt.s32.totalorder %s53_s28, %s53_s28 }
  0x1d   :  { %p4793_p3 = scmp.ne.s32.totalorder %s53_s28, %s4792_s24  ;;  %p4798_p5 = scmp.lt.s32.totalorder %s4792_s24, %s4792_s24 }
  0x1f   :  { %p4799_p6 = por %p4798_p5, %p4797_p4 }
  0x21   :  { %p4800_p7 = pnand %p4799_p6, %p4793_p3 }
  0x23   :  { %4803 = shalt.err (!%p4800_p7)
}
  0x24   :  { %55 = dma.hbm_to_vmem [thread:$0]  %s5965_s1, 128, %s53_s28, [#allocation7]  }
  0x25   :  { %s4804_s0 = scalar_lea.hbm %s5939_s3, 32 }
  0x26   :  { %p4805_p8 = scmp.ne.s32.totalorder %s5939_s3, %s4804_s0  ;;  %p4808_p9 = scmp.lt.u32.totalorder %s4804_s0, %s5939_s3 }
  0x28   :  { %p4810_p10 = pnand %p4808_p9, %p4805_p8 }
  0x2a   :  { %4813 = shalt.err (!%p4810_p10)
}
  0x2b   :  { %s4814_s2 = scalar_lea.vmem %s5350_s30, 32  ;;  %p4819_p12 = scmp.lt.s32.totalorder %s5350_s30, %s5350_s30 }
  0x2c   :  { %p4815_p11 = scmp.ne.s32.totalorder %s5350_s30, %s4814_s2  ;;  %p4820_p13 = scmp.lt.s32.totalorder %s4814_s2, %s4814_s2 }
  0x2e   :  { %p4821_p0 = por %p4820_p13, %p4819_p12 }
  0x30   :  { %p4822_p1 = pnand %p4821_p0, %p4815_p11 }
  0x32   :  { %4825 = shalt.err (!%p4822_p1)
}
  0x33   :  { %s5958_s28 = smov 16   ;;  %s5960_s1 = smov 1  }
  0x34   :  { %79 = dma.hbm_to_vmem [thread:$0]  %s5939_s3, 32, %s5350_s30, [#allocation10], %s5958_s28, %s5958_s28, %s5960_s1  }
  0x35   :  { %s5226_s25 = smov [#allocation12]   ;;  %s4826_s0 = scalar_lea.hbm %s5941_s5, 6144 }
  0x36   :  { %s97_s26 = sshll.u32 %s5226_s25, 4  ;;  %p4827_p2 = scmp.ne.s32.totalorder %s5941_s5, %s4826_s0  ;;  %s98_s26 = int_to_ptr.vmem [resolvable:$true] %s97_s26 }
  0x37   :  { %p4830_p3 = scmp.lt.u32.totalorder %s4826_s0, %s5941_s5 }
  0x39   :  { %p4832_p4 = pnand %p4830_p3, %p4827_p2 }
  0x3b   :  { %4835 = shalt.err (!%p4832_p4)
}
  0x3c   :  { %s4836_s2 = scalar_lea.vmem %s98_s26, 6144  ;;  %p4841_p6 = scmp.lt.s32.totalorder %s98_s26, %s98_s26 }
  0x3d   :  { %p4837_p5 = scmp.ne.s32.totalorder %s98_s26, %s4836_s2  ;;  %p4842_p7 = scmp.lt.s32.totalorder %s4836_s2, %s4836_s2 }
  0x3f   :  { %p4843_p8 = por %p4842_p7, %p4841_p6 }
  0x41   :  { %p4844_p9 = pnand %p4843_p8, %p4837_p5 }
  0x43   :  { %4847 = shalt.err (!%p4844_p9)
}
  0x44   :  { %s5227_s3 = smov 192   ;;  %s5228_s30 = smov 12  }
  0x45   :  { %103 = dma.hbm_to_vmem [thread:$0]  %s5941_s5, 6144, %s98_s26, [#allocation13], %s5227_s3, %s5227_s3, %s5228_s30  }
  0x46   :  { %s5229_s25 = smov [#allocation15]   ;;  %s5230_s29 = smov [#allocation18]  }
  0x47   :  { %s121_s27 = sshll.u32 %s5229_s25, 4  ;;  %s145_s0 = sshll.u32 %s5230_s29, 4  ;;  %s122_s27 = int_to_ptr.vmem [resolvable:$true] %s121_s27  ;;  %s146_s0 = int_to_ptr.vmem [resolvable:$true] %s145_s0 }
  0x48   :  { %s4848_s20 = scalar_lea.hbm %s5943_s7, 32 }
  0x49   :  { %p4849_p10 = scmp.ne.s32.totalorder %s5943_s7, %s4848_s20  ;;  %p4852_p11 = scmp.lt.u32.totalorder %s4848_s20, %s5943_s7 }
  0x4b   :  { %p4854_p12 = pnand %p4852_p11, %p4849_p10 }
  0x4d   :  { %4857 = shalt.err (!%p4854_p12)
}
  0x4e   :  { %s4858_s5 = scalar_lea.vmem %s122_s27, 32  ;;  %p4863_p0 = scmp.lt.s32.totalorder %s122_s27, %s122_s27 }
  0x4f   :  { %p4859_p13 = scmp.ne.s32.totalorder %s122_s27, %s4858_s5  ;;  %p4864_p1 = scmp.lt.s32.totalorder %s4858_s5, %s4858_s5 }
  0x51   :  { %p4865_p2 = por %p4864_p1, %p4863_p0 }
  0x53   :  { %p4866_p3 = pnand %p4865_p2, %p4859_p13 }
  0x55   :  { %4869 = shalt.err (!%p4866_p3)
}
  0x56   :  { %s5966_s26 = smov 1   ;;  %s5967_s3 = smov 16  }
  0x57   :  { %127 = dma.hbm_to_vmem [thread:$0]  %s5943_s7, 32, %s122_s27, [#allocation16], %s5967_s3, %s5967_s3, %s5966_s26  }
  0x58   :  { %s4870_s1 = scalar_lea.hbm %s5945_s9, 32 }
  0x59   :  { %p4871_p4 = scmp.ne.s32.totalorder %s5945_s9, %s4870_s1  ;;  %p4874_p5 = scmp.lt.u32.totalorder %s4870_s1, %s5945_s9 }
  0x5b   :  { %p4876_p6 = pnand %p4874_p5, %p4871_p4 }
  0x5d   :  { %4879 = shalt.err (!%p4876_p6)
}
  0x5e   :  { %s4880_s20 = scalar_lea.vmem %s146_s0, 32  ;;  %p4885_p8 = scmp.lt.s32.totalorder %s146_s0, %s146_s0 }
  0x5f   :  { %p4881_p7 = scmp.ne.s32.totalorder %s146_s0, %s4880_s20  ;;  %p4886_p9 = scmp.lt.s32.totalorder %s4880_s20, %s4880_s20 }
  0x61   :  { %p4887_p10 = por %p4886_p9, %p4885_p8 }
  0x63   :  { %p4888_p11 = pnand %p4887_p10, %p4881_p7 }
  0x65   :  { %4891 = shalt.err (!%p4888_p11)
}
  0x66   :  { %151 = dma.hbm_to_vmem [thread:$0]  %s5945_s9, 32, %s146_s0, [#allocation19], %s5967_s3, %s5967_s3, %s5966_s26  }
  0x67   :  { %s5231_s22 = smov [#allocation21]   ;;  %s5232_s5 = smov [#allocation24]  }
  0x68   :  { %s169_s2 = sshll.u32 %s5231_s22, 4  ;;  %s193_s30 = sshll.u32 %s5232_s5, 4  ;;  %s170_s2 = int_to_ptr.vmem [resolvable:$true] %s169_s2  ;;  %s194_s30 = int_to_ptr.vmem [resolvable:$true] %s193_s30 }
  0x69   :  { %s4892_s28 = scalar_lea.hbm %s5947_s11, 128 }
  0x6a   :  { %p4893_p12 = scmp.ne.s32.totalorder %s5947_s11, %s4892_s28  ;;  %p4896_p13 = scmp.lt.u32.totalorder %s4892_s28, %s5947_s11 }
  0x6c   :  { %p4898_p0 = pnand %p4896_p13, %p4893_p12 }
  0x6e   :  { %4901 = shalt.err (!%p4898_p0)
}
  0x6f   :  { %s4902_s9 = scalar_lea.vmem %s170_s2, 128  ;;  %p4907_p2 = scmp.lt.s32.totalorder %s170_s2, %s170_s2 }
  0x70   :  { %p4903_p1 = scmp.ne.s32.totalorder %s170_s2, %s4902_s9  ;;  %p4908_p3 = scmp.lt.s32.totalorder %s4902_s9, %s4902_s9 }
  0x72   :  { %p4909_p4 = por %p4908_p3, %p4907_p2 }
  0x74   :  { %p4910_p5 = pnand %p4909_p4, %p4903_p1 }
  0x76   :  { %4913 = shalt.err (!%p4910_p5)
}
  0x77   :  { %s5233_s0 = smov 64   ;;  %s5234_s21 = smov 4  }
  0x78   :  { %175 = dma.hbm_to_vmem [thread:$0]  %s5947_s11, 128, %s170_s2, [#allocation22], %s5233_s0, %s5233_s0, %s5234_s21  }
  0x79   :  { %s4914_s5 = scalar_lea.hbm %s5949_s13, 32 }
  0x7a   :  { %p4915_p6 = scmp.ne.s32.totalorder %s5949_s13, %s4914_s5  ;;  %p4918_p7 = scmp.lt.u32.totalorder %s4914_s5, %s5949_s13 }
  0x7c   :  { %p4920_p8 = pnand %p4918_p7, %p4915_p6 }
  0x7e   :  { %4923 = shalt.err (!%p4920_p8)
}
  0x7f   :  { %s4924_s25 = scalar_lea.vmem %s194_s30, 32  ;;  %p4929_p10 = scmp.lt.s32.totalorder %s194_s30, %s194_s30 }
  0x80   :  { %p4925_p9 = scmp.ne.s32.totalorder %s194_s30, %s4924_s25  ;;  %p4930_p11 = scmp.lt.s32.totalorder %s4924_s25, %s4924_s25 }
  0x82   :  { %p4931_p12 = por %p4930_p11, %p4929_p10 }
  0x84   :  { %p4932_p13 = pnand %p4931_p12, %p4925_p9 }
  0x86   :  { %4935 = shalt.err (!%p4932_p13)
}
  0x87   :  { %199 = dma.hbm_to_vmem [thread:$0]  %s5949_s13, 32, %s194_s30, [#allocation25], %s5967_s3, %s5967_s3, %s5966_s26  }
  0x88   :  { %s5235_s29 = smov [#allocation27]   ;;  %s5236_s9 = smov [#allocation3]  }
  0x89   :  { %s216_s19 = sshll.u32 %s5235_s29, 4  ;;  %s39_s20 = sshll.u32 %s5236_s9, 4  ;;  %s217_s19 = int_to_ptr.vmem [resolvable:$true] %s216_s19  ;;  %s40_s20 = int_to_ptr.vmem [resolvable:$true] %s39_s20 }
  0x8a   :  { %s4936_s22 = scalar_lea.hbm %s5951_s15, 16 }
  0x8b   :  { %p4937_p0 = scmp.ne.s32.totalorder %s5951_s15, %s4936_s22  ;;  %p4940_p1 = scmp.lt.u32.totalorder %s4936_s22, %s5951_s15 }
  0x8d   :  { %p4942_p2 = pnand %p4940_p1, %p4937_p0 }
  0x8f   :  { %4945 = shalt.err (!%p4942_p2)
}
  0x90   :  { %s4946_s13 = scalar_lea.vmem %s217_s19, 16  ;;  %s4950_s30 = scalar_lea.vmem %s217_s19, 32 }
  0x91   :  { %p4947_p3 = scmp.ne.s32.totalorder %s217_s19, %s4946_s13  ;;  %p4951_p4 = scmp.lt.s32.totalorder %s217_s19, %s217_s19 }
  0x92   :  { %p4952_p5 = scmp.lt.s32.totalorder %s4950_s30, %s4946_s13 }
  0x94   :  { %p4953_p6 = por %p4952_p5, %p4951_p4 }
  0x96   :  { %p4954_p7 = pnand %p4953_p6, %p4947_p3 }
  0x98   :  { %4957 = shalt.err (!%p4954_p7)
}
  0x99   :  { %219 = dma.hbm_to_vmem [thread:$0]  %s5951_s15, 16, %s217_s19, [#allocation28]  }
  0x9a   :  { %s5968_s29 = sld [smem:[#allocation44_spill]] }
  0xa0   :  { %s4958_s9 = scalar_lea.hbm %s5968_s29, 256 }
  0xa1   :  { %p4959_p8 = scmp.ne.s32.totalorder %s5968_s29, %s4958_s9  ;;  %p4962_p9 = scmp.lt.u32.totalorder %s4958_s9, %s5968_s29 }
  0xa3   :  { %p4964_p10 = pnand %p4962_p9, %p4959_p8 }
  0xa5   :  { %4967 = shalt.err (!%p4964_p10)
}
  0xa6   :  { %s4968_s23 = scalar_lea.vmem %s40_s20, 256  ;;  %p4973_p12 = scmp.lt.s32.totalorder %s40_s20, %s40_s20 }
  0xa7   :  { %p4969_p11 = scmp.ne.s32.totalorder %s40_s20, %s4968_s23  ;;  %p4974_p13 = scmp.lt.s32.totalorder %s4968_s23, %s4968_s23 }
  0xa9   :  { %p4975_p0 = por %p4974_p13, %p4973_p12 }
  0xab   :  { %p4976_p1 = pnand %p4975_p0, %p4969_p11 }
  0xad   :  { %4979 = shalt.err (!%p4976_p1)
}
  0xae   :  { %s5237_s15 = smov 128   ;;  %s5238_s19 = smov 8  }
  0xaf   :  { %45 = dma.hbm_to_vmem [thread:$0]  %s5968_s29, 256, %s40_s20, [#allocation4], %s5237_s15, %s5237_s15, %s5238_s19  }
  0xb0   :  { %s5239_s13 = smov [#allocation8]   ;;  %s5240_s1 = smov [#allocation11]  }
  0xb1   :  { %s61_s30 = sshll.u32 %s5239_s13, 4  ;;  %s85_s25 = sshll.u32 %s5240_s1, 4  ;;  %s62_s30 = int_to_ptr.vmem [resolvable:$true] %s61_s30  ;;  %s86_s25 = int_to_ptr.vmem [resolvable:$true] %s85_s25 }
  0xb2   :  { %s5969_s9 = sld [smem:[#allocation46_spill]] }
  0xb8   :  { %s4980_s7 = scalar_lea.hbm %s5969_s9, 256 }
  0xb9   :  { %p4981_p2 = scmp.ne.s32.totalorder %s5969_s9, %s4980_s7  ;;  %p4984_p3 = scmp.lt.u32.totalorder %s4980_s7, %s5969_s9 }
  0xbb   :  { %p4986_p4 = pnand %p4984_p3, %p4981_p2 }
  0xbd   :  { %4989 = shalt.err (!%p4986_p4)
}
  0xbe   :  { %s4990_s20 = scalar_lea.vmem %s62_s30, 256  ;;  %p4995_p6 = scmp.lt.s32.totalorder %s62_s30, %s62_s30 }
  0xbf   :  { %p4991_p5 = scmp.ne.s32.totalorder %s62_s30, %s4990_s20  ;;  %p4996_p7 = scmp.lt.s32.totalorder %s4990_s20, %s4990_s20 }
  0xc1   :  { %p4997_p8 = por %p4996_p7, %p4995_p6 }
  0xc3   :  { %p4998_p9 = pnand %p4997_p8, %p4991_p5 }
  0xc5   :  { %5001 = shalt.err (!%p4998_p9)
}
  0xc6   :  { %67 = dma.hbm_to_vmem [thread:$0]  %s5969_s9, 256, %s62_s30, [#allocation7], %s5237_s15, %s5237_s15, %s5238_s19  }
  0xc7   :  { %s5002_s1 = scalar_lea.hbm %s5940_s4, 32 }
  0xc8   :  { %p5003_p10 = scmp.ne.s32.totalorder %s5940_s4, %s5002_s1  ;;  %p5006_p11 = scmp.lt.u32.totalorder %s5002_s1, %s5940_s4 }
  0xca   :  { %p5008_p12 = pnand %p5006_p11, %p5003_p10 }
  0xcc   :  { %5011 = shalt.err (!%p5008_p12)
}
  0xcd   :  { %s5012_s22 = scalar_lea.vmem %s86_s25, 32  ;;  %p5017_p0 = scmp.lt.s32.totalorder %s86_s25, %s86_s25 }
  0xce   :  { %p5013_p13 = scmp.ne.s32.totalorder %s86_s25, %s5012_s22  ;;  %p5018_p1 = scmp.lt.s32.totalorder %s5012_s22, %s5012_s22 }
  0xd0   :  { %p5019_p2 = por %p5018_p1, %p5017_p0 }
  0xd2   :  { %p5020_p3 = pnand %p5019_p2, %p5013_p13 }
  0xd4   :  { %5023 = shalt.err (!%p5020_p3)
}
  0xd5   :  { %91 = dma.hbm_to_vmem [thread:$0]  %s5940_s4, 32, %s86_s25, [#allocation10], %s5967_s3, %s5967_s3, %s5966_s26  }
  0xd6   :  { %s5241_s5 = smov [#allocation14]   ;;  %s5242_s20 = smov [#allocation17]  }
  0xd7   :  { %s109_s23 = sshll.u32 %s5241_s5, 4  ;;  %s133_s29 = sshll.u32 %s5242_s20, 4  ;;  %s110_s23 = int_to_ptr.vmem [resolvable:$true] %s109_s23  ;;  %s134_s29 = int_to_ptr.vmem [resolvable:$true] %s133_s29 }
  0xd8   :  { %s5024_s13 = scalar_lea.hbm %s5942_s6, 2048 }
  0xd9   :  { %p5025_p4 = scmp.ne.s32.totalorder %s5942_s6, %s5024_s13  ;;  %p5028_p5 = scmp.lt.u32.totalorder %s5024_s13, %s5942_s6 }
  0xdb   :  { %p5030_p6 = pnand %p5028_p5, %p5025_p4 }
  0xdd   :  { %5033 = shalt.err (!%p5030_p6)
}
  0xde   :  { %s5034_s4 = scalar_lea.vmem %s110_s23, 2048  ;;  %p5039_p8 = scmp.lt.s32.totalorder %s110_s23, %s110_s23 }
  0xdf   :  { %p5035_p7 = scmp.ne.s32.totalorder %s110_s23, %s5034_s4  ;;  %p5040_p9 = scmp.lt.s32.totalorder %s5034_s4, %s5034_s4 }
  0xe1   :  { %p5041_p10 = por %p5040_p9, %p5039_p8 }
  0xe3   :  { %p5042_p11 = pnand %p5041_p10, %p5035_p7 }
  0xe5   :  { %5045 = shalt.err (!%p5042_p11)
}
  0xe6   :  { %115 = dma.hbm_to_vmem [thread:$0]  %s5942_s6, 2048, %s110_s23, [#allocation13], %s5233_s0, %s5233_s0, %s5234_s21  }
  0xe7   :  { %s5046_s9 = scalar_lea.hbm %s5944_s8, 32 }
  0xe8   :  { %p5047_p12 = scmp.ne.s32.totalorder %s5944_s8, %s5046_s9  ;;  %p5050_p13 = scmp.lt.u32.totalorder %s5046_s9, %s5944_s8 }
  0xea   :  { %p5052_p0 = pnand %p5050_p13, %p5047_p12 }
  0xec   :  { %5055 = shalt.err (!%p5052_p0)
}
  0xed   :  { %s5056_s13 = scalar_lea.vmem %s134_s29, 32  ;;  %p5061_p2 = scmp.lt.s32.totalorder %s134_s29, %s134_s29 }
  0xee   :  { %p5057_p1 = scmp.ne.s32.totalorder %s134_s29, %s5056_s13  ;;  %p5062_p3 = scmp.lt.s32.totalorder %s5056_s13, %s5056_s13 }
  0xf0   :  { %p5063_p4 = por %p5062_p3, %p5061_p2 }
  0xf2   :  { %p5064_p5 = pnand %p5063_p4, %p5057_p1 }
  0xf4   :  { %5067 = shalt.err (!%p5064_p5)
}
  0xf5   :  { %139 = dma.hbm_to_vmem [thread:$0]  %s5944_s8, 32, %s134_s29, [#allocation16], %s5967_s3, %s5967_s3, %s5966_s26  }
  0xf6   :  { %s5243_s1 = smov [#allocation20]   ;;  %s5068_s4 = scalar_lea.hbm %s5946_s10, 8192 }
  0xf7   :  { %s157_s11 = sshll.u32 %s5243_s1, 4  ;;  %p5069_p6 = scmp.ne.s32.totalorder %s5946_s10, %s5068_s4  ;;  %s158_s11 = int_to_ptr.vmem [resolvable:$true] %s157_s11 }
  0xf8   :  { %p5072_p7 = scmp.lt.u32.totalorder %s5068_s4, %s5946_s10 }
  0xfa   :  { %p5074_p8 = pnand %p5072_p7, %p5069_p6 }
  0xfc   :  { %5077 = shalt.err (!%p5074_p8)
}
  0xfd   :  { %s5078_s9 = scalar_lea.vmem %s158_s11, 8192  ;;  %p5083_p10 = scmp.lt.s32.totalorder %s158_s11, %s158_s11 }
  0xfe   :  { %p5079_p9 = scmp.ne.s32.totalorder %s158_s11, %s5078_s9  ;;  %p5084_p11 = scmp.lt.s32.totalorder %s5078_s9, %s5078_s9 }
 0x100   :  { %p5085_p12 = por %p5084_p11, %p5083_p10 }
 0x102   :  { %p5086_p13 = pnand %p5085_p12, %p5079_p9 }
 0x104   :  { %5089 = shalt.err (!%p5086_p13)
}
 0x105   :  { %s5244_s8 = smov 256   ;;  %s5245_s5 = smov [#allocation23]  }
 0x106   :  { %163 = dma.hbm_to_vmem [thread:$0]  %s5946_s10, 8192, %s158_s11, [#allocation19], %s5244_s8, %s5244_s8, %s5967_s3  }
 0x107   :  { %s181_s20 = sshll.u32 %s5245_s5, 4  ;;  %s5246_s24 = smov [#allocation26]   ;;  %s182_s20 = int_to_ptr.vmem [resolvable:$true] %s181_s20 }
 0x108   :  { %s206_s28 = sshll.u32 %s5246_s24, 4  ;;  %s5090_s23 = scalar_lea.hbm %s5948_s12, 8192  ;;  %s207_s28 = int_to_ptr.vmem [resolvable:$true] %s206_s28 }
 0x109   :  { %p5091_p0 = scmp.ne.s32.totalorder %s5948_s12, %s5090_s23  ;;  %p5094_p1 = scmp.lt.u32.totalorder %s5090_s23, %s5948_s12 }
 0x10b   :  { %p5096_p2 = pnand %p5094_p1, %p5091_p0 }
 0x10d   :  { %5099 = shalt.err (!%p5096_p2)
}
 0x10e   :  { %s5100_s10 = scalar_lea.vmem %s182_s20, 8192  ;;  %p5105_p4 = scmp.lt.s32.totalorder %s182_s20, %s182_s20 }
 0x10f   :  { %p5101_p3 = scmp.ne.s32.totalorder %s182_s20, %s5100_s10  ;;  %p5106_p5 = scmp.lt.s32.totalorder %s5100_s10, %s5100_s10 }
 0x111   :  { %p5107_p6 = por %p5106_p5, %p5105_p4 }
 0x113   :  { %p5108_p7 = pnand %p5107_p6, %p5101_p3 }
 0x115   :  { %5111 = shalt.err (!%p5108_p7)
}
 0x116   :  { %187 = dma.hbm_to_vmem [thread:$0]  %s5948_s12, 8192, %s182_s20, [#allocation22], %s5233_s0, %s5233_s0, %s5234_s21  }
 0x117   :  { %s5112_s30 = scalar_lea.hbm %s5950_s14, 16 }
 0x118   :  { %p5113_p8 = scmp.ne.s32.totalorder %s5950_s14, %s5112_s30  ;;  %p5116_p9 = scmp.lt.u32.totalorder %s5112_s30, %s5950_s14 }
 0x11a   :  { %p5118_p10 = pnand %p5116_p9, %p5113_p8 }
 0x11c   :  { %5121 = shalt.err (!%p5118_p10)
}
 0x11d   :  { %s5122_s24 = scalar_lea.vmem %s207_s28, 16  ;;  %s5126_s13 = scalar_lea.vmem %s207_s28, 32 }
 0x11e   :  { %p5123_p11 = scmp.ne.s32.totalorder %s207_s28, %s5122_s24  ;;  %p5127_p12 = scmp.lt.s32.totalorder %s207_s28, %s207_s28 }
 0x11f   :  { %p5128_p13 = scmp.lt.s32.totalorder %s5126_s13, %s5122_s24 }
 0x121   :  { %p5129_p0 = por %p5128_p13, %p5127_p12 }
 0x123   :  { %p5130_p1 = pnand %p5129_p0, %p5123_p11 }
 0x125   :  { %5133 = shalt.err (!%p5130_p1)
}
 0x126   :  { %209 = dma.hbm_to_vmem [thread:$0]  %s5950_s14, 16, %s207_s28, [#allocation25]  }
 0x127   :  { %s5247_s20 = smov [#allocation29]   ;;  %s5248_s23 = smov [#allocation30]  }
 0x128   :  { %s225_s6 = sshll.u32 %s5247_s20, 4  ;;  %s238_s1 = sshll.u32 %s5248_s23, 4  ;;  %s226_s6 = int_to_ptr.vmem [resolvable:$true] %s225_s6  ;;  %s239_s1 = int_to_ptr.vmem [resolvable:$true] %s238_s1 }
 0x129   :  { %s5134_s4 = scalar_lea.hbm %s5952_s16, 2048 }
 0x12a   :  { %p5135_p2 = scmp.ne.s32.totalorder %s5952_s16, %s5134_s4  ;;  %p5138_p3 = scmp.lt.u32.totalorder %s5134_s4, %s5952_s16 }
 0x12c   :  { %p5140_p4 = pnand %p5138_p3, %p5135_p2 }
 0x12e   :  { %5143 = shalt.err (!%p5140_p4)
}
 0x12f   :  { %s5144_s14 = scalar_lea.vmem %s226_s6, 2048  ;;  %p5149_p6 = scmp.lt.s32.totalorder %s226_s6, %s226_s6 }
 0x130   :  { %p5145_p5 = scmp.ne.s32.totalorder %s226_s6, %s5144_s14  ;;  %p5150_p7 = scmp.lt.s32.totalorder %s5144_s14, %s5144_s14 }
 0x132   :  { %p5151_p8 = por %p5150_p7, %p5149_p6 }
 0x134   :  { %p5152_p9 = pnand %p5151_p8, %p5145_p5 }
 0x136   :  { %5155 = shalt.err (!%p5152_p9)
}
 0x137   :  { %231 = dma.hbm_to_vmem [thread:$0]  %s5952_s16, 2048, %s226_s6, [#allocation28], %s5237_s15, %s5237_s15, %s5238_s19  }
 0x138   :  { %s5156_s26 = scalar_lea.hbm %s5953_s17, 32 }
 0x139   :  { %p5157_p10 = scmp.ne.s32.totalorder %s5953_s17, %s5156_s26  ;;  %p5160_p11 = scmp.lt.u32.totalorder %s5156_s26, %s5953_s17 }
 0x13b   :  { %p5162_p12 = pnand %p5160_p11, %p5157_p10 }
 0x13d   :  { %5165 = shalt.err (!%p5162_p12)
}
 0x13e   :  { %s5166_s12 = scalar_lea.vmem %s239_s1, 32  ;;  %p5171_p0 = scmp.lt.s32.totalorder %s239_s1, %s239_s1 }
 0x13f   :  { %p5167_p13 = scmp.ne.s32.totalorder %s239_s1, %s5166_s12  ;;  %p5172_p1 = scmp.lt.s32.totalorder %s5166_s12, %s5166_s12 }
 0x141   :  { %p5173_p2 = por %p5172_p1, %p5171_p0 }
 0x143   :  { %p5174_p3 = pnand %p5173_p2, %p5167_p13 }
 0x145   :  { %5177 = shalt.err (!%p5174_p3)
}
 0x146   :  { %241 = dma.hbm_to_vmem [thread:$0]  %s5953_s17, 32, %s239_s1, [#allocation31]  }
 0x147   :  { %5200 = dma.done.wait [#allocation4], 256  }
 0x148   :  { %5201 = vsyncadd [#allocation4], 4294967040 }
 0x149   :  { %5202 = dma.done.wait [#allocation7], 384  }
 0x14a   :  { %5203 = vsyncadd [#allocation7], 4294966912 }
 0x14b   :  { %5204 = dma.done.wait [#allocation10], 64  }
 0x14c   :  { %5205 = vsyncadd [#allocation10], 4294967232 }
 0x14d   :  { %5206 = dma.done.wait [#allocation13], 8192  }
 0x14e   :  { %5207 = vsyncadd [#allocation13], 4294959104 }
 0x14f   :  { %5208 = dma.done.wait [#allocation16], 64  }
 0x150   :  { %5209 = vsyncadd [#allocation16], 4294967232 }
 0x151   :  { %5210 = dma.done.wait [#allocation19], 8224  }
 0x152   :  { %5211 = vsyncadd [#allocation19], 4294959072 }
 0x153   :  { %5212 = dma.done.wait [#allocation22], 8320  }
 0x154   :  { %5213 = vsyncadd [#allocation22], 4294958976 }
 0x155   :  { %5214 = dma.done.wait [#allocation25], 48  }
 0x156   :  { %5215 = vsyncadd [#allocation25], 4294967248 }
 0x157   :  { %5216 = dma.done.wait [#allocation28], 2064  }
 0x158   :  { %5217 = vsyncadd [#allocation28], 4294965232 }
 0x159   :  { %5218 = dma.done.wait [#allocation31], 32  }
 0x15a   :  { %5219 = vsyncadd [#allocation31], 4294967264  ;;  %v5249_v0 = vmov 0.0   ;;  %v297_v1 = vld [vmem:[#allocation3] sm:$0xff]  ;;  %v299_v2 = vld [vmem:[#allocation6] sm:$0xff]  ;;  %v5250_v29 = vmov 0  }
 0x15b   :  { %4223 = vmatprep.subr.bf16.mxu1 %v5249_v0  ;;  %v298_v3 = vld [vmem:[#allocation3 + $0x8] sm:$0xff]  ;;  %v5613_v4 = vadd.f32 %v299_v2, %v297_v1  ;;  %v4432_v6 = vld [vmem:[#allocation12 + $0x4] ss:$12 sps:$4 sm:$0xff]   ;;  %v4435_v10 = vld [vmem:[#allocation12 + $0x8] ss:$12 sps:$4 sm:$0xff]   ;;  %542 = vmatprep.mubr.bf16.mxu0 %v5250_v29  ;;  %vm5251_vm0 = vmmov 0  }
 0x15c   :  { %v5615_v5 = vadd.f32 %v299_v2, %v298_v3  ;;  %510 = vmatprep.subr.bf16.mxu0 %v4432_v6  ;;  %v4434_v9 = vld [vmem:[#allocation12] ss:$12 sps:$4 sm:$0xff]   ;;  %4224 = vmatpush3.bf16.msra.mxu1 %v4435_v10  ;;  %v4436_v11 = vld [vmem:[#allocation12 + $0x1c] ss:$12 sps:$4 sm:$0xff]   ;;  %v4438_v12 = vld [vmem:[#allocation12 + $0x18] ss:$12 sps:$4 sm:$0xff]  }
 0x15d   :  { %306 = vadd.xlane.f32.xlu0 %v5613_v4  ;;  %v313_v7 = vmul.f32 %v5613_v4, %v5613_v4  ;;  %511 = vmatpush1.bf16.msra.mxu0 %v4434_v9  ;;  %v4439_v13 = vld [vmem:[#allocation12 + $0x20] ss:$12 sps:$4 sm:$0xff]   ;;  %v4442_v15 = vld [vmem:[#allocation12 + $0x30] ss:$12 sps:$4 sm:$0xff]   ;;  %v4443_v16 = vld [vmem:[#allocation12 + $0x38] ss:$12 sps:$4 sm:$0xff]  }
 0x15e   :  { %v314_v8 = vmul.f32 %v5615_v5, %v5615_v5  ;;  %4225 = vmatprep.subr.bf16.mxu1 %v5249_v0  ;;  %512 = vmatprep.subr.bf16.mxu0 %v4436_v11  ;;  %v4440_v14 = vld [vmem:[#allocation12 + $0x34] ss:$12 sps:$4 sm:$0xff]   ;;  %v4444_v17 = vld [vmem:[#allocation12 + $0x4c] ss:$12 sps:$4 sm:$0xff]   ;;  %v4447_v19 = vld [vmem:[#allocation12 + $0x50] ss:$12 sps:$4 sm:$0xff]  }
 0x15f   :  { %315 = vadd.xlane.f32.xlu1 %v313_v7  ;;  %v4446_v18 = vld [vmem:[#allocation12 + $0x48] ss:$12 sps:$4 sm:$0xff]   ;;  %v4448_v20 = vld [vmem:[#allocation12 + $0x64] ss:$12 sps:$4 sm:$0xff]   ;;  %v4450_v21 = vld [vmem:[#allocation12 + $0x60] ss:$12 sps:$4 sm:$0xff]   ;;  %4239 = vmatprep.mubr.msk.bf16.mxu1 %vm5251_vm0, %v5249_v0 }
 0x160   :  { %4226 = vmatpush3.bf16.msra.mxu1 %v4439_v13  ;;  %v4451_v22 = vld [vmem:[#allocation12 + $0x68] ss:$12 sps:$4 sm:$0xff]   ;;  %v4454_v24 = vld [vmem:[#allocation12 + $0x78] ss:$12 sps:$4 sm:$0xff]   ;;  %v4455_v25 = vld [vmem:[#allocation12 + $0x80] ss:$12 sps:$4 sm:$0xff]  }
 0x161   :  { %308 = vadd.xlane.f32.xlu0 %v5615_v5  ;;  %513 = vmatpush1.bf16.msra.mxu0 %v4438_v12  ;;  %v4452_v23 = vld [vmem:[#allocation12 + $0x7c] ss:$12 sps:$4 sm:$0xff]   ;;  %v4456_v26 = vld [vmem:[#allocation12 + $0x94] ss:$12 sps:$4 sm:$0xff]   ;;  %v4459_v28 = vld [vmem:[#allocation12 + $0x98] ss:$12 sps:$4 sm:$0xff]  }
 0x162   :  { %4227 = vmatprep.subr.bf16.mxu1 %v5249_v0  ;;  %514 = vmatprep.subr.bf16.mxu0 %v4440_v14  ;;  %v4458_v27 = vld [vmem:[#allocation12 + $0x90] ss:$12 sps:$4 sm:$0xff]   ;;  %v4460_v30 = vld [vmem:[#allocation12 + $0xac] ss:$12 sps:$4 sm:$0xff]   ;;  %v4462_v31 = vld [vmem:[#allocation12 + $0xa8] ss:$12 sps:$4 sm:$0xff]  }
 0x163   :  { %317 = vadd.xlane.f32.xlu1 %v314_v8  ;;  %v4463_v32 = vld [vmem:[#allocation12 + $0xb0] ss:$12 sps:$4 sm:$0xff]   ;;  %vm597_vm1 = vcmask 261120   ;;  %s5252_s17 = smov 96   ;;  %s5253_s19 = smov 32   ;;  %vm645_vm2 = vcmask 130048  }
 0x164   :  { %4228 = vmatpush3.bf16.msra.mxu1 %v4443_v16  ;;  %v3829_v50 = vld [vmem:[#allocation9] ss:$0 sm:$0xff]  ;;  %v3830_v55 = vld [vmem:[#allocation11] ss:$0 sm:$0xff]  ;;  %vm847_vm3 = vcmask 523520   ;;  %vm979_vm4 = vcmask 785920  }
 0x165   :  { %515 = vmatpush1.bf16.msra.mxu0 %v4442_v15  ;;  %4229 = vmatprep.subr.bf16.mxu1 %v5249_v0  ;;  %vm1111_vm5 = vcmask 1048320  }
 0x166   :  { %516 = vmatprep.subr.bf16.mxu0 %v4444_v17 }
 0x168   :  { %4230 = vmatpush3.bf16.msra.mxu1 %v4447_v19 }
 0x169   :  { %517 = vmatpush1.bf16.msra.mxu0 %v4446_v18  ;;  %4231 = vmatprep.subr.bf16.mxu1 %v5249_v0 }
 0x16a   :  { %518 = vmatprep.subr.bf16.mxu0 %v4448_v20  ;;  %v302_v20 = vld [vmem:[#allocation8] sm:$0xff] }
 0x16c   :  { %4232 = vmatpush3.bf16.msra.mxu1 %v4451_v22  ;;  %v303_v22 = vld [vmem:[#allocation8 + $0x8] sm:$0xff] }
 0x16d   :  { %519 = vmatpush1.bf16.msra.mxu0 %v4450_v21  ;;  %4233 = vmatprep.subr.bf16.mxu1 %v5249_v0 }
 0x16e   :  { %520 = vmatprep.subr.bf16.mxu0 %v4452_v23 }
 0x170   :  { %4234 = vmatpush3.bf16.msra.mxu1 %v4455_v25 }
 0x171   :  { %521 = vmatpush1.bf16.msra.mxu0 %v4454_v24  ;;  %4235 = vmatprep.subr.bf16.mxu1 %v5249_v0 }
 0x172   :  { %522 = vmatprep.subr.bf16.mxu0 %v4456_v26 }
 0x174   :  { %4236 = vmatpush3.bf16.msra.mxu1 %v4459_v28 }
 0x175   :  { %523 = vmatpush1.bf16.msra.mxu0 %v4458_v27  ;;  %4237 = vmatprep.subr.bf16.mxu1 %v5249_v0 }
 0x176   :  { %524 = vmatprep.subr.bf16.mxu0 %v4460_v30 }
 0x178   :  { %4238 = vmatpush3.bf16.msra.mxu1 %v4463_v32 }
 0x179   :  { %525 = vmatpush1.bf16.msra.mxu0 %v4462_v31  ;;  %4249 = vmatprep.subr.bf16.mxu1 %v5249_v0 }
 0x17a   :  { %4243 = vmatprep.subr.bf16.mxu0 %v5249_v0 }
 0x1ea   :  { %v307_v33 = vpop.xlane.xlu0 %306 }
 0x1eb   :  { %v311_v34 = vmul.f32 0.0078125, %v307_v33 }
 0x1ec   :  { %v316_v35 = vpop.xlane.xlu1 %315 }
 0x1ed   :  { %v321_v36 = vmul.f32 %v311_v34, %v311_v34  ;;  %v319_v37 = vmul.f32 0.0078125, %v316_v35  ;;  %v329_v47 = vsub.f32 %v5613_v4, %v311_v34 }
 0x1ee   :  { %v309_v38 = vpop.xlane.xlu0 %308 }
 0x1ef   :  { %v323_v39 = vsub.f32 %v319_v37, %v321_v36  ;;  %v312_v40 = vmul.f32 0.0078125, %v309_v38 }
 0x1f0   :  { %v318_v41 = vpop.xlane.xlu1 %317 }
 0x1f1   :  { %v325_v42 = vadd.f32 1e-05, %v323_v39  ;;  %v322_v43 = vmul.f32 %v312_v40, %v312_v40  ;;  %v320_v44 = vmul.f32 0.0078125, %v318_v41  ;;  %v330_v51 = vsub.f32 %v5615_v5, %v312_v40 }
 0x1f3   :  { %4696 = vrsqrt.f32 %v325_v42  ;;  %v324_v45 = vsub.f32 %v320_v44, %v322_v43 }
 0x1f5   :  { %v326_v46 = vadd.f32 1e-05, %v324_v45 }
 0x1f7   :  { %4698 = vrsqrt.f32 %v326_v46 }
 0x1fd   :  { %v4697_v48 = vpop.eup %4696 }
 0x1fe   :  { %v331_v49 = vmul.f32 %v4697_v48, %v329_v47 }
 0x200   :  { %v339_v54 = vmul.f32 %v3829_v50, %v331_v49 }
 0x201   :  { %v4699_v52 = vpop.eup %4698 }
 0x202   :  { %v332_v53 = vmul.f32 %v4699_v52, %v330_v51  ;;  %v347_v57 = vadd.f32 %v3830_v55, %v339_v54 }
 0x204   :  { %v340_v56 = vmul.f32 %v3829_v50, %v332_v53 }
 0x206   :  { %v348_v58 = vadd.f32 %v3830_v55, %v340_v56 }
 0x208   :  { %v349_v59 = vpack.c.bf16 %v348_v58, %v347_v57 }
 0x20a   :  { %543 = vmatmul.mubr.bf16.vlgmr.msra.gmra.mrb[0].mxu0 %v349_v59  ;;  %4240 = vmatmul.mubr.bf16.vlgmr.msra.gmra.mrb[0].mxu1 %v349_v59 }
 0x20b   :  { %4245 = vmatprep.mubr.msk.bf16.mxu0 %vm5251_vm0, %v5249_v0  ;;  %4251 = vmatprep.mubr.msk.bf16.mxu1 %vm5251_vm0, %v5249_v0 }
 0x2dd   :  { %v544_v60 = vpop.f32.mrb[0].mxu0  ;;  %v587_v61 = vpop.f32.mrb[0].mxu1 }
 0x2de   :  { %v546_v62 = vpop.f32.mrb[1].mxu0  ;;  %v4241_v63 = vpop.f32.mrb[1].mxu1 }
 0x2df   :  { %v548_v1 = vpop.f32.mrb[2].mxu0  ;;  %v590_v2 = vpop.f32.mrb[2].mxu1 }
 0x2e0   :  { %v594_v3 = vpack.c.bf16 %v548_v1, %v544_v60  ;;  %v5641_v6 = vpack.c.bf16 %v590_v2, %v587_v61  ;;  %v550_v7 = vpop.f32.mrb[3].mxu0  ;;  %v4242_v8 = vpop.f32.mrb[3].mxu1 }
 0x2e1   :  { %v595_v9 = vpack.c.bf16 %v550_v7, %v546_v62 }
 0x2e2   :  { %4250 = vmatpush3.bf16.msra.mxu1 %v5641_v6  ;;  %716 = vrot.lane.b32.xlu1 %v594_v3, %s5252_s17 }
 0x2e3   :  { %719 = vrot.lane.b32.xlu0 %v595_v9, %s5252_s17  ;;  %v602_v10 = vsel %vm597_vm1, %v595_v9, 0  ;;  %4261 = vmatprep.subr.bf16.mxu1 %v5249_v0 }
 0x2e4   :  { %4244 = vmatpush3.bf16.xpose.msra.mxu0 %v602_v10 }
 0x2e5   :  { %4255 = vmatprep.subr.bf16.mxu0 %v5249_v0 }
 0x2e6   :  { %852 = vrot.lane.b32.xlu1 %v595_v9, %s5233_s0 }
 0x2e7   :  { %984 = vrot.lane.b32.xlu0 %v595_v9, %s5253_s19 }
 0x2ea   :  { %850 = vrot.lane.b32.xlu1 %v594_v3, %s5233_s0 }
 0x2eb   :  { %4246 = vmatmul.mubr.msk.bf16.vlgmr.msra.gmra.mrb[4].mxu0 %vm597_vm1, %v594_v3 }
 0x2ec   :  { %4257 = vmatprep.mubr.msk.bf16.mxu0 %vm5251_vm0, %v5249_v0 }
 0x2ee   :  { %982 = vrot.lane.b32.xlu1 %v594_v3, %s5253_s19 }
 0x354   :  { %v717_v11 = vpop.permute.xlu1 %716 }
 0x355   :  { %v720_v12 = vpop.permute.xlu0 %719 }
 0x356   :  { %v725_v13 = vsel %vm597_vm1, %v720_v12, 0 }
 0x357   :  { %4256 = vmatpush3.bf16.xpose.msra.mxu0 %v725_v13 }
 0x358   :  { %4267 = vmatprep.subr.bf16.mxu0 %v5249_v0  ;;  %v853_v14 = vpop.permute.xlu1 %852 }
 0x359   :  { %v858_v15 = vsel %vm597_vm1, %v853_v14, 0  ;;  %v985_v16 = vpop.permute.xlu0 %984 }
 0x35a   :  { %v990_v18 = vsel %vm597_vm1, %v985_v16, 0 }
 0x35c   :  { %v851_v17 = vpop.permute.xlu1 %850 }
 0x35e   :  { %4258 = vmatmul.mubr.msk.bf16.vlgmr.msra.gmra.mrb[8].mxu0 %vm597_vm1, %v717_v11 }
 0x35f   :  { %4268 = vmatpush3.bf16.xpose.msra.mxu0 %v858_v15  ;;  %4269 = vmatprep.mubr.msk.bf16.mxu0 %vm5251_vm0, %v5249_v0 }
 0x360   :  { %4279 = vmatprep.subr.bf16.mxu0 %v5249_v0  ;;  %v983_v19 = vpop.permute.xlu1 %982 }
 0x366   :  { %4270 = vmatmul.mubr.msk.bf16.vlgmr.msra.gmra.mrb[12].mxu0 %vm597_vm1, %v851_v17 }
 0x367   :  { %4280 = vmatpush3.bf16.xpose.msra.mxu0 %v990_v18  ;;  %4281 = vmatprep.mubr.msk.bf16.mxu0 %vm5251_vm0, %v5249_v0 }
 0x368   :  { %4291 = vmatprep.subr.bf16.mxu0 %v5249_v0 }
 0x36e   :  { %4282 = vmatmul.mubr.msk.bf16.vlgmr.msra.gmra.mrb[16].mxu0 %vm597_vm1, %v983_v19 }
 0x36f   :  { %4307 = vmatprep.mubr.msk.bf16.mxu0 %vm5251_vm0, %v5249_v0 }
 0x3be   :  { %v638_v21 = vpop.f32.mrb[4].mxu0 }
 0x3bf   :  { %v639_v23 = vadd.f32 %v638_v21, %v302_v20  ;;  %v4247_v24 = vpop.f32.mrb[5].mxu0 }
 0x3c0   :  { %v641_v25 = vpop.f32.mrb[6].mxu0 }
 0x3c1   :  { %v642_v26 = vadd.f32 %v641_v25, %v303_v22  ;;  %v4248_v27 = vpop.f32.mrb[7].mxu0  ;;  %v646_v28 = vsel %vm645_vm2, %v639_v23, -inf }
 0x3c2   :  { %647 = vmax.xlane.f32.xlu0 %v646_v28 }
 0x3c3   :  { %v649_v30 = vsel %vm645_vm2, %v642_v26, -inf }
 0x3c4   :  { %650 = vmax.xlane.f32.xlu1 %v649_v30 }
 0x431   :  { %v761_v31 = vpop.f32.mrb[8].mxu0 }
 0x432   :  { %v762_v32 = vadd.f32 %v761_v31, %v302_v20  ;;  %v4259_v33 = vpop.f32.mrb[9].mxu0 }
 0x433   :  { %v764_v34 = vpop.f32.mrb[10].mxu0 }
 0x434   :  { %v765_v35 = vadd.f32 %v764_v34, %v303_v22  ;;  %v4260_v36 = vpop.f32.mrb[11].mxu0  ;;  %v768_v37 = vsel %vm645_vm2, %v762_v32, -inf }
 0x435   :  { %769 = vmax.xlane.f32.xlu0 %v768_v37 }
 0x436   :  { %v771_v38 = vsel %vm645_vm2, %v765_v35, -inf }
 0x439   :  { %772 = vmax.xlane.f32.xlu0 %v771_v38  ;;  %v894_v39 = vpop.f32.mrb[12].mxu0 }
 0x43a   :  { %v895_v40 = vadd.f32 %v894_v39, %v302_v20  ;;  %v4271_v41 = vpop.f32.mrb[13].mxu0 }
 0x43b   :  { %v897_v42 = vpop.f32.mrb[14].mxu0 }
 0x43c   :  { %v898_v43 = vadd.f32 %v897_v42, %v303_v22  ;;  %v4272_v44 = vpop.f32.mrb[15].mxu0  ;;  %v901_v45 = vsel %vm645_vm2, %v895_v40, -inf }
 0x43d   :  { %902 = vmax.xlane.f32.xlu0 %v901_v45 }
 0x43e   :  { %v904_v46 = vsel %vm645_vm2, %v898_v43, -inf }
 0x43f   :  { %905 = vmax.xlane.f32.xlu1 %v904_v46 }
 0x441   :  { %v1026_v47 = vpop.f32.mrb[16].mxu0 }
 0x442   :  { %v1027_v48 = vadd.f32 %v1026_v47, %v302_v20  ;;  %v4283_v49 = vpop.f32.mrb[17].mxu0 }
 0x443   :  { %v1029_v50 = vpop.f32.mrb[18].mxu0 }
 0x444   :  { %v5677_v51 = vadd.f32 %v1029_v50, %v303_v22  ;;  %v4284_v52 = vpop.f32.mrb[19].mxu0  ;;  %v1033_v53 = vsel %vm645_vm2, %v1027_v48, -inf }
 0x445   :  { %1034 = vmax.xlane.f32.xlu0 %v1033_v53 }
 0x446   :  { %v1036_v54 = vsel %vm645_vm2, %v5677_v51, -inf }
 0x447   :  { %1037 = vmax.xlane.f32.xlu1 %v1036_v54 }
 0x44f   :  { %v648_v55 = vpop.xlane.xlu0 %647 }
 0x450   :  { %v652_v56 = vsub.f32 %v639_v23, %v648_v55 }
 0x451   :  { %v651_v57 = vpop.xlane.xlu1 %650 }
 0x452   :  { %v654_v58 = vmul.f32 1.442695, %v652_v56  ;;  %v653_v59 = vsub.f32 %v642_v26, %v651_v57 }
 0x454   :  { %4700 = vpow2.f32 %v654_v58  ;;  %v656_v60 = vmul.f32 1.442695, %v653_v59 }
 0x456   :  { %4702 = vpow2.f32 %v656_v60 }
 0x45e   :  { %v4701_v61 = vpop.eup %4700 }
 0x45f   :  { %v658_v62 = vsel %vm645_vm2, %v4701_v61, 0.0 }
 0x460   :  { %v4703_v63 = vpop.eup %4702  ;;  %659 = vadd.xlane.f32.xlu0 %v658_v62 }
 0x461   :  { %v661_v1 = vsel %vm645_vm2, %v4703_v63, 0.0 }
 0x462   :  { %662 = vadd.xlane.f32.xlu1 %v661_v1 }
 0x4c2   :  { %v770_v2 = vpop.xlane.xlu0 %769 }
 0x4c3   :  { %v774_v3 = vsub.f32 %v762_v32, %v770_v2 }
 0x4c5   :  { %v776_v7 = vmul.f32 1.442695, %v774_v3 }
 0x4c6   :  { %v773_v8 = vpop.xlane.xlu0 %772 }
 0x4c7   :  { %4704 = vpow2.f32 %v776_v7  ;;  %v775_v9 = vsub.f32 %v765_v35, %v773_v8 }
 0x4c9   :  { %v778_v10 = vmul.f32 1.442695, %v775_v9 }
 0x4ca   :  { %v903_v11 = vpop.xlane.xlu0 %902 }
 0x4cb   :  { %4706 = vpow2.f32 %v778_v10  ;;  %v907_v12 = vsub.f32 %v895_v40, %v903_v11  ;;  %v4464_v10 = vld [vmem:[#allocation14] sm:$0xff]  }
 0x4cc   :  { %v906_v13 = vpop.xlane.xlu1 %905  ;;  %4292 = vmatpush3.bf16.msra.mxu0 %v4464_v10  ;;  %v4502_v10 = vld [vmem:[#allocation20 + $0xa0] ss:$16 sps:$4 sm:$0xff]  }
 0x4cd   :  { %v909_v14 = vmul.f32 1.442695, %v907_v12  ;;  %v908_v15 = vsub.f32 %v898_v43, %v906_v13  ;;  %v4465_v12 = vld [vmem:[#allocation14 + $0x8] sm:$0xff]   ;;  %4293 = vmatprep.subr.bf16.mxu0 %v5249_v0 }
 0x4cf   :  { %4708 = vpow2.f32 %v909_v14  ;;  %v911_v16 = vmul.f32 1.442695, %v908_v15 }
 0x4d0   :  { %4294 = vmatpush3.bf16.msra.mxu0 %v4465_v12  ;;  %v4510_v12 = vld [vmem:[#allocation20 + $0xc4] ss:$16 sps:$4 sm:$0xff]  }
 0x4d1   :  { %v4705_v17 = vpop.eup %4704  ;;  %4710 = vpow2.f32 %v911_v16  ;;  %v4466_v16 = vld [vmem:[#allocation14 + $0x10] sm:$0xff]   ;;  %4295 = vmatprep.subr.bf16.mxu0 %v5249_v0 }
 0x4d2   :  { %v1035_v18 = vpop.xlane.xlu0 %1034  ;;  %v780_v19 = vsel %vm645_vm2, %v4705_v17, 0.0 }
 0x4d3   :  { %v1039_v20 = vsub.f32 %v1027_v48, %v1035_v18  ;;  %781 = vadd.xlane.f32.xlu0 %v780_v19  ;;  %v4467_v18 = vld [vmem:[#allocation14 + $0x18] sm:$0xff]  }
 0x4d4   :  { %v1038_v31 = vpop.xlane.xlu1 %1037  ;;  %4296 = vmatpush3.bf16.msra.mxu0 %v4466_v16  ;;  %v4516_v16 = vld [vmem:[#allocation20 + $0xe4] ss:$16 sps:$4 sm:$0xff]  }
 0x4d5   :  { %v4707_v21 = vpop.eup %4706  ;;  %v1041_v22 = vmul.f32 1.442695, %v1039_v20  ;;  %v1040_v38 = vsub.f32 %v5677_v51, %v1038_v31  ;;  %4297 = vmatprep.subr.bf16.mxu0 %v5249_v0 }
 0x4d6   :  { %v783_v23 = vsel %vm645_vm2, %v4707_v21, 0.0 }
 0x4d7   :  { %4712 = vpow2.f32 %v1041_v22  ;;  %784 = vadd.xlane.f32.xlu1 %v783_v23  ;;  %v1043_v40 = vmul.f32 1.442695, %v1040_v38  ;;  %v4468_v22 = vld [vmem:[#allocation14 + $0x20] sm:$0xff]   ;;  %v4469_v23 = vld [vmem:[#allocation14 + $0x28] sm:$0xff]  }
 0x4d8   :  { %4298 = vmatpush3.bf16.msra.mxu0 %v4467_v18  ;;  %v4514_v18 = vld [vmem:[#allocation20 + $0xe0] ss:$16 sps:$4 sm:$0xff]  }
 0x4d9   :  { %v4709_v24 = vpop.eup %4708  ;;  %4299 = vmatprep.subr.bf16.mxu0 %v5249_v0 }
 0x4da   :  { %v913_v25 = vsel %vm645_vm2, %v4709_v24, 0.0 }
 0x4db   :  { %v4711_v26 = vpop.eup %4710  ;;  %914 = vadd.xlane.f32.xlu0 %v913_v25  ;;  %v4471_v25 = vld [vmem:[#allocation14 + $0x38] sm:$0xff]  }
 0x4dc   :  { %v916_v27 = vsel %vm645_vm2, %v4711_v26, 0.0  ;;  %4300 = vmatpush3.bf16.msra.mxu0 %v4468_v22 }
 0x4dd   :  { %917 = vadd.xlane.f32.xlu1 %v916_v27  ;;  %4301 = vmatprep.subr.bf16.mxu0 %v5249_v0 }
 0x4e0   :  { %4302 = vmatpush3.bf16.msra.mxu0 %v4469_v23 }
 0x4e1   :  { %v4713_v28 = vpop.eup %4712  ;;  %4303 = vmatprep.subr.bf16.mxu0 %v5249_v0 }
 0x4e2   :  { %v1045_v30 = vsel %vm645_vm2, %v4713_v28, 0.0 }
 0x4e3   :  { %1046 = vadd.xlane.f32.xlu0 %v1045_v30 }
 0x4ed   :  { %v660_v32 = vpop.xlane.xlu0 %659 }
 0x4ee   :  { %4714 = vrcp.f32 %v660_v32  ;;  %924 = vrot.lane.b32.xlu1 %v5641_v6, %s5233_s0 }
 0x4ef   :  { %v663_v33 = vpop.xlane.xlu1 %662 }
 0x4f0   :  { %4716 = vrcp.f32 %v663_v33 }
 0x4f1   :  { %4718 = vpow2.f32 %v1043_v40  ;;  %v3863_v40 = vld [vmem:[#allocation15] ss:$0 sm:$0xff] }
 0x4f8   :  { %v4715_v34 = vpop.eup %4714 }
 0x4f9   :  { %792 = vrot.lane.b32.xlu0 %v5641_v6, %s5252_s17  ;;  %v666_v36 = vmul.f32 %v4715_v34, %v4701_v61 }
 0x4fa   :  { %v4717_v35 = vpop.eup %4716 }
 0x4fb   :  { %v667_v37 = vmul.f32 %v4717_v35, %v4703_v63  ;;  %v4719_v41 = vpop.eup %4718 }
 0x4fc   :  { %v1048_v42 = vsel %vm645_vm2, %v4719_v41, 0.0 }
 0x4fd   :  { %v668_v39 = vpack.c.bf16 %v667_v37, %v666_v36 }
 0x4ff   :  { %4252 = vmatmul.mubr.msk.bf16.vlgmr.msra.gmra.mrb[4].mxu1 %vm645_vm2, %v668_v39 }
 0x500   :  { %4263 = vmatprep.mubr.msk.bf16.mxu1 %vm5251_vm0, %v5249_v0 }
 0x512   :  { %1049 = vadd.xlane.f32.xlu1 %v1048_v42 }
 0x523   :  { %1056 = vrot.lane.b32.xlu1 %v5641_v6, %s5253_s19 }
 0x560   :  { %v782_v43 = vpop.xlane.xlu0 %781 }
 0x564   :  { %v785_v44 = vpop.xlane.xlu1 %784 }
 0x565   :  { %4720 = vrcp.f32 %v785_v44 }
 0x566   :  { %4722 = vrcp.f32 %v782_v43 }
 0x568   :  { %v915_v46 = vpop.xlane.xlu0 %914 }
 0x56a   :  { %v918_v45 = vpop.xlane.xlu1 %917 }
 0x56b   :  { %4724 = vrcp.f32 %v918_v45 }
 0x56c   :  { %4726 = vrcp.f32 %v915_v46 }
 0x56e   :  { %v925_v6 = vpop.permute.xlu1 %924 }
 0x56f   :  { %v4721_v47 = vpop.eup %4720 }
 0x570   :  { %v1047_v48 = vpop.xlane.xlu0 %1046  ;;  %v4723_v49 = vpop.eup %4722  ;;  %v789_v50 = vmul.f32 %v4721_v47, %v4707_v21 }
 0x571   :  { %v788_v51 = vmul.f32 %v4723_v49, %v4705_v17  ;;  %4728 = vrcp.f32 %v1047_v48 }
 0x573   :  { %v790_v53 = vpack.c.bf16 %v789_v50, %v788_v51  ;;  %v4474_v51 = vld [vmem:[#allocation20 + $0x4] ss:$16 sps:$4 sm:$0xff]  }
 0x574   :  { %v793_v52 = vpop.permute.xlu0 %792 }
 0x575   :  { %4262 = vmatpush3.bf16.msra.mxu1 %v793_v52  ;;  %v4725_v54 = vpop.eup %4724  ;;  %v4472_v52 = vld [vmem:[#allocation20] ss:$16 sps:$4 sm:$0xff]  }
 0x576   :  { %4273 = vmatprep.subr.bf16.mxu1 %v5249_v0  ;;  %v4727_v55 = vpop.eup %4726  ;;  %v922_v56 = vmul.f32 %v4725_v54, %v4711_v26  ;;  %v4483_v54 = vld [vmem:[#allocation20 + $0x2c] ss:$16 sps:$4 sm:$0xff]  }
 0x577   :  { %v921_v57 = vmul.f32 %v4727_v55, %v4709_v24  ;;  %v4470_v24 = vld [vmem:[#allocation14 + $0x30] sm:$0xff]  }
 0x578   :  { %4264 = vmatmul.mubr.msk.bf16.vlgmr.msra.gmra.mrb[8].mxu1 %vm645_vm2, %v790_v53  ;;  %4304 = vmatpush3.bf16.msra.mxu0 %v4470_v24  ;;  %v4475_v53 = vld [vmem:[#allocation20 + $0x8] ss:$16 sps:$4 sm:$0xff]  }
 0x579   :  { %4274 = vmatpush3.bf16.msra.mxu1 %v925_v6  ;;  %4275 = vmatprep.mubr.msk.bf16.mxu1 %vm5251_vm0, %v5249_v0  ;;  %v923_v58 = vpack.c.bf16 %v922_v56, %v921_v57  ;;  %v4478_v6 = vld [vmem:[#allocation20 + $0x20] ss:$16 sps:$4 sm:$0xff]   ;;  %v4481_v55 = vld [vmem:[#allocation20 + $0x28] ss:$16 sps:$4 sm:$0xff]   ;;  %v4486_v56 = vld [vmem:[#allocation20 + $0x44] ss:$16 sps:$4 sm:$0xff]  }
 0x57a   :  { %4285 = vmatprep.subr.bf16.mxu1 %v5249_v0  ;;  %4305 = vmatprep.subr.bf16.mxu0 %v5249_v0  ;;  %v4489_v57 = vld [vmem:[#allocation20 + $0x4c] ss:$16 sps:$4 sm:$0xff]  }
 0x57b   :  { %v4729_v61 = vpop.eup %4728 }
 0x57c   :  { %v1053_v63 = vmul.f32 %v4729_v61, %v4713_v28  ;;  %4306 = vmatpush3.bf16.msra.mxu0 %v4471_v25  ;;  %v4495_v61 = vld [vmem:[#allocation20 + $0x6c] ss:$16 sps:$4 sm:$0xff]  }
 0x580   :  { %4276 = vmatmul.mubr.msk.bf16.vlgmr.msra.gmra.mrb[12].mxu1 %vm645_vm2, %v923_v58  ;;  %v4484_v58 = vld [vmem:[#allocation20 + $0x40] ss:$16 sps:$4 sm:$0xff]  }
 0x581   :  { %4287 = vmatprep.mubr.msk.bf16.mxu1 %vm5251_vm0, %v5249_v0 }
 0x59f   :  { %v1050_v59 = vpop.xlane.xlu1 %1049 }
 0x5a0   :  { %4730 = vrcp.f32 %v1050_v59  ;;  %v4487_v59 = vld [vmem:[#allocation20 + $0x48] ss:$16 sps:$4 sm:$0xff]  }
 0x5a3   :  { %v1057_v60 = vpop.permute.xlu1 %1056 }
 0x5a4   :  { %4286 = vmatpush3.bf16.msra.mxu1 %v1057_v60  ;;  %v4492_v60 = vld [vmem:[#allocation20 + $0x64] ss:$16 sps:$4 sm:$0xff]  }
 0x5a5   :  { %1490 = vmatprep.subr.bf16.mxu1 %v4474_v51  ;;  %v4522_v51 = vld [vmem:[#allocation23] sm:$0xff]  }
 0x5aa   :  { %v4731_v62 = vpop.eup %4730 }
 0x5ab   :  { %v1054_v1 = vmul.f32 %v4731_v62, %v4719_v41  ;;  %v4490_v62 = vld [vmem:[#allocation20 + $0x60] ss:$16 sps:$4 sm:$0xff]  }
 0x5ad   :  { %v1055_v2 = vpack.c.bf16 %v1054_v1, %v1053_v63  ;;  %v4493_v63 = vld [vmem:[#allocation20 + $0x68] ss:$16 sps:$4 sm:$0xff]   ;;  %v4496_v1 = vld [vmem:[#allocation20 + $0x80] ss:$16 sps:$4 sm:$0xff]  }
 0x5af   :  { %4288 = vmatmul.mubr.msk.bf16.vlgmr.msra.gmra.mrb[16].mxu1 %vm645_vm2, %v1055_v2  ;;  %v4498_v2 = vld [vmem:[#allocation20 + $0x84] ss:$16 sps:$4 sm:$0xff]  }
 0x5b0   :  { %1522 = vmatprep.mubr.bf16.mxu1 %v5250_v29  ;;  %1491 = vmatpush1.bf16.msra.mxu1 %v4472_v52 }
 0x5d2   :  { %v706_v3 = vpop.f32.mrb[4].mxu1 }
 0x5d3   :  { %713 = vst.msk [vmem:[#allocation2] sm:$0xff] %vm597_vm1, %v706_v3  ;;  %v4253_v7 = vpop.f32.mrb[5].mxu1  ;;  %v4499_v3 = vld [vmem:[#allocation20 + $0x88] ss:$16 sps:$4 sm:$0xff]  }
 0x5d4   :  { %v709_v8 = vpop.f32.mrb[6].mxu1  ;;  %v4501_v7 = vld [vmem:[#allocation20 + $0x8c] ss:$16 sps:$4 sm:$0xff]  }
 0x5d5   :  { %714 = vst.msk [vmem:[#allocation2 + $0x8] sm:$0xff] %vm597_vm1, %v709_v8  ;;  %v4254_v9 = vpop.f32.mrb[7].mxu1  ;;  %v4504_v8 = vld [vmem:[#allocation20 + $0xa4] ss:$16 sps:$4 sm:$0xff]  }
 0x5d6   :  { %v4507_v9 = vld [vmem:[#allocation20 + $0xac] ss:$16 sps:$4 sm:$0xff]  }
 0x64b   :  { %v832_v11 = vpop.f32.mrb[8].mxu1 }
 0x64c   :  { %841 = vrot.lane.b32.xlu1 %v832_v11, %s5253_s19  ;;  %v4265_v13 = vpop.f32.mrb[9].mxu1  ;;  %v4505_v11 = vld [vmem:[#allocation20 + $0xa8] ss:$16 sps:$4 sm:$0xff]  }
 0x64d   :  { %v835_v14 = vpop.f32.mrb[10].mxu1  ;;  %v4513_v13 = vld [vmem:[#allocation20 + $0xcc] ss:$16 sps:$4 sm:$0xff]  }
 0x64e   :  { %843 = vrot.lane.b32.xlu0 %v835_v14, %s5253_s19  ;;  %v4266_v15 = vpop.f32.mrb[11].mxu1  ;;  %v4508_v14 = vld [vmem:[#allocation20 + $0xc0] ss:$16 sps:$4 sm:$0xff]  }
 0x64f   :  { %v4511_v15 = vld [vmem:[#allocation20 + $0xc8] ss:$16 sps:$4 sm:$0xff]  }
 0x653   :  { %v964_v17 = vpop.f32.mrb[12].mxu1 }
 0x654   :  { %973 = vrot.lane.b32.xlu1 %v964_v17, %s5233_s0  ;;  %v4277_v19 = vpop.f32.mrb[13].mxu1  ;;  %v4519_v17 = vld [vmem:[#allocation20 + $0xec] ss:$16 sps:$4 sm:$0xff]  }
 0x655   :  { %v967_v20 = vpop.f32.mrb[14].mxu1  ;;  %v4517_v19 = vld [vmem:[#allocation20 + $0xe8] ss:$16 sps:$4 sm:$0xff]  }
 0x656   :  { %975 = vrot.lane.b32.xlu0 %v967_v20, %s5233_s0  ;;  %v4278_v21 = vpop.f32.mrb[15].mxu1  ;;  %v4520_v20 = vld [vmem:[#allocation23 + $0x40] sm:$0xff]  }
 0x657   :  { %v4521_v21 = vld [vmem:[#allocation23 + $0xc0] sm:$0xff]  }
 0x682   :  { %v1096_v26 = vpop.f32.mrb[16].mxu1 }
 0x683   :  { %1105 = vrot.lane.b32.xlu1 %v1096_v26, %s5252_s17  ;;  %v4289_v27 = vpop.f32.mrb[17].mxu1 }
 0x684   :  { %v1099_v28 = vpop.f32.mrb[18].mxu1 }
 0x685   :  { %1107 = vrot.lane.b32.xlu0 %v1099_v28, %s5252_s17  ;;  %v4290_v30 = vpop.f32.mrb[19].mxu1 }
 0x6be   :  { %v842_v31 = vpop.permute.xlu1 %841 }
 0x6bf   :  { %848 = vst.msk [vmem:[#allocation2] sm:$0xff] %vm847_vm3, %v842_v31 }
 0x6c0   :  { %v844_v32 = vpop.permute.xlu0 %843 }
 0x6c1   :  { %849 = vst.msk [vmem:[#allocation2 + $0x8] sm:$0xff] %vm847_vm3, %v844_v32 }
 0x6c6   :  { %v974_v33 = vpop.permute.xlu1 %973 }
 0x6c7   :  { %980 = vst.msk [vmem:[#allocation2] sm:$0xff] %vm979_vm4, %v974_v33 }
 0x6c8   :  { %v976_v34 = vpop.permute.xlu0 %975 }
 0x6c9   :  { %981 = vst.msk [vmem:[#allocation2 + $0x8] sm:$0xff] %vm979_vm4, %v976_v34 }
 0x6f5   :  { %v1106_v35 = vpop.permute.xlu1 %1105 }
 0x6f6   :  { %1112 = vst.msk [vmem:[#allocation2] sm:$0xff] %vm1111_vm5, %v1106_v35 }
 0x6f7   :  { %v1108_v36 = vpop.permute.xlu0 %1107 }
 0x6f8   :  { %1113 = vst.msk [vmem:[#allocation2 + $0x8] sm:$0xff] %vm1111_vm5, %v1108_v36 }
 0x6fd   :  { %v1114_v37 = vld [vmem:[#allocation2] sm:$0xff] }
 0x6ff   :  { %v1115_v38 = vld [vmem:[#allocation2 + $0x8] sm:$0xff] }
 0x700   :  { %v1116_v39 = vpack.c.bf16 %v1115_v38, %v1114_v37 }
 0x702   :  { %4308 = vmatmul.mubr.bf16.vlgmr.msra.gmra.mrb[20].mxu0 %v1116_v39 }
 0x703   :  { %1565 = vmatprep.mubr.bf16.mxu0 %v5250_v29 }
 0x7d5   :  { %v1222_v41 = vpop.f32.mrb[20].mxu0 }
 0x7d6   :  { %v1223_v42 = vadd.f32 %v3863_v40, %v1222_v41  ;;  %v4309_v43 = vpop.f32.mrb[21].mxu0 }
 0x7d7   :  { %v1225_v44 = vpop.f32.mrb[22].mxu0 }
 0x7d8   :  { %v5733_v45 = vadd.f32 %v1223_v42, %v5613_v4  ;;  %v1226_v46 = vadd.f32 %v3863_v40, %v1225_v44  ;;  %v4310_v47 = vpop.f32.mrb[23].mxu0  ;;  %v4477_v4 = vld [vmem:[#allocation20 + $0xc] ss:$16 sps:$4 sm:$0xff]  }
 0x7d9   :  { %1533 = vmatprep.subr.bf16.mxu0 %v4477_v4  ;;  %v3872_v40 = vld [vmem:[#allocation17] ss:$0 sm:$0xff]  ;;  %v4523_v4 = vld [vmem:[#allocation23 + $0x80] sm:$0xff]  }
 0x7da   :  { %v5736_v48 = vadd.f32 %v1226_v46, %v5615_v5  ;;  %1233 = vadd.xlane.f32.xlu1 %v5733_v45  ;;  %v1239_v49 = vmul.f32 %v5733_v45, %v5733_v45  ;;  %1534 = vmatpush1.bf16.msra.mxu0 %v4475_v53  ;;  %v4480_v5 = vld [vmem:[#allocation20 + $0x24] ss:$16 sps:$4 sm:$0xff]   ;;  %v3873_v46 = vld [vmem:[#allocation18] ss:$0 sm:$0xff] }
 0x7db   :  { %1492 = vmatprep.subr.bf16.mxu1 %v4480_v5  ;;  %1535 = vmatprep.subr.bf16.mxu0 %v4483_v54  ;;  %v4524_v53 = vld [vmem:[#allocation23 + $0x48] sm:$0xff]  }
 0x7dc   :  { %1235 = vadd.xlane.f32.xlu0 %v5736_v48  ;;  %v1240_v50 = vmul.f32 %v5736_v48, %v5736_v48  ;;  %1493 = vmatpush1.bf16.msra.mxu1 %v4478_v6  ;;  %v4525_v5 = vld [vmem:[#allocation23 + $0xc8] sm:$0xff]  }
 0x7dd   :  { %1494 = vmatprep.subr.bf16.mxu1 %v4486_v56  ;;  %v4526_v54 = vld [vmem:[#allocation23 + $0x8] sm:$0xff]   ;;  %v4529_v56 = vld [vmem:[#allocation23 + $0xd0] sm:$0xff]  }
 0x7de   :  { %1536 = vmatpush1.bf16.msra.mxu0 %v4481_v55  ;;  %v4527_v6 = vld [vmem:[#allocation23 + $0x88] sm:$0xff]   ;;  %v4528_v55 = vld [vmem:[#allocation23 + $0x50] sm:$0xff]  }
 0x7df   :  { %1537 = vmatprep.subr.bf16.mxu0 %v4489_v57  ;;  %v4530_v57 = vld [vmem:[#allocation23 + $0x10] sm:$0xff]  }
 0x7e0   :  { %1241 = vadd.xlane.f32.xlu0 %v1239_v49  ;;  %1495 = vmatpush1.bf16.msra.mxu1 %v4484_v58  ;;  %v4531_v58 = vld [vmem:[#allocation23 + $0x90] sm:$0xff]  }
 0x7e1   :  { %1496 = vmatprep.subr.bf16.mxu1 %v4492_v60  ;;  %v4533_v60 = vld [vmem:[#allocation23 + $0xd8] sm:$0xff]  }
 0x7e2   :  { %1538 = vmatpush1.bf16.msra.mxu0 %v4487_v59  ;;  %v4532_v59 = vld [vmem:[#allocation23 + $0x58] sm:$0xff]  }
 0x7e3   :  { %1539 = vmatprep.subr.bf16.mxu0 %v4495_v61  ;;  %v4534_v61 = vld [vmem:[#allocation23 + $0x18] sm:$0xff]  }
 0x7e4   :  { %1243 = vadd.xlane.f32.xlu0 %v1240_v50  ;;  %1497 = vmatpush1.bf16.msra.mxu1 %v4490_v62  ;;  %v4535_v62 = vld [vmem:[#allocation23 + $0x98] sm:$0xff]  }
 0x7e5   :  { %1498 = vmatprep.subr.bf16.mxu1 %v4498_v2  ;;  %v4538_v2 = vld [vmem:[#allocation23 + $0x20] sm:$0xff]  }
 0x7e6   :  { %1540 = vmatpush1.bf16.msra.mxu0 %v4493_v63  ;;  %v4536_v63 = vld [vmem:[#allocation23 + $0x60] sm:$0xff]  }
 0x7e7   :  { %1541 = vmatprep.subr.bf16.mxu0 %v4501_v7  ;;  %v4540_v7 = vld [vmem:[#allocation23 + $0x68] sm:$0xff]  }
 0x7e8   :  { %1499 = vmatpush1.bf16.msra.mxu1 %v4496_v1  ;;  %v4537_v1 = vld [vmem:[#allocation23 + $0xe0] sm:$0xff]  }
 0x7e9   :  { %1500 = vmatprep.subr.bf16.mxu1 %v4504_v8  ;;  %v4541_v8 = vld [vmem:[#allocation23 + $0xe8] sm:$0xff]  }
 0x7ea   :  { %1542 = vmatpush1.bf16.msra.mxu0 %v4499_v3  ;;  %v4539_v3 = vld [vmem:[#allocation23 + $0xa0] sm:$0xff]  }
 0x7eb   :  { %1543 = vmatprep.subr.bf16.mxu0 %v4507_v9  ;;  %v4542_v9 = vld [vmem:[#allocation23 + $0x28] sm:$0xff]  }
 0x7ec   :  { %1501 = vmatpush1.bf16.msra.mxu1 %v4502_v10  ;;  %v4543_v10 = vld [vmem:[#allocation23 + $0xa8] sm:$0xff]  }
 0x7ed   :  { %1502 = vmatprep.subr.bf16.mxu1 %v4510_v12  ;;  %v4545_v12 = vld [vmem:[#allocation23 + $0xf0] sm:$0xff]  }
 0x7ee   :  { %1544 = vmatpush1.bf16.msra.mxu0 %v4505_v11  ;;  %v4544_v11 = vld [vmem:[#allocation23 + $0x70] sm:$0xff]  }
 0x7ef   :  { %1545 = vmatprep.subr.bf16.mxu0 %v4513_v13  ;;  %v4546_v13 = vld [vmem:[#allocation23 + $0x30] sm:$0xff]  }
 0x7f0   :  { %1503 = vmatpush1.bf16.msra.mxu1 %v4508_v14  ;;  %v4547_v14 = vld [vmem:[#allocation23 + $0xb0] sm:$0xff]  }
 0x7f1   :  { %1504 = vmatprep.subr.bf16.mxu1 %v4516_v16  ;;  %v4549_v16 = vld [vmem:[#allocation23 + $0xf8] sm:$0xff]  }
 0x7f2   :  { %1546 = vmatpush1.bf16.msra.mxu0 %v4511_v15  ;;  %v4548_v15 = vld [vmem:[#allocation23 + $0x78] sm:$0xff]  }
 0x7f3   :  { %1547 = vmatprep.subr.bf16.mxu0 %v4519_v17  ;;  %v4550_v17 = vld [vmem:[#allocation23 + $0x38] sm:$0xff]  }
 0x7f4   :  { %1505 = vmatpush1.bf16.msra.mxu1 %v4514_v18  ;;  %v4551_v18 = vld [vmem:[#allocation23 + $0xb8] sm:$0xff]  }
 0x7f5   :  { %4101 = vmatprep.subr.bf16.mxu1 %v4520_v20 }
 0x7f6   :  { %1548 = vmatpush1.bf16.msra.mxu0 %v4517_v19  ;;  %v1310_v19 = vlaneseq }
 0x7f7   :  { %4123 = vmatprep.subr.bf16.mxu0 %v4521_v21 }
 0x7f8   :  { %v5747_v20 = vshrl.u32 %v1310_v19, 7 }
 0x7fa   :  { %v5750_v21 = vsub.s32 0, %v5747_v20 }
 0x867   :  { %v1234_v22 = vpop.xlane.xlu1 %1233 }
 0x868   :  { %v1237_v24 = vmul.f32 0.0078125, %v1234_v22  ;;  %v1320_v22 = vsub.s32 2, %v5747_v20 }
 0x869   :  { %v1236_v23 = vpop.xlane.xlu0 %1235 }
 0x86a   :  { %v1247_v26 = vmul.f32 %v1237_v24, %v1237_v24  ;;  %v1238_v27 = vmul.f32 0.0078125, %v1236_v23  ;;  %v1255_v37 = vsub.f32 %v5733_v45, %v1237_v24  ;;  %v1308_v23 = vld [vmem:[#allocation21] sm:$0xf]  ;;  %v5754_v24 = vsub.s32 1, %v5747_v20 }
 0x86c   :  { %v1248_v32 = vmul.f32 %v1238_v27, %v1238_v27  ;;  %v1256_v41 = vsub.f32 %v5736_v48, %v1238_v27  ;;  %v1321_v27 = vrot.slane %v1308_v23, %v1320_v22 }
 0x86d   :  { %v1242_v25 = vpop.xlane.xlu0 %1241 }
 0x86e   :  { %v1245_v28 = vmul.f32 0.0078125, %v1242_v25  ;;  %v1324_v25 = vsub.s32 3, %v5747_v20 }
 0x870   :  { %v1249_v30 = vsub.f32 %v1245_v28, %v1247_v26  ;;  %v1313_v26 = vrot.slane %v1308_v23, %v5750_v21  ;;  %v1317_v28 = vrot.slane %v1308_v23, %v5754_v24 }
 0x871   :  { %v1244_v31 = vpop.xlane.xlu0 %1243 }
 0x872   :  { %v1251_v33 = vadd.f32 1e-05, %v1249_v30  ;;  %v1246_v34 = vmul.f32 0.0078125, %v1244_v31  ;;  %v1325_v30 = vrot.slane %v1308_v23, %v1324_v25 }
 0x874   :  { %4732 = vrsqrt.f32 %v1251_v33  ;;  %v1250_v35 = vsub.f32 %v1246_v34, %v1248_v32 }
 0x876   :  { %v1252_v36 = vadd.f32 1e-05, %v1250_v35 }
 0x878   :  { %4734 = vrsqrt.f32 %v1252_v36 }
 0x87e   :  { %v4733_v38 = vpop.eup %4732 }
 0x87f   :  { %v1257_v39 = vmul.f32 %v4733_v38, %v1255_v37 }
 0x881   :  { %v1265_v44 = vmul.f32 %v3872_v40, %v1257_v39 }
 0x882   :  { %v4735_v42 = vpop.eup %4734 }
 0x883   :  { %v1258_v43 = vmul.f32 %v4735_v42, %v1256_v41  ;;  %v1273_v49 = vadd.f32 %v3873_v46, %v1265_v44 }
 0x885   :  { %v1266_v47 = vmul.f32 %v3872_v40, %v1258_v43 }
 0x887   :  { %v1274_v50 = vadd.f32 %v3873_v46, %v1266_v47 }
 0x889   :  { %v1275_v52 = vpack.c.bf16 %v1274_v50, %v1273_v49 }
 0x88b   :  { %1523 = vmatmul.mubr.bf16.vlgmr.msra.gmra.mrb[20].mxu1 %v1275_v52  ;;  %1566 = vmatmul.mubr.bf16.vlgmr.msra.gmra.mrb[24].mxu0 %v1275_v52 }
 0x88c   :  { %4102 = vmatpush3.bf16.msra.mxu1 %v4522_v51  ;;  %4124 = vmatpush3.bf16.msra.mxu0 %v4523_v4 }
 0x88d   :  { %4103 = vmatprep.subr.bf16.mxu1 %v4524_v53  ;;  %4125 = vmatprep.subr.bf16.mxu0 %v4525_v5 }
 0x890   :  { %4104 = vmatpush3.bf16.msra.mxu1 %v4526_v54  ;;  %4126 = vmatpush3.bf16.msra.mxu0 %v4527_v6 }
 0x891   :  { %4105 = vmatprep.subr.bf16.mxu1 %v4528_v55  ;;  %4127 = vmatprep.subr.bf16.mxu0 %v4529_v56 }
 0x894   :  { %4106 = vmatpush3.bf16.msra.mxu1 %v4530_v57  ;;  %4128 = vmatpush3.bf16.msra.mxu0 %v4531_v58 }
 0x895   :  { %4107 = vmatprep.subr.bf16.mxu1 %v4532_v59  ;;  %4129 = vmatprep.subr.bf16.mxu0 %v4533_v60 }
 0x898   :  { %4108 = vmatpush3.bf16.msra.mxu1 %v4534_v61  ;;  %4130 = vmatpush3.bf16.msra.mxu0 %v4535_v62 }
 0x899   :  { %4109 = vmatprep.subr.bf16.mxu1 %v4536_v63  ;;  %4131 = vmatprep.subr.bf16.mxu0 %v4537_v1 }
 0x89c   :  { %4110 = vmatpush3.bf16.msra.mxu1 %v4538_v2  ;;  %4132 = vmatpush3.bf16.msra.mxu0 %v4539_v3  ;;  %v4552_v3 = vld [vmem:[#allocation12 + $0xc0] ss:$12 sps:$4 sm:$0xff]  }
 0x89d   :  { %4111 = vmatprep.subr.bf16.mxu1 %v4540_v7  ;;  %4133 = vmatprep.subr.bf16.mxu0 %v4541_v8  ;;  %v4554_v7 = vld [vmem:[#allocation12 + $0xc4] ss:$12 sps:$4 sm:$0xff]  }
 0x8a0   :  { %4112 = vmatpush3.bf16.msra.mxu1 %v4542_v9  ;;  %4134 = vmatpush3.bf16.msra.mxu0 %v4543_v10  ;;  %v3906_v10 = vld [vmem:[#allocation24] ss:$0 sm:$0xff] }
 0x8a1   :  { %4113 = vmatprep.subr.bf16.mxu1 %v4544_v11  ;;  %4135 = vmatprep.subr.bf16.mxu0 %v4545_v12 }
 0x8a4   :  { %4114 = vmatpush3.bf16.msra.mxu1 %v4546_v13  ;;  %4136 = vmatpush3.bf16.msra.mxu0 %v4547_v14 }
 0x8a5   :  { %4115 = vmatprep.subr.bf16.mxu1 %v4548_v15  ;;  %4137 = vmatprep.subr.bf16.mxu0 %v4549_v16 }
 0x8a8   :  { %4116 = vmatpush3.bf16.msra.mxu1 %v4550_v17  ;;  %4138 = vmatpush3.bf16.msra.mxu0 %v4551_v18 }
 0x8a9   :  { %4311 = vmatprep.subr.bf16.mxu0 %v5249_v0  ;;  %2159 = vmatprep.subr.bf16.mxu1 %v4554_v7 }
 0x95e   :  { %v1524_v31 = vpop.f32.mrb[20].mxu1  ;;  %v1567_v32 = vpop.f32.mrb[24].mxu0 }
 0x95f   :  { %v1525_v33 = vadd.f32 %v1524_v31, %v1313_v26  ;;  %v1568_v34 = vadd.f32 %v1567_v32, %v1321_v27  ;;  %v1526_v35 = vpop.f32.mrb[21].mxu1  ;;  %v1569_v36 = vpop.f32.mrb[25].mxu0 }
 0x960   :  { %v1527_v37 = vadd.f32 %v1526_v35, %v1317_v28  ;;  %v1570_v38 = vadd.f32 %v1569_v36, %v1325_v30  ;;  %v1528_v39 = vpop.f32.mrb[22].mxu1  ;;  %v1571_v40 = vpop.f32.mrb[26].mxu0  ;;  %v4555_v35 = vld [vmem:[#allocation12 + $0xc8] ss:$12 sps:$4 sm:$0xff]   ;;  %v4556_v36 = vld [vmem:[#allocation12 + $0xd8] ss:$12 sps:$4 sm:$0xff]  }
 0x961   :  { %vm1576_vm6 = vcmp.ge.f32.partialorder %v1525_v33, 0.0  ;;  %v1584_v41 = vmul.f32 0.01, %v1525_v33  ;;  %vm1578_vm7 = vcmp.ge.f32.partialorder %v1568_v34, 0.0  ;;  %v1586_v42 = vmul.f32 0.01, %v1568_v34 }
 0x962   :  { %vm1577_vm8 = vcmp.ge.f32.partialorder %v1527_v37, 0.0  ;;  %v1585_v43 = vmul.f32 0.01, %v1527_v37  ;;  %vm1579_vm9 = vcmp.ge.f32.partialorder %v1570_v38, 0.0  ;;  %v1587_v44 = vmul.f32 0.01, %v1570_v38 }
 0x963   :  { %v1529_v46 = vadd.f32 %v1528_v39, %v1313_v26  ;;  %v1572_v47 = vadd.f32 %v1571_v40, %v1321_v27  ;;  %v1530_v49 = vpop.f32.mrb[23].mxu1  ;;  %v1573_v50 = vpop.f32.mrb[27].mxu0  ;;  %v1592_v51 = vsel %vm1576_vm6, %v1525_v33, %v1584_v41  ;;  %v1594_v4 = vsel %vm1578_vm7, %v1568_v34, %v1586_v42  ;;  %v4563_v39 = vld [vmem:[#allocation12 + $0xf8] ss:$12 sps:$4 sm:$0xff]   ;;  %v4564_v41 = vld [vmem:[#allocation12 + $0x108] ss:$12 sps:$4 sm:$0xff]  }
 0x964   :  { %v1531_v52 = vadd.f32 %v1530_v49, %v1317_v28  ;;  %v1574_v53 = vadd.f32 %v1573_v50, %v1325_v30  ;;  %v1593_v58 = vsel %vm1577_vm8, %v1527_v37, %v1585_v43  ;;  %v1595_v59 = vsel %vm1579_vm9, %v1570_v38, %v1587_v44  ;;  %v4562_v37 = vld [vmem:[#allocation12 + $0xf4] ss:$12 sps:$4 sm:$0xff]   ;;  %v4560_v38 = vld [vmem:[#allocation12 + $0xf0] ss:$12 sps:$4 sm:$0xff]   ;;  %v4566_v40 = vld [vmem:[#allocation12 + $0x10c] ss:$12 sps:$4 sm:$0xff]  }
 0x965   :  { %vm1580_vm10 = vcmp.ge.f32.partialorder %v1529_v46, 0.0  ;;  %v1588_v5 = vmul.f32 0.01, %v1529_v46  ;;  %vm1582_vm11 = vcmp.ge.f32.partialorder %v1572_v47, 0.0  ;;  %v1590_v54 = vmul.f32 0.01, %v1572_v47 }
 0x966   :  { %vm1581_vm12 = vcmp.ge.f32.partialorder %v1531_v52, 0.0  ;;  %v1589_v6 = vmul.f32 0.01, %v1531_v52  ;;  %vm1583_vm13 = vcmp.ge.f32.partialorder %v1574_v53, 0.0  ;;  %v1591_v55 = vmul.f32 0.01, %v1574_v53 }
 0x967   :  { %v1596_v56 = vsel %vm1580_vm10, %v1529_v46, %v1588_v5  ;;  %v1598_v57 = vsel %vm1582_vm11, %v1572_v47, %v1590_v54  ;;  %v4567_v42 = vld [vmem:[#allocation12 + $0x110] ss:$12 sps:$4 sm:$0xff]   ;;  %v4568_v43 = vld [vmem:[#allocation12 + $0x120] ss:$12 sps:$4 sm:$0xff]   ;;  %v4571_v46 = vld [vmem:[#allocation12 + $0x128] ss:$12 sps:$4 sm:$0xff]  }
 0x968   :  { %v1600_v60 = vpack.c.bf16 %v1596_v56, %v1592_v51  ;;  %v1602_v61 = vpack.c.bf16 %v1598_v57, %v1594_v4  ;;  %v1597_v62 = vsel %vm1581_vm12, %v1531_v52, %v1589_v6  ;;  %v1599_v63 = vsel %vm1583_vm13, %v1574_v53, %v1591_v55  ;;  %v4570_v44 = vld [vmem:[#allocation12 + $0x124] ss:$12 sps:$4 sm:$0xff]   ;;  %v4574_v47 = vld [vmem:[#allocation12 + $0x13c] ss:$12 sps:$4 sm:$0xff]   ;;  %v4575_v50 = vld [vmem:[#allocation12 + $0x140] ss:$12 sps:$4 sm:$0xff]  }
 0x969   :  { %v1601_v1 = vpack.c.bf16 %v1597_v62, %v1593_v58  ;;  %v1603_v2 = vpack.c.bf16 %v1599_v63, %v1595_v59  ;;  %v4572_v49 = vld [vmem:[#allocation12 + $0x138] ss:$12 sps:$4 sm:$0xff]   ;;  %v4578_v51 = vld [vmem:[#allocation12 + $0x154] ss:$12 sps:$4 sm:$0xff]   ;;  %v4576_v4 = vld [vmem:[#allocation12 + $0x150] ss:$12 sps:$4 sm:$0xff]  }
 0x96a   :  { %v4579_v52 = vld [vmem:[#allocation12 + $0x158] ss:$12 sps:$4 sm:$0xff]   ;;  %v4580_v5 = vld [vmem:[#allocation12 + $0x168] ss:$12 sps:$4 sm:$0xff]   ;;  %v4583_v54 = vld [vmem:[#allocation12 + $0x170] ss:$12 sps:$4 sm:$0xff]  }
 0x96b   :  { %1899 = vmatprep.mubr.bf16.mxu1 %v1601_v1  ;;  %1940 = vmatprep.mubr.bf16.mxu0 %v1603_v2  ;;  %v4582_v53 = vld [vmem:[#allocation12 + $0x16c] ss:$12 sps:$4 sm:$0xff]  }
 0x96c   :  { %1900 = vmatmul.mubr.bf16.vlgmr.msra.gmra.mrb[24].mxu1 %v1600_v60  ;;  %1941 = vmatmul.mubr.bf16.vlgmr.msra.gmra.mrb[28].mxu0 %v1602_v61 }
 0x96d   :  { %2191 = vmatprep.mubr.bf16.mxu1 %v5250_v29  ;;  %4327 = vmatprep.mubr.msk.bf16.mxu0 %vm5251_vm0, %v5249_v0 }
 0x96e   :  { %2160 = vmatpush1.bf16.msra.mxu1 %v4552_v3  ;;  %4312 = vmatpush3.bf16.msra.mxu0 %v4555_v35 }
 0x96f   :  { %4313 = vmatprep.subr.bf16.mxu0 %v5249_v0 }
 0xa3f   :  { %v4117_v8 = vpop.f32.mrb[24].mxu1  ;;  %v4139_v9 = vpop.f32.mrb[28].mxu0 }
 0xa40   :  { %v4118_v11 = vpop.f32.mrb[25].mxu1  ;;  %v4140_v12 = vpop.f32.mrb[29].mxu0 }
 0xa41   :  { %v4119_v13 = vadd.f32 %v4118_v11, %v4117_v8  ;;  %v4141_v14 = vadd.f32 %v4140_v12, %v4139_v9  ;;  %v4120_v15 = vpop.f32.mrb[26].mxu1  ;;  %v4142_v16 = vpop.f32.mrb[30].mxu0 }
 0xa42   :  { %v4121_v17 = vpop.f32.mrb[27].mxu1  ;;  %v4143_v18 = vpop.f32.mrb[31].mxu0 }
 0xa43   :  { %v1902_v19 = vadd.f32 %v4119_v13, %v3906_v10  ;;  %v4122_v23 = vadd.f32 %v4121_v17, %v4120_v15  ;;  %v4144_v26 = vadd.f32 %v4143_v18, %v4142_v16  ;;  %v3940_v16 = vld [vmem:[#allocation11 + $0x1] ss:$0 sm:$0xff] }
 0xa45   :  { %v1943_v27 = vadd.f32 %v4141_v14, %v1902_v19  ;;  %v1905_v28 = vadd.f32 %v4122_v23, %v3906_v10  ;;  %v3939_v10 = vld [vmem:[#allocation9 + $0x1] ss:$0 sm:$0xff] }
 0xa47   :  { %v5769_v30 = vadd.f32 %v1943_v27, %v5733_v45  ;;  %v1946_v31 = vadd.f32 %v4144_v26, %v1905_v28  ;;  %v4558_v45 = vld [vmem:[#allocation12 + $0xdc] ss:$12 sps:$4 sm:$0xff]  }
 0xa48   :  { %2161 = vmatprep.subr.bf16.mxu1 %v4558_v45 }
 0xa49   :  { %v5772_v32 = vadd.f32 %v1946_v31, %v5736_v48  ;;  %1955 = vadd.xlane.f32.xlu1 %v5769_v30  ;;  %v1961_v33 = vmul.f32 %v5769_v30, %v5769_v30  ;;  %v4559_v48 = vld [vmem:[#allocation12 + $0xe0] ss:$12 sps:$4 sm:$0xff]   ;;  %2162 = vmatpush1.bf16.msra.mxu1 %v4556_v36 }
 0xa4a   :  { %4314 = vmatpush3.bf16.msra.mxu0 %v4559_v48  ;;  %2163 = vmatprep.subr.bf16.mxu1 %v4562_v37 }
 0xa4b   :  { %1957 = vadd.xlane.f32.xlu0 %v5772_v32  ;;  %v1962_v34 = vmul.f32 %v5772_v32, %v5772_v32  ;;  %4315 = vmatprep.subr.bf16.mxu0 %v5249_v0 }
 0xa4d   :  { %1963 = vadd.xlane.f32.xlu1 %v1961_v33  ;;  %2164 = vmatpush1.bf16.msra.mxu1 %v4560_v38 }
 0xa4e   :  { %4316 = vmatpush3.bf16.msra.mxu0 %v4563_v39  ;;  %2165 = vmatprep.subr.bf16.mxu1 %v4566_v40  ;;  %v5804_v40 = vld [vmem:[#allocation8] sm:$0xff] }
 0xa4f   :  { %1965 = vadd.xlane.f32.xlu0 %v1962_v34  ;;  %4317 = vmatprep.subr.bf16.mxu0 %v5249_v0 }
 0xa51   :  { %2166 = vmatpush1.bf16.msra.mxu1 %v4564_v41 }
 0xa52   :  { %4318 = vmatpush3.bf16.msra.mxu0 %v4567_v42  ;;  %2167 = vmatprep.subr.bf16.mxu1 %v4570_v44  ;;  %v5807_v44 = vld [vmem:[#allocation8 + $0x8] sm:$0xff] }
 0xa53   :  { %4319 = vmatprep.subr.bf16.mxu0 %v5249_v0 }
 0xa55   :  { %2168 = vmatpush1.bf16.msra.mxu1 %v4568_v43 }
 0xa56   :  { %4320 = vmatpush3.bf16.msra.mxu0 %v4571_v46  ;;  %2169 = vmatprep.subr.bf16.mxu1 %v4574_v47 }
 0xa57   :  { %4321 = vmatprep.subr.bf16.mxu0 %v5249_v0 }
 0xa59   :  { %2170 = vmatpush1.bf16.msra.mxu1 %v4572_v49 }
 0xa5a   :  { %4322 = vmatpush3.bf16.msra.mxu0 %v4575_v50  ;;  %2171 = vmatprep.subr.bf16.mxu1 %v4578_v51 }
 0xa5b   :  { %4323 = vmatprep.subr.bf16.mxu0 %v5249_v0 }
 0xa5d   :  { %2172 = vmatpush1.bf16.msra.mxu1 %v4576_v4 }
 0xa5e   :  { %4324 = vmatpush3.bf16.msra.mxu0 %v4579_v52  ;;  %2173 = vmatprep.subr.bf16.mxu1 %v4582_v53 }
 0xa5f   :  { %4325 = vmatprep.subr.bf16.mxu0 %v5249_v0 }
 0xa61   :  { %2174 = vmatpush1.bf16.msra.mxu1 %v4580_v5 }
 0xa62   :  { %4326 = vmatpush3.bf16.msra.mxu0 %v4583_v54  ;;  %4331 = vmatprep.subr.bf16.mxu1 %v5249_v0 }
 0xa63   :  { %4355 = vmatprep.subr.bf16.mxu0 %v5249_v0 }
 0xad6   :  { %v1956_v6 = vpop.xlane.xlu1 %1955 }
 0xad7   :  { %v1959_v55 = vmul.f32 0.0078125, %v1956_v6 }
 0xad8   :  { %v1958_v56 = vpop.xlane.xlu0 %1957 }
 0xad9   :  { %v1960_v57 = vmul.f32 0.0078125, %v1958_v56  ;;  %v1969_v59 = vmul.f32 %v1959_v55, %v1959_v55  ;;  %v1977_v8 = vsub.f32 %v5769_v30, %v1959_v55 }
 0xada   :  { %v1964_v58 = vpop.xlane.xlu1 %1963 }
 0xadb   :  { %v1967_v60 = vmul.f32 0.0078125, %v1964_v58  ;;  %v1970_v62 = vmul.f32 %v1960_v57, %v1960_v57  ;;  %v1978_v11 = vsub.f32 %v5772_v32, %v1960_v57 }
 0xadc   :  { %v1966_v61 = vpop.xlane.xlu0 %1965 }
 0xadd   :  { %v1971_v63 = vsub.f32 %v1967_v60, %v1969_v59  ;;  %v1968_v1 = vmul.f32 0.0078125, %v1966_v61 }
 0xadf   :  { %v1973_v2 = vadd.f32 1e-05, %v1971_v63  ;;  %v1972_v3 = vsub.f32 %v1968_v1, %v1970_v62 }
 0xae1   :  { %4736 = vrsqrt.f32 %v1973_v2  ;;  %v1974_v7 = vadd.f32 1e-05, %v1972_v3 }
 0xae3   :  { %4738 = vrsqrt.f32 %v1974_v7 }
 0xaeb   :  { %v4737_v9 = vpop.eup %4736 }
 0xaec   :  { %v1979_v12 = vmul.f32 %v4737_v9, %v1977_v8 }
 0xaed   :  { %v4739_v13 = vpop.eup %4738 }
 0xaee   :  { %v1980_v14 = vmul.f32 %v4739_v13, %v1978_v11  ;;  %v1987_v15 = vmul.f32 %v3939_v10, %v1979_v12 }
 0xaf0   :  { %v1988_v17 = vmul.f32 %v3939_v10, %v1980_v14  ;;  %v1995_v18 = vadd.f32 %v3940_v16, %v1987_v15 }
 0xaf2   :  { %v1996_v19 = vadd.f32 %v3940_v16, %v1988_v17 }
 0xaf4   :  { %v1997_v23 = vpack.c.bf16 %v1996_v19, %v1995_v18 }
 0xaf6   :  { %2192 = vmatmul.mubr.bf16.vlgmr.msra.gmra.mrb[28].mxu1 %v1997_v23  ;;  %4328 = vmatmul.mubr.bf16.vlgmr.msra.gmra.mrb[32].mxu0 %v1997_v23 }
 0xaf7   :  { %4333 = vmatprep.mubr.msk.bf16.mxu1 %vm5251_vm0, %v5249_v0  ;;  %4357 = vmatprep.mubr.msk.bf16.mxu0 %vm5251_vm0, %v5249_v0 }
 0xbc9   :  { %v2193_v26 = vpop.f32.mrb[28].mxu1  ;;  %v2236_v27 = vpop.f32.mrb[32].mxu0 }
 0xbca   :  { %v2195_v28 = vpop.f32.mrb[29].mxu1  ;;  %v4329_v31 = vpop.f32.mrb[33].mxu0 }
 0xbcb   :  { %v2197_v33 = vpop.f32.mrb[30].mxu1  ;;  %v2239_v34 = vpop.f32.mrb[34].mxu0 }
 0xbcc   :  { %v2243_v35 = vpack.c.bf16 %v2197_v33, %v2193_v26  ;;  %v5795_v45 = vpack.c.bf16 %v2239_v34, %v2236_v27  ;;  %v2199_v36 = vpop.f32.mrb[31].mxu1  ;;  %v4330_v48 = vpop.f32.mrb[35].mxu0 }
 0xbcd   :  { %v2244_v37 = vpack.c.bf16 %v2199_v36, %v2195_v28 }
 0xbcf   :  { %v2250_v38 = vsel %vm597_vm1, %v2244_v37, 0 }
 0xbd0   :  { %4332 = vmatpush3.bf16.xpose.msra.mxu1 %v2250_v38 }
 0xbd1   :  { %4337 = vmatprep.subr.bf16.mxu1 %v5249_v0 }
 0xbd7   :  { %4334 = vmatmul.mubr.msk.bf16.vlgmr.msra.gmra.mrb[32].mxu1 %vm597_vm1, %v2243_v35 }
 0xbd8   :  { %4338 = vmatpush3.bf16.msra.mxu1 %v5795_v45  ;;  %4339 = vmatprep.mubr.msk.bf16.mxu1 %vm5251_vm0, %v5249_v0 }
 0xbd9   :  { %4343 = vmatprep.subr.bf16.mxu1 %v5249_v0 }
 0xcaa   :  { %v2286_v39 = vpop.f32.mrb[32].mxu1 }
 0xcab   :  { %v2287_v41 = vadd.f32 %v5804_v40, %v2286_v39  ;;  %v4335_v42 = vpop.f32.mrb[33].mxu1 }
 0xcac   :  { %v2289_v43 = vpop.f32.mrb[34].mxu1 }
 0xcad   :  { %v2290_v46 = vadd.f32 %v5807_v44, %v2289_v43  ;;  %v4336_v47 = vpop.f32.mrb[35].mxu1  ;;  %v2293_v49 = vsel %vm645_vm2, %v2287_v41, -inf }
 0xcae   :  { %2294 = vmax.xlane.f32.xlu1 %v2293_v49 }
 0xcaf   :  { %v2296_v50 = vsel %vm645_vm2, %v2290_v46, -inf }
 0xcb0   :  { %2297 = vmax.xlane.f32.xlu0 %v2296_v50 }
 0xd3b   :  { %v2295_v51 = vpop.xlane.xlu1 %2294 }
 0xd3c   :  { %v2299_v4 = vsub.f32 %v2287_v41, %v2295_v51 }
 0xd3d   :  { %v2298_v52 = vpop.xlane.xlu0 %2297 }
 0xd3e   :  { %v2301_v53 = vmul.f32 1.442695, %v2299_v4  ;;  %v2300_v5 = vsub.f32 %v2290_v46, %v2298_v52 }
 0xd40   :  { %4740 = vpow2.f32 %v2301_v53  ;;  %v2303_v54 = vmul.f32 1.442695, %v2300_v5 }
 0xd42   :  { %4742 = vpow2.f32 %v2303_v54 }
 0xd4a   :  { %v4741_v6 = vpop.eup %4740 }
 0xd4b   :  { %v2305_v55 = vsel %vm645_vm2, %v4741_v6, 0.0 }
 0xd4c   :  { %v4743_v56 = vpop.eup %4742  ;;  %2306 = vadd.xlane.f32.xlu1 %v2305_v55 }
 0xd4d   :  { %v2308_v57 = vsel %vm645_vm2, %v4743_v56, 0.0 }
 0xd4e   :  { %2309 = vadd.xlane.f32.xlu0 %v2308_v57 }
 0xd5d   :  { %2366 = vrot.lane.b32.xlu1 %v2244_v37, %s5252_s17 }
 0xd61   :  { %2498 = vrot.lane.b32.xlu1 %v2244_v37, %s5233_s0 }
 0xd64   :  { %2363 = vrot.lane.b32.xlu0 %v2243_v35, %s5252_s17 }
 0xd65   :  { %2496 = vrot.lane.b32.xlu1 %v2243_v35, %s5233_s0 }
 0xd68   :  { %2627 = vrot.lane.b32.xlu0 %v2243_v35, %s5253_s19 }
 0xd69   :  { %2629 = vrot.lane.b32.xlu1 %v2244_v37, %s5253_s19 }
 0xdd9   :  { %v2307_v58 = vpop.xlane.xlu1 %2306 }
 0xdda   :  { %4744 = vrcp.f32 %v2307_v58 }
 0xddb   :  { %v2310_v59 = vpop.xlane.xlu0 %2309 }
 0xddc   :  { %4746 = vrcp.f32 %v2310_v59 }
 0xddd   :  { %v2367_v60 = vpop.permute.xlu1 %2366 }
 0xdde   :  { %v2372_v11 = vsel %vm597_vm1, %v2367_v60, 0 }
 0xddf   :  { %v2364_v12 = vpop.permute.xlu0 %2363 }
 0xde1   :  { %v2499_v61 = vpop.permute.xlu1 %2498 }
 0xde2   :  { %v2504_v62 = vsel %vm597_vm1, %v2499_v61, 0 }
 0xde3   :  { %4356 = vmatpush3.bf16.xpose.msra.mxu0 %v2504_v62  ;;  %v2628_v13 = vpop.permute.xlu0 %2627 }
 0xde4   :  { %v4745_v63 = vpop.eup %4744  ;;  %4367 = vmatprep.subr.bf16.mxu0 %v5249_v0 }
 0xde5   :  { %v2497_v1 = vpop.permute.xlu1 %2496  ;;  %v2313_v3 = vmul.f32 %v4745_v63, %v4741_v6 }
 0xde6   :  { %v4747_v2 = vpop.eup %4746 }
 0xde7   :  { %v2314_v7 = vmul.f32 %v4747_v2, %v4743_v56 }
 0xde9   :  { %v2630_v8 = vpop.permute.xlu1 %2629  ;;  %v2315_v9 = vpack.c.bf16 %v2314_v7, %v2313_v3 }
 0xdea   :  { %v2635_v10 = vsel %vm597_vm1, %v2630_v8, 0  ;;  %4358 = vmatmul.mubr.msk.bf16.vlgmr.msra.gmra.mrb[36].mxu0 %vm597_vm1, %v2497_v1 }
 0xdeb   :  { %4340 = vmatmul.mubr.msk.bf16.vlgmr.msra.gmra.mrb[36].mxu1 %vm645_vm2, %v2315_v9  ;;  %4368 = vmatpush3.bf16.xpose.msra.mxu0 %v2635_v10 }
 0xdec   :  { %4344 = vmatpush3.bf16.xpose.msra.mxu1 %v2372_v11  ;;  %4369 = vmatprep.mubr.msk.bf16.mxu0 %vm5251_vm0, %v5249_v0 }
 0xded   :  { %4345 = vmatprep.mubr.msk.bf16.mxu1 %vm5251_vm0, %v5249_v0  ;;  %4349 = vmatprep.subr.bf16.mxu1 %v5249_v0 }
 0xdee   :  { %4379 = vmatprep.subr.bf16.mxu0 %v5249_v0 }
 0xdf2   :  { %4370 = vmatmul.mubr.msk.bf16.vlgmr.msra.gmra.mrb[40].mxu0 %vm597_vm1, %v2628_v13 }
 0xdf3   :  { %4346 = vmatmul.mubr.msk.bf16.vlgmr.msra.gmra.mrb[40].mxu1 %vm597_vm1, %v2364_v12  ;;  %4395 = vmatprep.mubr.msk.bf16.mxu0 %vm5251_vm0, %v5249_v0 }
 0xdf4   :  { %4351 = vmatprep.mubr.msk.bf16.mxu1 %vm5251_vm0, %v5249_v0 }
 0xebd   :  { %v2540_v14 = vpop.f32.mrb[36].mxu0 }
 0xebe   :  { %v2353_v15 = vpop.f32.mrb[36].mxu1  ;;  %v4359_v16 = vpop.f32.mrb[37].mxu0  ;;  %v2541_v42 = vadd.f32 %v5804_v40, %v2540_v14 }
 0xebf   :  { %2360 = vst.msk [vmem:[#allocation2] sm:$0xff] %vm597_vm1, %v2353_v15  ;;  %v4341_v17 = vpop.f32.mrb[37].mxu1  ;;  %v2543_v18 = vpop.f32.mrb[38].mxu0 }
 0xec0   :  { %v2356_v19 = vpop.f32.mrb[38].mxu1  ;;  %v4360_v23 = vpop.f32.mrb[39].mxu0  ;;  %v2544_v47 = vadd.f32 %v5807_v44, %v2543_v18  ;;  %v2547_v49 = vsel %vm645_vm2, %v2541_v42, -inf }
 0xec1   :  { %2361 = vst.msk [vmem:[#allocation2 + $0x8] sm:$0xff] %vm597_vm1, %v2356_v19  ;;  %v4342_v26 = vpop.f32.mrb[39].mxu1 }
 0xec2   :  { %v2550_v51 = vsel %vm645_vm2, %v2544_v47, -inf }
 0xec5   :  { %v2671_v27 = vpop.f32.mrb[40].mxu0 }
 0xec6   :  { %v2408_v28 = vpop.f32.mrb[40].mxu1  ;;  %v4371_v31 = vpop.f32.mrb[41].mxu0  ;;  %v2672_v37 = vadd.f32 %v5804_v40, %v2671_v27 }
 0xec7   :  { %v2409_v33 = vadd.f32 %v5804_v40, %v2408_v28  ;;  %v4347_v34 = vpop.f32.mrb[41].mxu1  ;;  %v2674_v35 = vpop.f32.mrb[42].mxu0 }
 0xec8   :  { %v2411_v36 = vpop.f32.mrb[42].mxu1  ;;  %v4372_v48 = vpop.f32.mrb[43].mxu0  ;;  %v2678_v46 = vsel %vm645_vm2, %v2672_v37, -inf  ;;  %v2675_v50 = vadd.f32 %v5807_v44, %v2674_v35 }
 0xec9   :  { %v2412_v38 = vadd.f32 %v5807_v44, %v2411_v36  ;;  %v4348_v39 = vpop.f32.mrb[43].mxu1  ;;  %v2415_v41 = vsel %vm645_vm2, %v2409_v33, -inf }
 0xeca   :  { %2416 = vmax.xlane.f32.xlu1 %v2415_v41  ;;  %v2681_v4 = vsel %vm645_vm2, %v2675_v50, -inf }
 0xecb   :  { %v2418_v43 = vsel %vm645_vm2, %v2412_v38, -inf }
 0xecc   :  { %2419 = vmax.xlane.f32.xlu0 %v2418_v43 }
 0xece   :  { %2679 = vmax.xlane.f32.xlu1 %v2678_v46 }
 0xed0   :  { %2548 = vmax.xlane.f32.xlu0 %v2547_v49 }
 0xed4   :  { %2551 = vmax.xlane.f32.xlu0 %v2550_v51 }
 0xed8   :  { %2682 = vmax.xlane.f32.xlu0 %v2681_v4  ;;  %v4584_v4 = vld [vmem:[#allocation14 + $0x40] sm:$0xff]  }
 0xed9   :  { %4380 = vmatpush3.bf16.msra.mxu0 %v4584_v4  ;;  %v4619_v4 = vld [vmem:[#allocation20 + $0x188] ss:$16 sps:$4 sm:$0xff]  }
 0xeda   :  { %4381 = vmatprep.subr.bf16.mxu0 %v5249_v0 }
 0xf57   :  { %v2417_v40 = vpop.xlane.xlu1 %2416 }
 0xf58   :  { %v2421_v55 = vsub.f32 %v2409_v33, %v2417_v40  ;;  %v4585_v40 = vld [vmem:[#allocation14 + $0x48] sm:$0xff]  }
 0xf59   :  { %v2420_v52 = vpop.xlane.xlu0 %2419  ;;  %4382 = vmatpush3.bf16.msra.mxu0 %v4585_v40  ;;  %v4621_v40 = vld [vmem:[#allocation20 + $0x18c] ss:$16 sps:$4 sm:$0xff]  }
 0xf5a   :  { %v2422_v56 = vsub.f32 %v2412_v38, %v2420_v52  ;;  %v2423_v44 = vmul.f32 1.442695, %v2421_v55  ;;  %4383 = vmatprep.subr.bf16.mxu0 %v5249_v0  ;;  %v4586_v52 = vld [vmem:[#allocation14 + $0x50] sm:$0xff]  }
 0xf5b   :  { %v2680_v53 = vpop.xlane.xlu1 %2679 }
 0xf5c   :  { %v2684_v5 = vsub.f32 %v2672_v37, %v2680_v53  ;;  %v2425_v61 = vmul.f32 1.442695, %v2422_v56  ;;  %v4587_v53 = vld [vmem:[#allocation14 + $0x58] sm:$0xff]  }
 0xf5d   :  { %v2549_v54 = vpop.xlane.xlu0 %2548  ;;  %4384 = vmatpush3.bf16.msra.mxu0 %v4586_v52  ;;  %v4624_v52 = vld [vmem:[#allocation20 + $0x1a4] ss:$16 sps:$4 sm:$0xff]  }
 0xf5e   :  { %v2553_v6 = vsub.f32 %v2541_v42, %v2549_v54  ;;  %v2686_v57 = vmul.f32 1.442695, %v2684_v5  ;;  %4385 = vmatprep.subr.bf16.mxu0 %v5249_v0  ;;  %v4588_v5 = vld [vmem:[#allocation14 + $0x60] sm:$0xff]  }
 0xf60   :  { %v2555_v58 = vmul.f32 1.442695, %v2553_v6 }
 0xf61   :  { %v2552_v59 = vpop.xlane.xlu0 %2551  ;;  %4386 = vmatpush3.bf16.msra.mxu0 %v4587_v53  ;;  %v4627_v53 = vld [vmem:[#allocation20 + $0x1ac] ss:$16 sps:$4 sm:$0xff]  }
 0xf62   :  { %4748 = vpow2.f32 %v2555_v58  ;;  %v2554_v60 = vsub.f32 %v2544_v47, %v2552_v59  ;;  %4387 = vmatprep.subr.bf16.mxu0 %v5249_v0  ;;  %v4590_v58 = vld [vmem:[#allocation14 + $0x70] sm:$0xff]  }
 0xf63   :  { %4750 = vpow2.f32 %v2686_v57  ;;  %v4589_v57 = vld [vmem:[#allocation14 + $0x68] sm:$0xff]  }
 0xf64   :  { %v2557_v62 = vmul.f32 1.442695, %v2554_v60 }
 0xf65   :  { %v2683_v63 = vpop.xlane.xlu0 %2682  ;;  %4388 = vmatpush3.bf16.msra.mxu0 %v4588_v5  ;;  %v4622_v5 = vld [vmem:[#allocation20 + $0x1a0] ss:$16 sps:$4 sm:$0xff]  }
 0xf66   :  { %4752 = vpow2.f32 %v2557_v62  ;;  %v2685_v1 = vsub.f32 %v2675_v50, %v2683_v63  ;;  %4389 = vmatprep.subr.bf16.mxu0 %v5249_v0 }
 0xf67   :  { %4754 = vpow2.f32 %v2423_v44 }
 0xf68   :  { %4756 = vpow2.f32 %v2425_v61  ;;  %v2688_v2 = vmul.f32 1.442695, %v2685_v1  ;;  %v4591_v61 = vld [vmem:[#allocation14 + $0x78] sm:$0xff]  }
 0xf69   :  { %4390 = vmatpush3.bf16.msra.mxu0 %v4589_v57  ;;  %v4631_v57 = vld [vmem:[#allocation20 + $0x1c8] ss:$16 sps:$4 sm:$0xff]  }
 0xf6a   :  { %4758 = vpow2.f32 %v2688_v2  ;;  %4391 = vmatprep.subr.bf16.mxu0 %v5249_v0 }
 0xf6c   :  { %v4749_v3 = vpop.eup %4748 }
 0xf6d   :  { %v2559_v7 = vsel %vm645_vm2, %v4749_v3, 0.0  ;;  %v4751_v8 = vpop.eup %4750  ;;  %4392 = vmatpush3.bf16.msra.mxu0 %v4590_v58  ;;  %v4636_v58 = vld [vmem:[#allocation20 + $0x1e4] ss:$16 sps:$4 sm:$0xff]  }
 0xf6e   :  { %2560 = vadd.xlane.f32.xlu1 %v2559_v7  ;;  %v2690_v11 = vsel %vm645_vm2, %v4751_v8, 0.0  ;;  %4393 = vmatprep.subr.bf16.mxu0 %v5249_v0 }
 0xf70   :  { %v4753_v9 = vpop.eup %4752 }
 0xf71   :  { %v4755_v10 = vpop.eup %4754  ;;  %v2562_v12 = vsel %vm645_vm2, %v4753_v9, 0.0  ;;  %4394 = vmatpush3.bf16.msra.mxu0 %v4591_v61  ;;  %v4640_v61 = vld [vmem:[#allocation23 + $0x140] sm:$0xff]  }
 0xf72   :  { %v4757_v13 = vpop.eup %4756  ;;  %2691 = vadd.xlane.f32.xlu1 %v2690_v11  ;;  %2563 = vadd.xlane.f32.xlu0 %v2562_v12  ;;  %v2427_v14 = vsel %vm645_vm2, %v4755_v10, 0.0 }
 0xf73   :  { %v2430_v15 = vsel %vm645_vm2, %v4757_v13, 0.0 }
 0xf74   :  { %v4759_v16 = vpop.eup %4758 }
 0xf75   :  { %v2693_v17 = vsel %vm645_vm2, %v4759_v16, 0.0 }
 0xf76   :  { %2428 = vadd.xlane.f32.xlu1 %v2427_v14  ;;  %2431 = vadd.xlane.f32.xlu0 %v2430_v15  ;;  %v3973_v15 = vld [vmem:[#allocation15 + $0x1] ss:$0 sm:$0xff] }
 0xf7a   :  { %2694 = vadd.xlane.f32.xlu0 %v2693_v17 }
 0xf87   :  { %2439 = vrot.lane.b32.xlu1 %v5795_v45, %s5252_s17 }
 0xf8b   :  { %2701 = vrot.lane.b32.xlu1 %v5795_v45, %s5253_s19 }
 0xf90   :  { %2570 = vrot.lane.b32.xlu0 %v5795_v45, %s5233_s0 }
 0xffb   :  { %v2561_v18 = vpop.xlane.xlu1 %2560 }
 0xfff   :  { %v2692_v19 = vpop.xlane.xlu1 %2691  ;;  %v2564_v23 = vpop.xlane.xlu0 %2563 }
0x1003   :  { %v2429_v26 = vpop.xlane.xlu1 %2428  ;;  %v2432_v27 = vpop.xlane.xlu0 %2431 }
0x1004   :  { %4760 = vrcp.f32 %v2429_v26 }
0x1005   :  { %4762 = vrcp.f32 %v2432_v27 }
0x1006   :  { %4764 = vrcp.f32 %v2564_v23 }
0x1007   :  { %v2440_v28 = vpop.permute.xlu1 %2439  ;;  %4766 = vrcp.f32 %v2561_v18  ;;  %v2695_v33 = vpop.xlane.xlu0 %2694 }
0x1008   :  { %4350 = vmatpush3.bf16.msra.mxu1 %v2440_v28  ;;  %4768 = vrcp.f32 %v2695_v33 }
0x1009   :  { %4361 = vmatprep.subr.bf16.mxu1 %v5249_v0  ;;  %4770 = vrcp.f32 %v2692_v19 }
0x100b   :  { %v2571_v37 = vpop.permute.xlu0 %2570  ;;  %v2702_v46 = vpop.permute.xlu1 %2701 }
0x100e   :  { %v4761_v31 = vpop.eup %4760 }
0x100f   :  { %v4763_v34 = vpop.eup %4762  ;;  %v2435_v35 = vmul.f32 %v4761_v31, %v4755_v10 }
0x1010   :  { %v2436_v36 = vmul.f32 %v4763_v34, %v4757_v13  ;;  %v4765_v48 = vpop.eup %4764  ;;  %v4594_v34 = vld [vmem:[#allocation20 + $0x104] ss:$16 sps:$4 sm:$0xff]  }
0x1011   :  { %v4767_v38 = vpop.eup %4766  ;;  %v2568_v39 = vmul.f32 %v4765_v48, %v4753_v9  ;;  %v4598_v48 = vld [vmem:[#allocation20 + $0x120] ss:$16 sps:$4 sm:$0xff]  }
0x1012   :  { %v2437_v45 = vpack.c.bf16 %v2436_v36, %v2435_v35  ;;  %v2567_v41 = vmul.f32 %v4767_v38, %v4749_v3  ;;  %v4769_v43 = vpop.eup %4768  ;;  %v4592_v35 = vld [vmem:[#allocation20 + $0x100] ss:$16 sps:$4 sm:$0xff]   ;;  %v4595_v36 = vld [vmem:[#allocation20 + $0x108] ss:$16 sps:$4 sm:$0xff]   ;;  %v4606_v38 = vld [vmem:[#allocation20 + $0x144] ss:$16 sps:$4 sm:$0xff]  }
0x1013   :  { %v4771_v47 = vpop.eup %4770  ;;  %v2699_v49 = vmul.f32 %v4769_v43, %v4759_v16  ;;  %v4612_v43 = vld [vmem:[#allocation20 + $0x164] ss:$16 sps:$4 sm:$0xff]  }
0x1014   :  { %4352 = vmatmul.mubr.msk.bf16.vlgmr.msra.gmra.mrb[44].mxu1 %vm645_vm2, %v2437_v45  ;;  %v2569_v42 = vpack.c.bf16 %v2568_v39, %v2567_v41  ;;  %v2698_v50 = vmul.f32 %v4771_v47, %v4751_v8  ;;  %v4603_v45 = vld [vmem:[#allocation20 + $0x12c] ss:$16 sps:$4 sm:$0xff]   ;;  %v4604_v41 = vld [vmem:[#allocation20 + $0x140] ss:$16 sps:$4 sm:$0xff]  }
0x1015   :  { %4362 = vmatpush3.bf16.msra.mxu1 %v2571_v37  ;;  %4363 = vmatprep.mubr.msk.bf16.mxu1 %vm5251_vm0, %v5249_v0  ;;  %v4601_v37 = vld [vmem:[#allocation20 + $0x128] ss:$16 sps:$4 sm:$0xff]   ;;  %v4609_v39 = vld [vmem:[#allocation20 + $0x14c] ss:$16 sps:$4 sm:$0xff]   ;;  %v4610_v47 = vld [vmem:[#allocation20 + $0x160] ss:$16 sps:$4 sm:$0xff]  }
0x1016   :  { %4373 = vmatprep.subr.bf16.mxu1 %v5249_v0  ;;  %v2700_v51 = vpack.c.bf16 %v2699_v49, %v2698_v50  ;;  %v4613_v49 = vld [vmem:[#allocation20 + $0x168] ss:$16 sps:$4 sm:$0xff]   ;;  %v4618_v50 = vld [vmem:[#allocation20 + $0x184] ss:$16 sps:$4 sm:$0xff]  }
0x101c   :  { %4364 = vmatmul.mubr.msk.bf16.vlgmr.msra.gmra.mrb[48].mxu1 %vm645_vm2, %v2569_v42  ;;  %v4607_v42 = vld [vmem:[#allocation20 + $0x148] ss:$16 sps:$4 sm:$0xff]  }
0x101d   :  { %4374 = vmatpush3.bf16.msra.mxu1 %v2702_v46  ;;  %4375 = vmatprep.mubr.msk.bf16.mxu1 %vm5251_vm0, %v5249_v0  ;;  %v4615_v46 = vld [vmem:[#allocation20 + $0x16c] ss:$16 sps:$4 sm:$0xff]  }
0x101e   :  { %3140 = vmatprep.subr.bf16.mxu1 %v4594_v34  ;;  %v3983_v34 = vld [vmem:[#allocation18 + $0x1] ss:$0 sm:$0xff] }
0x1024   :  { %4376 = vmatmul.mubr.msk.bf16.vlgmr.msra.gmra.mrb[52].mxu1 %vm645_vm2, %v2700_v51  ;;  %v4616_v51 = vld [vmem:[#allocation20 + $0x180] ss:$16 sps:$4 sm:$0xff]  }
0x1025   :  { %3172 = vmatprep.mubr.bf16.mxu1 %v5250_v29  ;;  %3141 = vmatpush1.bf16.msra.mxu1 %v4592_v35 }
0x10e7   :  { %v2479_v54 = vpop.f32.mrb[44].mxu1 }
0x10e8   :  { %2488 = vrot.lane.b32.xlu1 %v2479_v54, %s5253_s19  ;;  %v4353_v6 = vpop.f32.mrb[45].mxu1  ;;  %v4625_v54 = vld [vmem:[#allocation20 + $0x1a8] ss:$16 sps:$4 sm:$0xff]  }
0x10e9   :  { %v2482_v55 = vpop.f32.mrb[46].mxu1  ;;  %v4630_v6 = vld [vmem:[#allocation20 + $0x1c4] ss:$16 sps:$4 sm:$0xff]  }
0x10ea   :  { %v4354_v56 = vpop.f32.mrb[47].mxu1 }
0x10eb   :  { %v4628_v56 = vld [vmem:[#allocation20 + $0x1c0] ss:$16 sps:$4 sm:$0xff]  }
0x10ec   :  { %2490 = vrot.lane.b32.xlu1 %v2482_v55, %s5253_s19  ;;  %v4633_v55 = vld [vmem:[#allocation20 + $0x1cc] ss:$16 sps:$4 sm:$0xff]  }
0x10ef   :  { %v2610_v59 = vpop.f32.mrb[48].mxu1 }
0x10f0   :  { %2619 = vrot.lane.b32.xlu0 %v2610_v59, %s5233_s0  ;;  %v4365_v60 = vpop.f32.mrb[49].mxu1  ;;  %v4639_v59 = vld [vmem:[#allocation20 + $0x1ec] ss:$16 sps:$4 sm:$0xff]  }
0x10f1   :  { %v2613_v44 = vpop.f32.mrb[50].mxu1  ;;  %v4634_v60 = vld [vmem:[#allocation20 + $0x1e0] ss:$16 sps:$4 sm:$0xff]  }
0x10f2   :  { %2621 = vrot.lane.b32.xlu1 %v2613_v44, %s5233_s0  ;;  %v4366_v62 = vpop.f32.mrb[51].mxu1  ;;  %v4637_v44 = vld [vmem:[#allocation20 + $0x1e8] ss:$16 sps:$4 sm:$0xff]   ;;  %s5254_s0 = smov [#allocation32]  }
0x10f3   :  { %v4641_v62 = vld [vmem:[#allocation23 + $0x1c0] sm:$0xff]   ;;  %s3808_s21 = sshll.u32 %s5254_s0, 4  ;;  %s3809_s21 = int_to_ptr.vmem [resolvable:$true] %s3808_s21 }
0x10f4   :  { %s5178_s20 = scalar_lea.vmem %s3809_s21, 512  ;;  %p5183_p5 = scmp.lt.s32.totalorder %s3809_s21, %s3809_s21 }
0x10f5   :  { %p5179_p4 = scmp.ne.s32.totalorder %s3809_s21, %s5178_s20  ;;  %p5184_p6 = scmp.lt.s32.totalorder %s5178_s20, %s5178_s20 }
0x10f7   :  { %v2741_v63 = vpop.f32.mrb[52].mxu1  ;;  %p5185_p7 = por %p5184_p6, %p5183_p5 }
0x10f8   :  { %2750 = vrot.lane.b32.xlu0 %v2741_v63, %s5252_s17  ;;  %v4377_v1 = vpop.f32.mrb[53].mxu1 }
0x10f9   :  { %v2744_v2 = vpop.f32.mrb[54].mxu1  ;;  %p5186_p8 = pnand %p5185_p7, %p5179_p4 }
0x10fa   :  { %2752 = vrot.lane.b32.xlu1 %v2744_v2, %s5252_s17  ;;  %v4378_v3 = vpop.f32.mrb[55].mxu1 }
0x115a   :  { %v2489_v7 = vpop.permute.xlu1 %2488 }
0x115b   :  { %2494 = vst.msk [vmem:[#allocation2] sm:$0xff] %vm847_vm3, %v2489_v7 }
0x115e   :  { %v2491_v8 = vpop.permute.xlu1 %2490 }
0x115f   :  { %2495 = vst.msk [vmem:[#allocation2 + $0x8] sm:$0xff] %vm847_vm3, %v2491_v8 }
0x1162   :  { %v2620_v9 = vpop.permute.xlu0 %2619 }
0x1163   :  { %2625 = vst.msk [vmem:[#allocation2] sm:$0xff] %vm979_vm4, %v2620_v9 }
0x1164   :  { %v2622_v10 = vpop.permute.xlu1 %2621 }
0x1165   :  { %2626 = vst.msk [vmem:[#allocation2 + $0x8] sm:$0xff] %vm979_vm4, %v2622_v10 }
0x116a   :  { %v2751_v0 = vpop.permute.xlu0 %2750 }
0x116b   :  { %2756 = vst.msk [vmem:[#allocation2] sm:$0xff] %vm1111_vm5, %v2751_v0 }
0x116c   :  { %v2753_v11 = vpop.permute.xlu1 %2752 }
0x116d   :  { %2757 = vst.msk [vmem:[#allocation2 + $0x8] sm:$0xff] %vm1111_vm5, %v2753_v11 }
0x1172   :  { %v2758_v12 = vld [vmem:[#allocation2] sm:$0xff] }
0x1174   :  { %v2759_v13 = vld [vmem:[#allocation2 + $0x8] sm:$0xff] }
0x1175   :  { %v2760_v14 = vpack.c.bf16 %v2759_v13, %v2758_v12 }
0x1177   :  { %4396 = vmatmul.mubr.bf16.vlgmr.msra.gmra.mrb[44].mxu0 %v2760_v14 }
0x1178   :  { %3215 = vmatprep.mubr.bf16.mxu0 %v5250_v29 }
0x124a   :  { %v2868_v16 = vpop.f32.mrb[44].mxu0 }
0x124b   :  { %v2869_v17 = vadd.f32 %v3973_v15, %v2868_v16  ;;  %v4397_v18 = vpop.f32.mrb[45].mxu0 }
0x124c   :  { %v2871_v19 = vpop.f32.mrb[46].mxu0 }
0x124d   :  { %v5895_v23 = vadd.f32 %v2869_v17, %v5769_v30  ;;  %v2872_v26 = vadd.f32 %v3973_v15, %v2871_v19  ;;  %v4398_v27 = vpop.f32.mrb[47].mxu0  ;;  %v4597_v30 = vld [vmem:[#allocation20 + $0x10c] ss:$16 sps:$4 sm:$0xff]  }
0x124e   :  { %3183 = vmatprep.subr.bf16.mxu0 %v4597_v30  ;;  %v3982_v19 = vld [vmem:[#allocation17 + $0x1] ss:$0 sm:$0xff] }
0x124f   :  { %v5898_v28 = vadd.f32 %v2872_v26, %v5772_v32  ;;  %2881 = vadd.xlane.f32.xlu0 %v5895_v23  ;;  %v2887_v31 = vmul.f32 %v5895_v23, %v5895_v23  ;;  %3184 = vmatpush1.bf16.msra.mxu0 %v4595_v36  ;;  %v4600_v32 = vld [vmem:[#allocation20 + $0x124] ss:$16 sps:$4 sm:$0xff]  }
0x1250   :  { %3142 = vmatprep.subr.bf16.mxu1 %v4600_v32  ;;  %3185 = vmatprep.subr.bf16.mxu0 %v4603_v45  ;;  %v4642_v32 = vld [vmem:[#allocation23 + $0x100] sm:$0xff]  }
0x1251   :  { %2883 = vadd.xlane.f32.xlu1 %v5898_v28  ;;  %v2888_v33 = vmul.f32 %v5898_v28, %v5898_v28  ;;  %3143 = vmatpush1.bf16.msra.mxu1 %v4598_v48  ;;  %v4643_v45 = vld [vmem:[#allocation23 + $0x180] sm:$0xff]  }
0x1252   :  { %3144 = vmatprep.subr.bf16.mxu1 %v4606_v38  ;;  %v4645_v38 = vld [vmem:[#allocation23 + $0x1c8] sm:$0xff]  }
0x1253   :  { %2889 = vadd.xlane.f32.xlu0 %v2887_v31  ;;  %3186 = vmatpush1.bf16.msra.mxu0 %v4601_v37  ;;  %v4644_v37 = vld [vmem:[#allocation23 + $0x148] sm:$0xff]  }
0x1254   :  { %3187 = vmatprep.subr.bf16.mxu0 %v4609_v39  ;;  %v4646_v39 = vld [vmem:[#allocation23 + $0x108] sm:$0xff]  }
0x1255   :  { %3145 = vmatpush1.bf16.msra.mxu1 %v4604_v41  ;;  %v4647_v41 = vld [vmem:[#allocation23 + $0x188] sm:$0xff]  }
0x1256   :  { %3146 = vmatprep.subr.bf16.mxu1 %v4612_v43  ;;  %v4649_v43 = vld [vmem:[#allocation23 + $0x1d0] sm:$0xff]  }
0x1257   :  { %2891 = vadd.xlane.f32.xlu0 %v2888_v33  ;;  %3188 = vmatpush1.bf16.msra.mxu0 %v4607_v42  ;;  %v4648_v42 = vld [vmem:[#allocation23 + $0x150] sm:$0xff]  }
0x1258   :  { %3189 = vmatprep.subr.bf16.mxu0 %v4615_v46  ;;  %v4650_v46 = vld [vmem:[#allocation23 + $0x110] sm:$0xff]  }
0x1259   :  { %3147 = vmatpush1.bf16.msra.mxu1 %v4610_v47  ;;  %v4651_v47 = vld [vmem:[#allocation23 + $0x190] sm:$0xff]  }
0x125a   :  { %3148 = vmatprep.subr.bf16.mxu1 %v4618_v50  ;;  %v4653_v50 = vld [vmem:[#allocation23 + $0x1d8] sm:$0xff]  }
0x125b   :  { %3190 = vmatpush1.bf16.msra.mxu0 %v4613_v49  ;;  %v4652_v49 = vld [vmem:[#allocation23 + $0x158] sm:$0xff]  }
0x125c   :  { %3191 = vmatprep.subr.bf16.mxu0 %v4621_v40  ;;  %v4656_v40 = vld [vmem:[#allocation23 + $0x160] sm:$0xff]  }
0x125d   :  { %3149 = vmatpush1.bf16.msra.mxu1 %v4616_v51  ;;  %v4654_v51 = vld [vmem:[#allocation23 + $0x118] sm:$0xff]  }
0x125e   :  { %3150 = vmatprep.subr.bf16.mxu1 %v4624_v52  ;;  %v4657_v52 = vld [vmem:[#allocation23 + $0x1e0] sm:$0xff]  }
0x125f   :  { %3192 = vmatpush1.bf16.msra.mxu0 %v4619_v4  ;;  %v4655_v4 = vld [vmem:[#allocation23 + $0x198] sm:$0xff]  }
0x1260   :  { %3193 = vmatprep.subr.bf16.mxu0 %v4627_v53  ;;  %v4658_v53 = vld [vmem:[#allocation23 + $0x120] sm:$0xff]  }
0x1261   :  { %3151 = vmatpush1.bf16.msra.mxu1 %v4622_v5  ;;  %v4659_v5 = vld [vmem:[#allocation23 + $0x1a0] sm:$0xff]  }
0x1262   :  { %3152 = vmatprep.subr.bf16.mxu1 %v4630_v6  ;;  %v4661_v6 = vld [vmem:[#allocation23 + $0x1e8] sm:$0xff]  }
0x1263   :  { %3194 = vmatpush1.bf16.msra.mxu0 %v4625_v54  ;;  %v4660_v54 = vld [vmem:[#allocation23 + $0x168] sm:$0xff]  }
0x1264   :  { %3195 = vmatprep.subr.bf16.mxu0 %v4633_v55  ;;  %v4662_v55 = vld [vmem:[#allocation23 + $0x128] sm:$0xff]  }
0x1265   :  { %3153 = vmatpush1.bf16.msra.mxu1 %v4628_v56  ;;  %v4663_v56 = vld [vmem:[#allocation23 + $0x1a8] sm:$0xff]  }
0x1266   :  { %3154 = vmatprep.subr.bf16.mxu1 %v4636_v58  ;;  %v4665_v58 = vld [vmem:[#allocation23 + $0x1f0] sm:$0xff]  }
0x1267   :  { %3196 = vmatpush1.bf16.msra.mxu0 %v4631_v57  ;;  %v4664_v57 = vld [vmem:[#allocation23 + $0x170] sm:$0xff]  }
0x1268   :  { %3197 = vmatprep.subr.bf16.mxu0 %v4639_v59  ;;  %v4666_v59 = vld [vmem:[#allocation23 + $0x130] sm:$0xff]  }
0x1269   :  { %3155 = vmatpush1.bf16.msra.mxu1 %v4634_v60  ;;  %v4667_v60 = vld [vmem:[#allocation23 + $0x1b0] sm:$0xff]  }
0x126a   :  { %4179 = vmatprep.subr.bf16.mxu1 %v4640_v61  ;;  %v4669_v61 = vld [vmem:[#allocation23 + $0x1f8] sm:$0xff]  }
0x126b   :  { %3198 = vmatpush1.bf16.msra.mxu0 %v4637_v44  ;;  %v4668_v44 = vld [vmem:[#allocation23 + $0x178] sm:$0xff]  }
0x126c   :  { %4201 = vmatprep.subr.bf16.mxu0 %v4641_v62  ;;  %v4670_v62 = vld [vmem:[#allocation23 + $0x138] sm:$0xff]  }
0x12dc   :  { %v2882_v63 = vpop.xlane.xlu0 %2881 }
0x12dd   :  { %v2885_v1 = vmul.f32 0.0078125, %v2882_v63  ;;  %v4671_v63 = vld [vmem:[#allocation23 + $0x1b8] sm:$0xff]  }
0x12de   :  { %v2884_v2 = vpop.xlane.xlu1 %2883 }
0x12df   :  { %v2895_v7 = vmul.f32 %v2885_v1, %v2885_v1  ;;  %v2886_v8 = vmul.f32 0.0078125, %v2884_v2  ;;  %v2903_v16 = vsub.f32 %v5895_v23, %v2885_v1  ;;  %v2958_v1 = vld [vmem:[#allocation21 + $0x4] sm:$0xf] }
0x12e0   :  { %v2890_v3 = vpop.xlane.xlu0 %2889  ;;  %v2963_v2 = vrot.slane %v2958_v1, %v5750_v21 }
0x12e1   :  { %v2893_v9 = vmul.f32 0.0078125, %v2890_v3  ;;  %v2896_v11 = vmul.f32 %v2886_v8, %v2886_v8  ;;  %v2904_v26 = vsub.f32 %v5898_v28, %v2886_v8  ;;  %v2971_v3 = vrot.slane %v2958_v1, %v1320_v22 }
0x12e2   :  { %v2975_v8 = vrot.slane %v2958_v1, %v1324_v25 }
0x12e3   :  { %v2897_v10 = vsub.f32 %v2893_v9, %v2895_v7  ;;  %v2967_v7 = vrot.slane %v2958_v1, %v5754_v24 }
0x12e4   :  { %v2892_v0 = vpop.xlane.xlu0 %2891 }
0x12e5   :  { %v2899_v12 = vadd.f32 1e-05, %v2897_v10  ;;  %v2894_v13 = vmul.f32 0.0078125, %v2892_v0 }
0x12e7   :  { %4772 = vrsqrt.f32 %v2899_v12  ;;  %v2898_v14 = vsub.f32 %v2894_v13, %v2896_v11 }
0x12e9   :  { %v2900_v15 = vadd.f32 1e-05, %v2898_v14 }
0x12eb   :  { %4774 = vrsqrt.f32 %v2900_v15 }
0x12f1   :  { %v4773_v17 = vpop.eup %4772 }
0x12f2   :  { %v2905_v18 = vmul.f32 %v4773_v17, %v2903_v16 }
0x12f4   :  { %v2913_v33 = vmul.f32 %v3982_v19, %v2905_v18 }
0x12f5   :  { %v4775_v27 = vpop.eup %4774 }
0x12f6   :  { %v2906_v31 = vmul.f32 %v4775_v27, %v2904_v26  ;;  %v2921_v35 = vadd.f32 %v3983_v34, %v2913_v33 }
0x12f8   :  { %v2914_v30 = vmul.f32 %v3982_v19, %v2906_v31 }
0x12fa   :  { %v2922_v36 = vadd.f32 %v3983_v34, %v2914_v30 }
0x12fc   :  { %v2923_v48 = vpack.c.bf16 %v2922_v36, %v2921_v35 }
0x12fe   :  { %3173 = vmatmul.mubr.bf16.vlgmr.msra.gmra.mrb[56].mxu1 %v2923_v48  ;;  %3216 = vmatmul.mubr.bf16.vlgmr.msra.gmra.mrb[48].mxu0 %v2923_v48 }
0x12ff   :  { %4180 = vmatpush3.bf16.msra.mxu1 %v4642_v32  ;;  %4202 = vmatpush3.bf16.msra.mxu0 %v4643_v45 }
0x1300   :  { %4181 = vmatprep.subr.bf16.mxu1 %v4644_v37  ;;  %4203 = vmatprep.subr.bf16.mxu0 %v4645_v38 }
0x1303   :  { %4182 = vmatpush3.bf16.msra.mxu1 %v4646_v39  ;;  %4204 = vmatpush3.bf16.msra.mxu0 %v4647_v41 }
0x1304   :  { %4183 = vmatprep.subr.bf16.mxu1 %v4648_v42  ;;  %4205 = vmatprep.subr.bf16.mxu0 %v4649_v43 }
0x1307   :  { %4184 = vmatpush3.bf16.msra.mxu1 %v4650_v46  ;;  %4206 = vmatpush3.bf16.msra.mxu0 %v4651_v47 }
0x1308   :  { %4185 = vmatprep.subr.bf16.mxu1 %v4652_v49  ;;  %4207 = vmatprep.subr.bf16.mxu0 %v4653_v50 }
0x130b   :  { %4186 = vmatpush3.bf16.msra.mxu1 %v4654_v51  ;;  %4208 = vmatpush3.bf16.msra.mxu0 %v4655_v4  ;;  %v4672_v51 = vld [vmem:[#allocation29] ss:$8 sps:$4 sm:$0xff]   ;;  %v4674_v4 = vld [vmem:[#allocation29 + $0x4] ss:$8 sps:$4 sm:$0xff]  }
0x130c   :  { %4187 = vmatprep.subr.bf16.mxu1 %v4656_v40  ;;  %4209 = vmatprep.subr.bf16.mxu0 %v4657_v52 }
0x130f   :  { %4188 = vmatpush3.bf16.msra.mxu1 %v4658_v53  ;;  %4210 = vmatpush3.bf16.msra.mxu0 %v4659_v5  ;;  %v4016_v53 = vld [vmem:[#allocation24 + $0x1] ss:$0 sm:$0xff] }
0x1310   :  { %4189 = vmatprep.subr.bf16.mxu1 %v4660_v54  ;;  %4211 = vmatprep.subr.bf16.mxu0 %v4661_v6 }
0x1313   :  { %4190 = vmatpush3.bf16.msra.mxu1 %v4662_v55  ;;  %4212 = vmatpush3.bf16.msra.mxu0 %v4663_v56 }
0x1314   :  { %4191 = vmatprep.subr.bf16.mxu1 %v4664_v57  ;;  %4213 = vmatprep.subr.bf16.mxu0 %v4665_v58 }
0x1317   :  { %4192 = vmatpush3.bf16.msra.mxu1 %v4666_v59  ;;  %4214 = vmatpush3.bf16.msra.mxu0 %v4667_v60 }
0x1318   :  { %4193 = vmatprep.subr.bf16.mxu1 %v4668_v44  ;;  %4215 = vmatprep.subr.bf16.mxu0 %v4669_v61 }
0x131b   :  { %4194 = vmatpush3.bf16.msra.mxu1 %v4670_v62  ;;  %4216 = vmatpush3.bf16.msra.mxu0 %v4671_v63 }
0x131c   :  { %3756 = vmatprep.subr.bf16.mxu1 %v4674_v4 }
0x13d1   :  { %v3174_v9 = vpop.f32.mrb[56].mxu1  ;;  %v3217_v10 = vpop.f32.mrb[48].mxu0 }
0x13d2   :  { %v3175_v0 = vadd.f32 %v3174_v9, %v2963_v2  ;;  %v3218_v11 = vadd.f32 %v3217_v10, %v2971_v3  ;;  %v3176_v12 = vpop.f32.mrb[57].mxu1  ;;  %v3219_v13 = vpop.f32.mrb[49].mxu0  ;;  %v4675_v9 = vld [vmem:[#allocation29 + $0x10] ss:$8 sps:$4 sm:$0xff]   ;;  %v4680_v10 = vld [vmem:[#allocation29 + $0x24] ss:$8 sps:$4 sm:$0xff]  }
0x13d3   :  { %v3177_v14 = vadd.f32 %v3176_v12, %v2967_v7  ;;  %v3220_v15 = vadd.f32 %v3219_v13, %v2975_v8  ;;  %v3178_v16 = vpop.f32.mrb[58].mxu1  ;;  %v3221_v17 = vpop.f32.mrb[50].mxu0  ;;  %v4681_v12 = vld [vmem:[#allocation29 + $0x30] ss:$8 sps:$4 sm:$0xff]   ;;  %v4686_v13 = vld [vmem:[#allocation29 + $0x44] ss:$8 sps:$4 sm:$0xff]  }
0x13d4   :  { %vm3226_vm14 = vcmp.ge.f32.partialorder %v3175_v0, 0.0  ;;  %v3234_v18 = vmul.f32 0.01, %v3175_v0  ;;  %vm3228_vm15 = vcmp.ge.f32.partialorder %v3218_v11, 0.0  ;;  %v3236_v19 = vmul.f32 0.01, %v3218_v11 }
0x13d5   :  { %vm3227_vm0 = vcmp.ge.f32.partialorder %v3177_v14, 0.0  ;;  %v3235_v22 = vmul.f32 0.01, %v3177_v14  ;;  %vm3229_vm1 = vcmp.ge.f32.partialorder %v3220_v15, 0.0  ;;  %v3237_v26 = vmul.f32 0.01, %v3220_v15 }
0x13d6   :  { %v3179_v20 = vadd.f32 %v3178_v16, %v2963_v2  ;;  %v3222_v25 = vadd.f32 %v3221_v17, %v2971_v3  ;;  %v3180_v27 = vpop.f32.mrb[59].mxu1  ;;  %v3223_v31 = vpop.f32.mrb[51].mxu0  ;;  %v3242_v33 = vsel %vm3226_vm14, %v3175_v0, %v3234_v18  ;;  %v3244_v34 = vsel %vm3228_vm15, %v3218_v11, %v3236_v19  ;;  %v4678_v0 = vld [vmem:[#allocation29 + $0x20] ss:$8 sps:$4 sm:$0xff]   ;;  %v4683_v11 = vld [vmem:[#allocation29 + $0x34] ss:$8 sps:$4 sm:$0xff]  }
0x13d7   :  { %v3181_v30 = vadd.f32 %v3180_v27, %v2967_v7  ;;  %v3224_v35 = vadd.f32 %v3223_v31, %v2975_v8  ;;  %v3243_v39 = vsel %vm3227_vm0, %v3177_v14, %v3235_v22  ;;  %v3245_v41 = vsel %vm3229_vm1, %v3220_v15, %v3237_v26  ;;  %v4677_v8 = vld [vmem:[#allocation29 + $0x14] ss:$8 sps:$4 sm:$0xff]   ;;  %v4687_v14 = vld [vmem:[#allocation29 + $0x50] ss:$8 sps:$4 sm:$0xff]   ;;  %v4692_v15 = vld [vmem:[#allocation29 + $0x64] ss:$8 sps:$4 sm:$0xff]  }
0x13d8   :  { %vm3230_vm2 = vcmp.ge.f32.partialorder %v3179_v20, 0.0  ;;  %v3238_v36 = vmul.f32 0.01, %v3179_v20  ;;  %vm3232_vm3 = vcmp.ge.f32.partialorder %v3222_v25, 0.0  ;;  %v3240_v32 = vmul.f32 0.01, %v3222_v25 }
0x13d9   :  { %vm3231_vm4 = vcmp.ge.f32.partialorder %v3181_v30, 0.0  ;;  %v3239_v45 = vmul.f32 0.01, %v3181_v30  ;;  %vm3233_vm5 = vcmp.ge.f32.partialorder %v3224_v35, 0.0  ;;  %v3241_v48 = vmul.f32 0.01, %v3224_v35 }
0x13da   :  { %v3246_v37 = vsel %vm3230_vm2, %v3179_v20, %v3238_v36  ;;  %v3248_v38 = vsel %vm3232_vm3, %v3222_v25, %v3240_v32  ;;  %v4690_v16 = vld [vmem:[#allocation29 + $0x60] ss:$8 sps:$4 sm:$0xff]   ;;  %v4695_v17 = vld [vmem:[#allocation29 + $0x74] ss:$8 sps:$4 sm:$0xff]   ;;  %v4693_v18 = vld [vmem:[#allocation29 + $0x70] ss:$8 sps:$4 sm:$0xff]  }
0x13db   :  { %v3250_v42 = vpack.c.bf16 %v3246_v37, %v3242_v33  ;;  %v3252_v43 = vpack.c.bf16 %v3248_v38, %v3244_v34  ;;  %v3247_v46 = vsel %vm3231_vm4, %v3181_v30, %v3239_v45  ;;  %v3249_v47 = vsel %vm3233_vm5, %v3224_v35, %v3241_v48  ;;  %v4049_v38 = vld [vmem:[#allocation26] ss:$0 sm:$0xff] }
0x13dc   :  { %v3251_v49 = vpack.c.bf16 %v3247_v46, %v3243_v39  ;;  %v3253_v50 = vpack.c.bf16 %v3249_v47, %v3245_v41  ;;  %v4050_v47 = vld [vmem:[#allocation27] ss:$0 sm:$0xff] }
0x13de   :  { %3551 = vmatprep.mubr.bf16.mxu1 %v3251_v49  ;;  %3592 = vmatprep.mubr.bf16.mxu0 %v3253_v50 }
0x13df   :  { %3552 = vmatmul.mubr.bf16.vlgmr.msra.gmra.mrb[60].mxu1 %v3250_v42  ;;  %3593 = vmatmul.mubr.bf16.vlgmr.msra.gmra.mrb[52].mxu0 %v3252_v43 }
0x13e0   :  { %3788 = vmatprep.mubr.bf16.mxu1 %v5250_v29  ;;  %3757 = vmatpush1.bf16.msra.mxu1 %v4672_v51 }
0x13e1   :  { %3758 = vmatprep.subr.bf16.mxu1 %v4677_v8 }
0x13e4   :  { %3759 = vmatpush1.bf16.msra.mxu1 %v4675_v9 }
0x13e5   :  { %3760 = vmatprep.subr.bf16.mxu1 %v4680_v10 }
0x13e8   :  { %3761 = vmatpush1.bf16.msra.mxu1 %v4678_v0 }
0x13e9   :  { %3762 = vmatprep.subr.bf16.mxu1 %v4683_v11 }
0x13ec   :  { %3763 = vmatpush1.bf16.msra.mxu1 %v4681_v12 }
0x13ed   :  { %3764 = vmatprep.subr.bf16.mxu1 %v4686_v13 }
0x14b2   :  { %v4195_v40 = vpop.f32.mrb[60].mxu1  ;;  %v4217_v52 = vpop.f32.mrb[52].mxu0 }
0x14b3   :  { %v4196_v5 = vpop.f32.mrb[61].mxu1  ;;  %v4218_v54 = vpop.f32.mrb[53].mxu0 }
0x14b4   :  { %v4197_v6 = vadd.f32 %v4196_v5, %v4195_v40  ;;  %v4219_v55 = vadd.f32 %v4218_v54, %v4217_v52  ;;  %v4198_v56 = vpop.f32.mrb[62].mxu1  ;;  %v4220_v57 = vpop.f32.mrb[54].mxu0  ;;  %v3664_v40 = vld [vmem:[#allocation30] sm:$0x3] }
0x14b5   :  { %v4199_v58 = vpop.f32.mrb[63].mxu1  ;;  %v4221_v59 = vpop.f32.mrb[55].mxu0  ;;  %v3669_v52 = vrot.slane %v3664_v40, %v5750_v21 }
0x14b6   :  { %v3554_v60 = vadd.f32 %v4197_v6, %v4016_v53  ;;  %v4200_v44 = vadd.f32 %v4199_v58, %v4198_v56  ;;  %v4222_v61 = vadd.f32 %v4221_v59, %v4220_v57 }
0x14b8   :  { %v3595_v62 = vadd.f32 %v4219_v55, %v3554_v60  ;;  %v3557_v29 = vadd.f32 %v4200_v44, %v4016_v53  ;;  %v3673_v53 = vrot.slane %v3664_v40, %v5754_v24 }
0x14ba   :  { %v3598_v63 = vadd.f32 %v4222_v61, %v3557_v29  ;;  %v3601_v1 = vadd.f32 %v3595_v62, %v5895_v23  ;;  %v4684_v23 = vld [vmem:[#allocation29 + $0x40] ss:$8 sps:$4 sm:$0xff]  }
0x14bb   :  { %3765 = vmatpush1.bf16.msra.mxu1 %v4684_v23 }
0x14bc   :  { %3605 = vadd.xlane.f32.xlu0 %v3601_v1  ;;  %v3602_v2 = vadd.f32 %v3598_v63, %v5898_v28  ;;  %v3611_v3 = vmul.f32 %v3601_v1, %v3601_v1  ;;  %v4689_v28 = vld [vmem:[#allocation29 + $0x54] ss:$8 sps:$4 sm:$0xff]  }
0x14bd   :  { %3766 = vmatprep.subr.bf16.mxu1 %v4689_v28 }
0x14be   :  { %3607 = vadd.xlane.f32.xlu1 %v3602_v2  ;;  %v3612_v7 = vmul.f32 %v3602_v2, %v3602_v2 }
0x14bf   :  { %3767 = vmatpush1.bf16.msra.mxu1 %v4687_v14 }
0x14c0   :  { %3613 = vadd.xlane.f32.xlu0 %v3611_v3  ;;  %3768 = vmatprep.subr.bf16.mxu1 %v4692_v15 }
0x14c2   :  { %3615 = vadd.xlane.f32.xlu1 %v3612_v7 }
0x14c3   :  { %3769 = vmatpush1.bf16.msra.mxu1 %v4690_v16 }
0x14c4   :  { %3770 = vmatprep.subr.bf16.mxu1 %v4695_v17 }
0x14c7   :  { %3771 = vmatpush1.bf16.msra.mxu1 %v4693_v18 }
0x1549   :  { %v3606_v19 = vpop.xlane.xlu0 %3605 }
0x154a   :  { %v3609_v22 = vmul.f32 0.0078125, %v3606_v19 }
0x154b   :  { %v3608_v26 = vpop.xlane.xlu1 %3607 }
0x154c   :  { %v3610_v20 = vmul.f32 0.0078125, %v3608_v26  ;;  %v3619_v27 = vmul.f32 %v3609_v22, %v3609_v22  ;;  %v3627_v48 = vsub.f32 %v3601_v1, %v3609_v22 }
0x154d   :  { %v3614_v25 = vpop.xlane.xlu0 %3613 }
0x154e   :  { %v3617_v31 = vmul.f32 0.0078125, %v3614_v25  ;;  %v3620_v34 = vmul.f32 %v3610_v20, %v3610_v20  ;;  %v3628_v39 = vsub.f32 %v3602_v2, %v3610_v20 }
0x154f   :  { %v3616_v33 = vpop.xlane.xlu1 %3615 }
0x1550   :  { %v3621_v30 = vsub.f32 %v3617_v31, %v3619_v27  ;;  %v3618_v35 = vmul.f32 0.0078125, %v3616_v33 }
0x1552   :  { %v3623_v36 = vadd.f32 1e-05, %v3621_v30  ;;  %v3622_v32 = vsub.f32 %v3618_v35, %v3620_v34 }
0x1554   :  { %4776 = vrsqrt.f32 %v3623_v36  ;;  %v3624_v45 = vadd.f32 1e-05, %v3622_v32 }
0x1556   :  { %4778 = vrsqrt.f32 %v3624_v45 }
0x155e   :  { %v4777_v37 = vpop.eup %4776 }
0x155f   :  { %v3629_v41 = vmul.f32 %v4777_v37, %v3627_v48 }
0x1560   :  { %v4779_v42 = vpop.eup %4778 }
0x1561   :  { %v3630_v43 = vmul.f32 %v4779_v42, %v3628_v39  ;;  %v3637_v46 = vmul.f32 %v4049_v38, %v3629_v41 }
0x1563   :  { %v3638_v49 = vmul.f32 %v4049_v38, %v3630_v43  ;;  %v3645_v50 = vadd.f32 %v4050_v47, %v3637_v46 }
0x1565   :  { %v3646_v51 = vadd.f32 %v4050_v47, %v3638_v49 }
0x1567   :  { %v3647_v4 = vpack.c.bf16 %v3646_v51, %v3645_v50 }
0x1569   :  { %3789 = vmatmul.mubr.bf16.vlgmr.msra.gmra.mrb[64].mxu1 %v3647_v4 }
0x163c   :  { %v3790_v5 = vpop.f32.mrb[64].mxu1 }
0x163d   :  { %v3791_v54 = vadd.f32 %v3790_v5, %v3669_v52  ;;  %v3792_v6 = vpop.f32.mrb[65].mxu1 }
0x163e   :  { %v3793_v55 = vadd.f32 %v3792_v6, %v3673_v53  ;;  %v3794_v56 = vpop.f32.mrb[66].mxu1 }
0x163f   :  { %3799 = vst [vmem:[#allocation32] sm:$0xff] %v3791_v54  ;;  %v3795_v57 = vadd.f32 %v3794_v56, %v3669_v52  ;;  %v3796_v58 = vpop.f32.mrb[67].mxu1 }
0x1640   :  { %3800 = vst [vmem:[#allocation32 + $0x8] sm:$0xff] %v3793_v55  ;;  %v3797_v59 = vadd.f32 %v3796_v58, %v3673_v53 }
0x1641   :  { %3801 = vst [vmem:[#allocation32 + $0x10] sm:$0xff] %v3795_v57 }
0x1642   :  { %3802 = vst [vmem:[#allocation32 + $0x18] sm:$0xff] %v3797_v59 }
0x1643   :  { %5189 = shalt.err (!%p5186_p8)
}
0x1644   :  { %s5190_s1 = scalar_lea.hbm %s5954_s18, 512 }
0x1645   :  { %p5191_p9 = scmp.ne.s32.totalorder %s5954_s18, %s5190_s1  ;;  %p5194_p10 = scmp.lt.u32.totalorder %s5190_s1, %s5954_s18 }
0x1647   :  { %p5196_p11 = pnand %p5194_p10, %p5191_p9 }
0x1649   :  { %5199 = shalt.err (!%p5196_p11)
}
0x164a   :  { %3814 = dma.vmem_to_hbm [thread:$0]  %s3809_s21, 512, %s5954_s18, [#allocation5], %s5244_s8, %s5244_s8, %s5967_s3  }
0x164b   :  { %5220 = dma.done.wait [#allocation5], 512  }
0x164c   :  { %5221 = vsyncadd [#allocation5], 4294966784 }
0x164d   :  { %3818 = vsyncpa [#allocation4], 1 }
0x164e   :  { %3819 = vsyncpa [#allocation7], 1 }
0x164f   :  { %3820 = vsyncpa [#allocation10], 1 }
0x1650   :  { %3821 = vsyncpa [#allocation13], 1 }
0x1651   :  { %3822 = vsyncpa [#allocation16], 1 }
0x1652   :  { %3823 = vsyncpa [#allocation19], 1 }
0x1653   :  { %3824 = vsyncpa [#allocation22], 1 }
0x1654   :  { %3825 = vsyncpa [#allocation25], 1 }
0x1655   :  { %3826 = vsyncpa [#allocation28], 1 }
0x1656   :  { %3827 = vsyncpa [#allocation31], 1 }
0x1657   :  { %3828 = vsyncpa [#allocation5], 1 }

</bundles_post_ra>
